<compile_context>
chip_gen: v6e
topology: v6e:2x2x1
jax: 0.10.0
libtpu: 0.0.40
codegen_flags: <defaults>
</compile_context>

<pallas_src>
import functools

import jax
import jax.numpy as jnp
from jax import lax
from jax.experimental import pallas as pl
from jax.experimental.pallas import tpu as pltpu


def gru_kernel(x_ref, wih_ref, bih_ref, whh_ref, bhn_ref, h0_ref,
               out_ref, gi_scr, *, batch, seq_len, hp):
    """Single-invocation kernel; all operands resident in VMEM.

    x_ref   : (S*B, I)    time-major flattened input
    wih_ref : (I, 3*Hp)   [W_ir | W_iz | W_in]^T, each gate lane-padded to Hp
    bih_ref : (1, 3*Hp)   [b_ir+b_hr | b_iz+b_hz | b_in]   (hh r/z biases folded)
    whh_ref : (Hp, 3*Hp)  [W_hr | W_hz | W_hn]^T, zero-padded rows/cols
    bhn_ref : (1, Hp)     b_hn (must stay inside r*(...))
    h0_ref  : (B, Hp)     initial hidden state, lane-padded with zeros
    out_ref : (S*B, Hp)   time-major hidden states (lane-dense, Hp = k*128)
    gi_scr  : (S*B, 3*Hp) scratch: input-side gate pre-activations
    """
    # ---- Prologue: one big MXU pass over the whole sequence (parallel part).
    gi_scr[...] = (
        jnp.dot(x_ref[...], wih_ref[...], preferred_element_type=jnp.float32)
        + bih_ref[...]
    )

    bhn = bhn_ref[...]

    # ---- Serial recurrence: h carried in vregs, fully unrolled.
    def body(t, h_prev):
        off = pl.multiple_of(t * batch, batch)          # sublane-aligned (B%8==0)
        gi = gi_scr[pl.ds(off, batch), :]               # (B, 3*Hp), dense load
        gh = jnp.dot(h_prev, whh_ref[...],
                     preferred_element_type=jnp.float32)  # (B, 3*Hp)
        # Gate split at 128-lane boundaries -> layout-free slices.
        r = jax.nn.sigmoid(gi[:, 0 * hp:1 * hp] + gh[:, 0 * hp:1 * hp])
        z = jax.nn.sigmoid(gi[:, 1 * hp:2 * hp] + gh[:, 1 * hp:2 * hp])
        n = jnp.tanh(gi[:, 2 * hp:3 * hp] + r * (gh[:, 2 * hp:3 * hp] + bhn))
        h = n + z * (h_prev - n)                        # == (1-z)*n + z*h_prev
        out_ref[pl.ds(off, batch), :] = h               # dense (8,128) store
        return h

    lax.fori_loop(0, seq_len, body, h0_ref[...], unroll=True)


def gru_forward(x, w_ih, w_hh, b_ih, b_hh, h0=None):
    """Forward of torch.nn.GRU(input_size, hidden_size, batch_first=True).

    x    : (B, S, I) f32
    w_ih : (3H, I)   torch weight_ih_l0, gate rows ordered [r, z, n]
    w_hh : (3H, H)   torch weight_hh_l0
    b_ih : (3H,)     torch bias_ih_l0
    b_hh : (3H,)     torch bias_hh_l0
    h0   : (B, H) or None (zeros, as in PyTorch)
    Returns `output`: (B, S, H) — hidden state at every timestep.
    """
    B, S, I = x.shape
    H = w_hh.shape[1]
    Hp = ((H + 127) // 128) * 128   # lane-pad hidden dim (100 -> 128)

    if h0 is None:
        h0 = jnp.zeros((B, H), jnp.float32)

    # ---- one-time host-side parameter packing (gate slots at 128 lanes) ----
    wih_p = jnp.zeros((I, 3 * Hp), jnp.float32)
    whh_p = jnp.zeros((Hp, 3 * Hp), jnp.float32)
    bih_p = jnp.zeros((1, 3 * Hp), jnp.float32)
    bhn_p = jnp.zeros((1, Hp), jnp.float32)
    for g in range(3):
        wih_p = wih_p.at[:, g * Hp:g * Hp + H].set(w_ih[g * H:(g + 1) * H, :].T)
        whh_p = whh_p.at[:H, g * Hp:g * Hp + H].set(w_hh[g * H:(g + 1) * H, :].T)
    # Fold b_hr / b_hz into the hoisted input-side bias; b_hn is kept separate.
    bih_p = bih_p.at[:, 0 * Hp:0 * Hp + H].set((b_ih[0:H] + b_hh[0:H])[None, :])
    bih_p = bih_p.at[:, 1 * Hp:1 * Hp + H].set((b_ih[H:2 * H] + b_hh[H:2 * H])[None, :])
    bih_p = bih_p.at[:, 2 * Hp:2 * Hp + H].set(b_ih[2 * H:3 * H][None, :])
    bhn_p = bhn_p.at[:, :H].set(b_hh[2 * H:3 * H][None, :])

    h0_p = jnp.zeros((B, Hp), jnp.float32).at[:, :H].set(h0)

    # Time-major flatten: timestep t occupies rows [t*B, (t+1)*B).
    x_tm = jnp.transpose(x, (1, 0, 2)).reshape(S * B, I)

    kernel = functools.partial(gru_kernel, batch=B, seq_len=S, hp=Hp)
    vmem = pl.BlockSpec(memory_space=pltpu.MemorySpace.VMEM)

    out_tm = pl.pallas_call(
        kernel,
        out_shape=jax.ShapeDtypeStruct((S * B, Hp), jnp.float32),
        in_specs=[vmem] * 6,
        out_specs=vmem,
        scratch_shapes=[pltpu.VMEM((S * B, 3 * Hp), jnp.float32)],
    )(x_tm, wih_p, bih_p, whh_p, bhn_p, h0_p)

    # (S*B, Hp) -> (B, S, H); drop the lane padding.
    return jnp.transpose(out_tm.reshape(S, B, Hp), (1, 0, 2))[:, :, :H]


def gru_reference(x, w_ih, w_hh, b_ih, b_hh, h0=None):
    """Pure-JAX mirror of torch.nn.GRU(batch_first=True, num_layers=1)."""
    B, S, I = x.shape
    H = w_hh.shape[1]
    if h0 is None:
        h0 = jnp.zeros((B, H), jnp.float32)
    w_ir, w_iz, w_in = w_ih[:H], w_ih[H:2 * H], w_ih[2 * H:]
    w_hr, w_hz, w_hn = w_hh[:H], w_hh[H:2 * H], w_hh[2 * H:]
    b_ir, b_iz, b_in = b_ih[:H], b_ih[H:2 * H], b_ih[2 * H:]
    b_hr, b_hz, b_hn = b_hh[:H], b_hh[H:2 * H], b_hh[2 * H:]
    h = h0
    outs = []
    for t in range(S):
        xt = x[:, t, :]
        r = jax.nn.sigmoid(xt @ w_ir.T + b_ir + h @ w_hr.T + b_hr)
        z = jax.nn.sigmoid(xt @ w_iz.T + b_iz + h @ w_hz.T + b_hz)
        n = jnp.tanh(xt @ w_in.T + b_in + r * (h @ w_hn.T + b_hn))
        h = (1.0 - z) * n + z * h
        outs.append(h[:, None, :])
    return jnp.concatenate(outs, axis=1)


if __name__ == "__main__":
    # Module spec: input_size=10, hidden_size=100. Small batch/seq; B is a
    # multiple of 8 so per-step stores are sublane-aligned.
    B, S = 8, 16
    I, H = 10, 100

    key = jax.random.PRNGKey(0)
    kx, k1, k2, k3, k4 = jax.random.split(key, 5)
    x = jax.random.normal(kx, (B, S, I), dtype=jnp.float32)

    # torch.nn.GRU default init: U(-1/sqrt(H), 1/sqrt(H)) for every parameter.
    bound = float(H) ** -0.5
    w_ih = jax.random.uniform(k1, (3 * H, I), jnp.float32, -bound, bound)
    w_hh = jax.random.uniform(k2, (3 * H, H), jnp.float32, -bound, bound)
    b_ih = jax.random.uniform(k3, (3 * H,), jnp.float32, -bound, bound)
    b_hh = jax.random.uniform(k4, (3 * H,), jnp.float32, -bound, bound)

    out = gru_forward(x, w_ih, w_hh, b_ih, b_hh)
    out = jax.block_until_ready(out)

    ref = gru_reference(x, w_ih, w_hh, b_ih, b_hh)
    assert out.shape == (B, S, H)
    assert jnp.allclose(out, ref, atol=1e-4, rtol=1e-4), "mismatch vs reference"

    print("KERNEL_OK")
</pallas_src>

<mosaic_0001>
module attributes {stable_mosaic.version = 11 : i64} {
  func.func @gru_kernel(%arg0: memref<128x10xf32, #tpu.memory_space<vmem>>, %arg1: memref<10x384xf32, #tpu.memory_space<vmem>>, %arg2: memref<1x384xf32, #tpu.memory_space<vmem>>, %arg3: memref<128x384xf32, #tpu.memory_space<vmem>>, %arg4: memref<1x128xf32, #tpu.memory_space<vmem>>, %arg5: memref<8x128xf32, #tpu.memory_space<vmem>>, %arg6: memref<128x128xf32, #tpu.memory_space<vmem>>, %arg7: memref<128x384xf32, #tpu.memory_space<vmem>>) attributes {dimension_semantics = [], scalar_prefetch = 0 : i64, scratch_operands = 1 : i64, tpu.core_type = #tpu.core_type<tc>} {
    %c0 = arith.constant 0 : index
    %c0_0 = arith.constant 0 : index
    %0 = vector.load %arg0[%c0, %c0_0] : memref<128x10xf32, #tpu.memory_space<vmem>>, vector<128x10xf32>
    %c0_1 = arith.constant 0 : index
    %c0_2 = arith.constant 0 : index
    %1 = vector.load %arg1[%c0_1, %c0_2] : memref<10x384xf32, #tpu.memory_space<vmem>>, vector<10x384xf32>
    %cst = arith.constant dense<0.000000e+00> : vector<128x384xf32>
    %2 = tpu.matmul %0, %1, %cst {dimension_numbers = #tpu.dot_dimension_numbers<[1], [0], [0], [1], [0, 0, 1, 1], [], []>} : vector<128x10xf32>, vector<10x384xf32>, vector<128x384xf32> -> vector<128x384xf32>
    %c0_3 = arith.constant 0 : index
    %c0_4 = arith.constant 0 : index
    %3 = vector.load %arg2[%c0_3, %c0_4] : memref<1x384xf32, #tpu.memory_space<vmem>>, vector<1x384xf32>
    %4 = vector.broadcast %3 : vector<1x384xf32> to vector<128x384xf32>
    %5 = arith.addf %2, %4 : vector<128x384xf32>
    %c0_5 = arith.constant 0 : index
    %c0_6 = arith.constant 0 : index
    %6 = vector.load %arg7[%c0_5, %c0_6] : memref<128x384xf32, #tpu.memory_space<vmem>>, vector<128x384xf32>
    tpu.vector_store %arg7[%c0_5, %c0_6], %5 {strides = array<i32>} : memref<128x384xf32, #tpu.memory_space<vmem>>, vector<128x384xf32>,
    %c0_7 = arith.constant 0 : index
    %c0_8 = arith.constant 0 : index
    %7 = vector.load %arg4[%c0_7, %c0_8] : memref<1x128xf32, #tpu.memory_space<vmem>>, vector<1x128xf32>
    %c0_9 = arith.constant 0 : index
    %c0_10 = arith.constant 0 : index
    %8 = vector.load %arg5[%c0_9, %c0_10] : memref<8x128xf32, #tpu.memory_space<vmem>>, vector<8x128xf32>
    %c0_i32 = arith.constant 0 : i32
    %c8_i32 = arith.constant 8 : i32
    %9 = arith.muli %c0_i32, %c8_i32 : i32
    %10 = tpu.assume_multiple %9, 8 : i32
    %11 = arith.index_cast %10 : i32 to index
    %c0_11 = arith.constant 0 : index
    %12 = vector.load %arg7[%11, %c0_11] : memref<128x384xf32, #tpu.memory_space<vmem>>, vector<8x384xf32>
    %c0_12 = arith.constant 0 : index
    %c0_13 = arith.constant 0 : index
    %13 = vector.load %arg3[%c0_12, %c0_13] : memref<128x384xf32, #tpu.memory_space<vmem>>, vector<128x384xf32>
    %cst_14 = arith.constant dense<0.000000e+00> : vector<8x384xf32>
    %14 = tpu.matmul %8, %13, %cst_14 {dimension_numbers = #tpu.dot_dimension_numbers<[1], [0], [0], [1], [0, 0, 1, 1], [], []>} : vector<8x128xf32>, vector<128x384xf32>, vector<8x384xf32> -> vector<8x384xf32>
    %15 = vector.extract_strided_slice %12 {offsets = [0, 0], sizes = [8, 128], strides = [1, 1]} : vector<8x384xf32> to vector<8x128xf32>
    %16 = vector.extract_strided_slice %14 {offsets = [0, 0], sizes = [8, 128], strides = [1, 1]} : vector<8x384xf32> to vector<8x128xf32>
    %17 = arith.addf %15, %16 : vector<8x128xf32>
    %18 = arith.negf %17 : vector<8x128xf32>
    %19 = math.exp %18 : vector<8x128xf32>
    %cst_15 = arith.constant 1.000000e+00 : f32
    %20 = vector.broadcast %cst_15 : f32 to vector<8x128xf32>
    %21 = arith.addf %20, %19 : vector<8x128xf32>
    %22 = arith.divf %20, %21 : vector<8x128xf32>
    %23 = vector.extract_strided_slice %12 {offsets = [0, 128], sizes = [8, 128], strides = [1, 1]} : vector<8x384xf32> to vector<8x128xf32>
    %24 = vector.extract_strided_slice %14 {offsets = [0, 128], sizes = [8, 128], strides = [1, 1]} : vector<8x384xf32> to vector<8x128xf32>
    %25 = arith.addf %23, %24 : vector<8x128xf32>
    %26 = arith.negf %25 : vector<8x128xf32>
    %27 = math.exp %26 : vector<8x128xf32>
    %cst_16 = arith.constant 1.000000e+00 : f32
    %28 = vector.broadcast %cst_16 : f32 to vector<8x128xf32>
    %29 = arith.addf %28, %27 : vector<8x128xf32>
    %30 = arith.divf %28, %29 : vector<8x128xf32>
    %31 = vector.extract_strided_slice %12 {offsets = [0, 256], sizes = [8, 128], strides = [1, 1]} : vector<8x384xf32> to vector<8x128xf32>
    %32 = vector.extract_strided_slice %14 {offsets = [0, 256], sizes = [8, 128], strides = [1, 1]} : vector<8x384xf32> to vector<8x128xf32>
    %33 = vector.broadcast %7 : vector<1x128xf32> to vector<8x128xf32>
    %34 = arith.addf %32, %33 : vector<8x128xf32>
    %35 = arith.mulf %22, %34 : vector<8x128xf32>
    %36 = arith.addf %31, %35 : vector<8x128xf32>
    %37 = math.tanh %36 : vector<8x128xf32>
    %38 = arith.subf %8, %37 : vector<8x128xf32>
    %39 = arith.mulf %30, %38 : vector<8x128xf32>
    %40 = arith.addf %37, %39 : vector<8x128xf32>
    %41 = arith.index_cast %10 : i32 to index
    %c0_17 = arith.constant 0 : index
    %42 = vector.load %arg6[%41, %c0_17] : memref<128x128xf32, #tpu.memory_space<vmem>>, vector<8x128xf32>
    tpu.vector_store %arg6[%41, %c0_17], %40 {strides = array<i32>} : memref<128x128xf32, #tpu.memory_space<vmem>>, vector<8x128xf32>,
    %c1_i32 = arith.constant 1 : i32
    %c8_i32_18 = arith.constant 8 : i32
    %43 = arith.muli %c1_i32, %c8_i32_18 : i32
    %44 = tpu.assume_multiple %43, 8 : i32
    %45 = arith.index_cast %44 : i32 to index
    %c0_19 = arith.constant 0 : index
    %46 = vector.load %arg7[%45, %c0_19] : memref<128x384xf32, #tpu.memory_space<vmem>>, vector<8x384xf32>
    %c0_20 = arith.constant 0 : index
    %c0_21 = arith.constant 0 : index
    %47 = vector.load %arg3[%c0_20, %c0_21] : memref<128x384xf32, #tpu.memory_space<vmem>>, vector<128x384xf32>
    %cst_22 = arith.constant dense<0.000000e+00> : vector<8x384xf32>
    %48 = tpu.matmul %40, %47, %cst_22 {dimension_numbers = #tpu.dot_dimension_numbers<[1], [0], [0], [1], [0, 0, 1, 1], [], []>} : vector<8x128xf32>, vector<128x384xf32>, vector<8x384xf32> -> vector<8x384xf32>
    %49 = vector.extract_strided_slice %46 {offsets = [0, 0], sizes = [8, 128], strides = [1, 1]} : vector<8x384xf32> to vector<8x128xf32>
    %50 = vector.extract_strided_slice %48 {offsets = [0, 0], sizes = [8, 128], strides = [1, 1]} : vector<8x384xf32> to vector<8x128xf32>
    %51 = arith.addf %49, %50 : vector<8x128xf32>
    %52 = arith.negf %51 : vector<8x128xf32>
    %53 = math.exp %52 : vector<8x128xf32>
    %cst_23 = arith.constant 1.000000e+00 : f32
    %54 = vector.broadcast %cst_23 : f32 to vector<8x128xf32>
    %55 = arith.addf %54, %53 : vector<8x128xf32>
    %56 = arith.divf %54, %55 : vector<8x128xf32>
    %57 = vector.extract_strided_slice %46 {offsets = [0, 128], sizes = [8, 128], strides = [1, 1]} : vector<8x384xf32> to vector<8x128xf32>
    %58 = vector.extract_strided_slice %48 {offsets = [0, 128], sizes = [8, 128], strides = [1, 1]} : vector<8x384xf32> to vector<8x128xf32>
    %59 = arith.addf %57, %58 : vector<8x128xf32>
    %60 = arith.negf %59 : vector<8x128xf32>
    %61 = math.exp %60 : vector<8x128xf32>
    %cst_24 = arith.constant 1.000000e+00 : f32
    %62 = vector.broadcast %cst_24 : f32 to vector<8x128xf32>
    %63 = arith.addf %62, %61 : vector<8x128xf32>
    %64 = arith.divf %62, %63 : vector<8x128xf32>
    %65 = vector.extract_strided_slice %46 {offsets = [0, 256], sizes = [8, 128], strides = [1, 1]} : vector<8x384xf32> to vector<8x128xf32>
    %66 = vector.extract_strided_slice %48 {offsets = [0, 256], sizes = [8, 128], strides = [1, 1]} : vector<8x384xf32> to vector<8x128xf32>
    %67 = vector.broadcast %7 : vector<1x128xf32> to vector<8x128xf32>
    %68 = arith.addf %66, %67 : vector<8x128xf32>
    %69 = arith.mulf %56, %68 : vector<8x128xf32>
    %70 = arith.addf %65, %69 : vector<8x128xf32>
    %71 = math.tanh %70 : vector<8x128xf32>
    %72 = arith.subf %40, %71 : vector<8x128xf32>
    %73 = arith.mulf %64, %72 : vector<8x128xf32>
    %74 = arith.addf %71, %73 : vector<8x128xf32>
    %75 = arith.index_cast %44 : i32 to index
    %c0_25 = arith.constant 0 : index
    %76 = vector.load %arg6[%75, %c0_25] : memref<128x128xf32, #tpu.memory_space<vmem>>, vector<8x128xf32>
    tpu.vector_store %arg6[%75, %c0_25], %74 {strides = array<i32>} : memref<128x128xf32, #tpu.memory_space<vmem>>, vector<8x128xf32>,
    %c2_i32 = arith.constant 2 : i32
    %c8_i32_26 = arith.constant 8 : i32
    %77 = arith.muli %c2_i32, %c8_i32_26 : i32
    %78 = tpu.assume_multiple %77, 8 : i32
    %79 = arith.index_cast %78 : i32 to index
    %c0_27 = arith.constant 0 : index
    %80 = vector.load %arg7[%79, %c0_27] : memref<128x384xf32, #tpu.memory_space<vmem>>, vector<8x384xf32>
    %c0_28 = arith.constant 0 : index
    %c0_29 = arith.constant 0 : index
    %81 = vector.load %arg3[%c0_28, %c0_29] : memref<128x384xf32, #tpu.memory_space<vmem>>, vector<128x384xf32>
    %cst_30 = arith.constant dense<0.000000e+00> : vector<8x384xf32>
    %82 = tpu.matmul %74, %81, %cst_30 {dimension_numbers = #tpu.dot_dimension_numbers<[1], [0], [0], [1], [0, 0, 1, 1], [], []>} : vector<8x128xf32>, vector<128x384xf32>, vector<8x384xf32> -> vector<8x384xf32>
    %83 = vector.extract_strided_slice %80 {offsets = [0, 0], sizes = [8, 128], strides = [1, 1]} : vector<8x384xf32> to vector<8x128xf32>
    %84 = vector.extract_strided_slice %82 {offsets = [0, 0], sizes = [8, 128], strides = [1, 1]} : vector<8x384xf32> to vector<8x128xf32>
    %85 = arith.addf %83, %84 : vector<8x128xf32>
    %86 = arith.negf %85 : vector<8x128xf32>
    %87 = math.exp %86 : vector<8x128xf32>
    %cst_31 = arith.constant 1.000000e+00 : f32
    %88 = vector.broadcast %cst_31 : f32 to vector<8x128xf32>
    %89 = arith.addf %88, %87 : vector<8x128xf32>
    %90 = arith.divf %88, %89 : vector<8x128xf32>
    %91 = vector.extract_strided_slice %80 {offsets = [0, 128], sizes = [8, 128], strides = [1, 1]} : vector<8x384xf32> to vector<8x128xf32>
    %92 = vector.extract_strided_slice %82 {offsets = [0, 128], sizes = [8, 128], strides = [1, 1]} : vector<8x384xf32> to vector<8x128xf32>
    %93 = arith.addf %91, %92 : vector<8x128xf32>
    %94 = arith.negf %93 : vector<8x128xf32>
    %95 = math.exp %94 : vector<8x128xf32>
    %cst_32 = arith.constant 1.000000e+00 : f32
    %96 = vector.broadcast %cst_32 : f32 to vector<8x128xf32>
    %97 = arith.addf %96, %95 : vector<8x128xf32>
    %98 = arith.divf %96, %97 : vector<8x128xf32>
    %99 = vector.extract_strided_slice %80 {offsets = [0, 256], sizes = [8, 128], strides = [1, 1]} : vector<8x384xf32> to vector<8x128xf32>
    %100 = vector.extract_strided_slice %82 {offsets = [0, 256], sizes = [8, 128], strides = [1, 1]} : vector<8x384xf32> to vector<8x128xf32>
    %101 = vector.broadcast %7 : vector<1x128xf32> to vector<8x128xf32>
    %102 = arith.addf %100, %101 : vector<8x128xf32>
    %103 = arith.mulf %90, %102 : vector<8x128xf32>
    %104 = arith.addf %99, %103 : vector<8x128xf32>
    %105 = math.tanh %104 : vector<8x128xf32>
    %106 = arith.subf %74, %105 : vector<8x128xf32>
    %107 = arith.mulf %98, %106 : vector<8x128xf32>
    %108 = arith.addf %105, %107 : vector<8x128xf32>
    %109 = arith.index_cast %78 : i32 to index
    %c0_33 = arith.constant 0 : index
    %110 = vector.load %arg6[%109, %c0_33] : memref<128x128xf32, #tpu.memory_space<vmem>>, vector<8x128xf32>
    tpu.vector_store %arg6[%109, %c0_33], %108 {strides = array<i32>} : memref<128x128xf32, #tpu.memory_space<vmem>>, vector<8x128xf32>,
    %c3_i32 = arith.constant 3 : i32
    %c8_i32_34 = arith.constant 8 : i32
    %111 = arith.muli %c3_i32, %c8_i32_34 : i32
    %112 = tpu.assume_multiple %111, 8 : i32
    %113 = arith.index_cast %112 : i32 to index
    %c0_35 = arith.constant 0 : index
    %114 = vector.load %arg7[%113, %c0_35] : memref<128x384xf32, #tpu.memory_space<vmem>>, vector<8x384xf32>
    %c0_36 = arith.constant 0 : index
    %c0_37 = arith.constant 0 : index
    %115 = vector.load %arg3[%c0_36, %c0_37] : memref<128x384xf32, #tpu.memory_space<vmem>>, vector<128x384xf32>
    %cst_38 = arith.constant dense<0.000000e+00> : vector<8x384xf32>
    %116 = tpu.matmul %108, %115, %cst_38 {dimension_numbers = #tpu.dot_dimension_numbers<[1], [0], [0], [1], [0, 0, 1, 1], [], []>} : vector<8x128xf32>, vector<128x384xf32>, vector<8x384xf32> -> vector<8x384xf32>
    %117 = vector.extract_strided_slice %114 {offsets = [0, 0], sizes = [8, 128], strides = [1, 1]} : vector<8x384xf32> to vector<8x128xf32>
    %118 = vector.extract_strided_slice %116 {offsets = [0, 0], sizes = [8, 128], strides = [1, 1]} : vector<8x384xf32> to vector<8x128xf32>
    %119 = arith.addf %117, %118 : vector<8x128xf32>
    %120 = arith.negf %119 : vector<8x128xf32>
    %121 = math.exp %120 : vector<8x128xf32>
    %cst_39 = arith.constant 1.000000e+00 : f32
    %122 = vector.broadcast %cst_39 : f32 to vector<8x128xf32>
    %123 = arith.addf %122, %121 : vector<8x128xf32>
    %124 = arith.divf %122, %123 : vector<8x128xf32>
    %125 = vector.extract_strided_slice %114 {offsets = [0, 128], sizes = [8, 128], strides = [1, 1]} : vector<8x384xf32> to vector<8x128xf32>
    %126 = vector.extract_strided_slice %116 {offsets = [0, 128], sizes = [8, 128], strides = [1, 1]} : vector<8x384xf32> to vector<8x128xf32>
    %127 = arith.addf %125, %126 : vector<8x128xf32>
    %128 = arith.negf %127 : vector<8x128xf32>
    %129 = math.exp %128 : vector<8x128xf32>
    %cst_40 = arith.constant 1.000000e+00 : f32
    %130 = vector.broadcast %cst_40 : f32 to vector<8x128xf32>
    %131 = arith.addf %130, %129 : vector<8x128xf32>
    %132 = arith.divf %130, %131 : vector<8x128xf32>
    %133 = vector.extract_strided_slice %114 {offsets = [0, 256], sizes = [8, 128], strides = [1, 1]} : vector<8x384xf32> to vector<8x128xf32>
    %134 = vector.extract_strided_slice %116 {offsets = [0, 256], sizes = [8, 128], strides = [1, 1]} : vector<8x384xf32> to vector<8x128xf32>
    %135 = vector.broadcast %7 : vector<1x128xf32> to vector<8x128xf32>
    %136 = arith.addf %134, %135 : vector<8x128xf32>
    %137 = arith.mulf %124, %136 : vector<8x128xf32>
    %138 = arith.addf %133, %137 : vector<8x128xf32>
    %139 = math.tanh %138 : vector<8x128xf32>
    %140 = arith.subf %108, %139 : vector<8x128xf32>
    %141 = arith.mulf %132, %140 : vector<8x128xf32>
    %142 = arith.addf %139, %141 : vector<8x128xf32>
    %143 = arith.index_cast %112 : i32 to index
    %c0_41 = arith.constant 0 : index
    %144 = vector.load %arg6[%143, %c0_41] : memref<128x128xf32, #tpu.memory_space<vmem>>, vector<8x128xf32>
    tpu.vector_store %arg6[%143, %c0_41], %142 {strides = array<i32>} : memref<128x128xf32, #tpu.memory_space<vmem>>, vector<8x128xf32>,
    %c4_i32 = arith.constant 4 : i32
    %c8_i32_42 = arith.constant 8 : i32
    %145 = arith.muli %c4_i32, %c8_i32_42 : i32
    %146 = tpu.assume_multiple %145, 8 : i32
    %147 = arith.index_cast %146 : i32 to index
    %c0_43 = arith.constant 0 : index
    %148 = vector.load %arg7[%147, %c0_43] : memref<128x384xf32, #tpu.memory_space<vmem>>, vector<8x384xf32>
    %c0_44 = arith.constant 0 : index
    %c0_45 = arith.constant 0 : index
    %149 = vector.load %arg3[%c0_44, %c0_45] : memref<128x384xf32, #tpu.memory_space<vmem>>, vector<128x384xf32>
    %cst_46 = arith.constant dense<0.000000e+00> : vector<8x384xf32>
    %150 = tpu.matmul %142, %149, %cst_46 {dimension_numbers = #tpu.dot_dimension_numbers<[1], [0], [0], [1], [0, 0, 1, 1], [], []>} : vector<8x128xf32>, vector<128x384xf32>, vector<8x384xf32> -> vector<8x384xf32>
    %151 = vector.extract_strided_slice %148 {offsets = [0, 0], sizes = [8, 128], strides = [1, 1]} : vector<8x384xf32> to vector<8x128xf32>
    %152 = vector.extract_strided_slice %150 {offsets = [0, 0], sizes = [8, 128], strides = [1, 1]} : vector<8x384xf32> to vector<8x128xf32>
    %153 = arith.addf %151, %152 : vector<8x128xf32>
    %154 = arith.negf %153 : vector<8x128xf32>
    %155 = math.exp %154 : vector<8x128xf32>
    %cst_47 = arith.constant 1.000000e+00 : f32
    %156 = vector.broadcast %cst_47 : f32 to vector<8x128xf32>
    %157 = arith.addf %156, %155 : vector<8x128xf32>
    %158 = arith.divf %156, %157 : vector<8x128xf32>
    %159 = vector.extract_strided_slice %148 {offsets = [0, 128], sizes = [8, 128], strides = [1, 1]} : vector<8x384xf32> to vector<8x128xf32>
    %160 = vector.extract_strided_slice %150 {offsets = [0, 128], sizes = [8, 128], strides = [1, 1]} : vector<8x384xf32> to vector<8x128xf32>
    %161 = arith.addf %159, %160 : vector<8x128xf32>
    %162 = arith.negf %161 : vector<8x128xf32>
    %163 = math.exp %162 : vector<8x128xf32>
    %cst_48 = arith.constant 1.000000e+00 : f32
    %164 = vector.broadcast %cst_48 : f32 to vector<8x128xf32>
    %165 = arith.addf %164, %163 : vector<8x128xf32>
    %166 = arith.divf %164, %165 : vector<8x128xf32>
    %167 = vector.extract_strided_slice %148 {offsets = [0, 256], sizes = [8, 128], strides = [1, 1]} : vector<8x384xf32> to vector<8x128xf32>
    %168 = vector.extract_strided_slice %150 {offsets = [0, 256], sizes = [8, 128], strides = [1, 1]} : vector<8x384xf32> to vector<8x128xf32>
    %169 = vector.broadcast %7 : vector<1x128xf32> to vector<8x128xf32>
    %170 = arith.addf %168, %169 : vector<8x128xf32>
    %171 = arith.mulf %158, %170 : vector<8x128xf32>
    %172 = arith.addf %167, %171 : vector<8x128xf32>
    %173 = math.tanh %172 : vector<8x128xf32>
    %174 = arith.subf %142, %173 : vector<8x128xf32>
    %175 = arith.mulf %166, %174 : vector<8x128xf32>
    %176 = arith.addf %173, %175 : vector<8x128xf32>
    %177 = arith.index_cast %146 : i32 to index
    %c0_49 = arith.constant 0 : index
    %178 = vector.load %arg6[%177, %c0_49] : memref<128x128xf32, #tpu.memory_space<vmem>>, vector<8x128xf32>
    tpu.vector_store %arg6[%177, %c0_49], %176 {strides = array<i32>} : memref<128x128xf32, #tpu.memory_space<vmem>>, vector<8x128xf32>,
    %c5_i32 = arith.constant 5 : i32
    %c8_i32_50 = arith.constant 8 : i32
    %179 = arith.muli %c5_i32, %c8_i32_50 : i32
    %180 = tpu.assume_multiple %179, 8 : i32
    %181 = arith.index_cast %180 : i32 to index
    %c0_51 = arith.constant 0 : index
    %182 = vector.load %arg7[%181, %c0_51] : memref<128x384xf32, #tpu.memory_space<vmem>>, vector<8x384xf32>
    %c0_52 = arith.constant 0 : index
    %c0_53 = arith.constant 0 : index
    %183 = vector.load %arg3[%c0_52, %c0_53] : memref<128x384xf32, #tpu.memory_space<vmem>>, vector<128x384xf32>
    %cst_54 = arith.constant dense<0.000000e+00> : vector<8x384xf32>
    %184 = tpu.matmul %176, %183, %cst_54 {dimension_numbers = #tpu.dot_dimension_numbers<[1], [0], [0], [1], [0, 0, 1, 1], [], []>} : vector<8x128xf32>, vector<128x384xf32>, vector<8x384xf32> -> vector<8x384xf32>
    %185 = vector.extract_strided_slice %182 {offsets = [0, 0], sizes = [8, 128], strides = [1, 1]} : vector<8x384xf32> to vector<8x128xf32>
    %186 = vector.extract_strided_slice %184 {offsets = [0, 0], sizes = [8, 128], strides = [1, 1]} : vector<8x384xf32> to vector<8x128xf32>
    %187 = arith.addf %185, %186 : vector<8x128xf32>
    %188 = arith.negf %187 : vector<8x128xf32>
    %189 = math.exp %188 : vector<8x128xf32>
    %cst_55 = arith.constant 1.000000e+00 : f32
    %190 = vector.broadcast %cst_55 : f32 to vector<8x128xf32>
    %191 = arith.addf %190, %189 : vector<8x128xf32>
    %192 = arith.divf %190, %191 : vector<8x128xf32>
    %193 = vector.extract_strided_slice %182 {offsets = [0, 128], sizes = [8, 128], strides = [1, 1]} : vector<8x384xf32> to vector<8x128xf32>
    %194 = vector.extract_strided_slice %184 {offsets = [0, 128], sizes = [8, 128], strides = [1, 1]} : vector<8x384xf32> to vector<8x128xf32>
    %195 = arith.addf %193, %194 : vector<8x128xf32>
    %196 = arith.negf %195 : vector<8x128xf32>
    %197 = math.exp %196 : vector<8x128xf32>
    %cst_56 = arith.constant 1.000000e+00 : f32
    %198 = vector.broadcast %cst_56 : f32 to vector<8x128xf32>
    %199 = arith.addf %198, %197 : vector<8x128xf32>
    %200 = arith.divf %198, %199 : vector<8x128xf32>
    %201 = vector.extract_strided_slice %182 {offsets = [0, 256], sizes = [8, 128], strides = [1, 1]} : vector<8x384xf32> to vector<8x128xf32>
    %202 = vector.extract_strided_slice %184 {offsets = [0, 256], sizes = [8, 128], strides = [1, 1]} : vector<8x384xf32> to vector<8x128xf32>
    %203 = vector.broadcast %7 : vector<1x128xf32> to vector<8x128xf32>
    %204 = arith.addf %202, %203 : vector<8x128xf32>
    %205 = arith.mulf %192, %204 : vector<8x128xf32>
    %206 = arith.addf %201, %205 : vector<8x128xf32>
    %207 = math.tanh %206 : vector<8x128xf32>
    %208 = arith.subf %176, %207 : vector<8x128xf32>
    %209 = arith.mulf %200, %208 : vector<8x128xf32>
    %210 = arith.addf %207, %209 : vector<8x128xf32>
    %211 = arith.index_cast %180 : i32 to index
    %c0_57 = arith.constant 0 : index
    %212 = vector.load %arg6[%211, %c0_57] : memref<128x128xf32, #tpu.memory_space<vmem>>, vector<8x128xf32>
    tpu.vector_store %arg6[%211, %c0_57], %210 {strides = array<i32>} : memref<128x128xf32, #tpu.memory_space<vmem>>, vector<8x128xf32>,
    %c6_i32 = arith.constant 6 : i32
    %c8_i32_58 = arith.constant 8 : i32
    %213 = arith.muli %c6_i32, %c8_i32_58 : i32
    %214 = tpu.assume_multiple %213, 8 : i32
    %215 = arith.index_cast %214 : i32 to index
    %c0_59 = arith.constant 0 : index
    %216 = vector.load %arg7[%215, %c0_59] : memref<128x384xf32, #tpu.memory_space<vmem>>, vector<8x384xf32>
    %c0_60 = arith.constant 0 : index
    %c0_61 = arith.constant 0 : index
    %217 = vector.load %arg3[%c0_60, %c0_61] : memref<128x384xf32, #tpu.memory_space<vmem>>, vector<128x384xf32>
    %cst_62 = arith.constant dense<0.000000e+00> : vector<8x384xf32>
    %218 = tpu.matmul %210, %217, %cst_62 {dimension_numbers = #tpu.dot_dimension_numbers<[1], [0], [0], [1], [0, 0, 1, 1], [], []>} : vector<8x128xf32>, vector<128x384xf32>, vector<8x384xf32> -> vector<8x384xf32>
    %219 = vector.extract_strided_slice %216 {offsets = [0, 0], sizes = [8, 128], strides = [1, 1]} : vector<8x384xf32> to vector<8x128xf32>
    %220 = vector.extract_strided_slice %218 {offsets = [0, 0], sizes = [8, 128], strides = [1, 1]} : vector<8x384xf32> to vector<8x128xf32>
    %221 = arith.addf %219, %220 : vector<8x128xf32>
    %222 = arith.negf %221 : vector<8x128xf32>
    %223 = math.exp %222 : vector<8x128xf32>
    %cst_63 = arith.constant 1.000000e+00 : f32
    %224 = vector.broadcast %cst_63 : f32 to vector<8x128xf32>
    %225 = arith.addf %224, %223 : vector<8x128xf32>
    %226 = arith.divf %224, %225 : vector<8x128xf32>
    %227 = vector.extract_strided_slice %216 {offsets = [0, 128], sizes = [8, 128], strides = [1, 1]} : vector<8x384xf32> to vector<8x128xf32>
    %228 = vector.extract_strided_slice %218 {offsets = [0, 128], sizes = [8, 128], strides = [1, 1]} : vector<8x384xf32> to vector<8x128xf32>
    %229 = arith.addf %227, %228 : vector<8x128xf32>
    %230 = arith.negf %229 : vector<8x128xf32>
    %231 = math.exp %230 : vector<8x128xf32>
    %cst_64 = arith.constant 1.000000e+00 : f32
    %232 = vector.broadcast %cst_64 : f32 to vector<8x128xf32>
    %233 = arith.addf %232, %231 : vector<8x128xf32>
    %234 = arith.divf %232, %233 : vector<8x128xf32>
    %235 = vector.extract_strided_slice %216 {offsets = [0, 256], sizes = [8, 128], strides = [1, 1]} : vector<8x384xf32> to vector<8x128xf32>
    %236 = vector.extract_strided_slice %218 {offsets = [0, 256], sizes = [8, 128], strides = [1, 1]} : vector<8x384xf32> to vector<8x128xf32>
    %237 = vector.broadcast %7 : vector<1x128xf32> to vector<8x128xf32>
    %238 = arith.addf %236, %237 : vector<8x128xf32>
    %239 = arith.mulf %226, %238 : vector<8x128xf32>
    %240 = arith.addf %235, %239 : vector<8x128xf32>
    %241 = math.tanh %240 : vector<8x128xf32>
    %242 = arith.subf %210, %241 : vector<8x128xf32>
    %243 = arith.mulf %234, %242 : vector<8x128xf32>
    %244 = arith.addf %241, %243 : vector<8x128xf32>
    %245 = arith.index_cast %214 : i32 to index
    %c0_65 = arith.constant 0 : index
    %246 = vector.load %arg6[%245, %c0_65] : memref<128x128xf32, #tpu.memory_space<vmem>>, vector<8x128xf32>
    tpu.vector_store %arg6[%245, %c0_65], %244 {strides = array<i32>} : memref<128x128xf32, #tpu.memory_space<vmem>>, vector<8x128xf32>,
    %c7_i32 = arith.constant 7 : i32
    %c8_i32_66 = arith.constant 8 : i32
    %247 = arith.muli %c7_i32, %c8_i32_66 : i32
    %248 = tpu.assume_multiple %247, 8 : i32
    %249 = arith.index_cast %248 : i32 to index
    %c0_67 = arith.constant 0 : index
    %250 = vector.load %arg7[%249, %c0_67] : memref<128x384xf32, #tpu.memory_space<vmem>>, vector<8x384xf32>
    %c0_68 = arith.constant 0 : index
    %c0_69 = arith.constant 0 : index
    %251 = vector.load %arg3[%c0_68, %c0_69] : memref<128x384xf32, #tpu.memory_space<vmem>>, vector<128x384xf32>
    %cst_70 = arith.constant dense<0.000000e+00> : vector<8x384xf32>
    %252 = tpu.matmul %244, %251, %cst_70 {dimension_numbers = #tpu.dot_dimension_numbers<[1], [0], [0], [1], [0, 0, 1, 1], [], []>} : vector<8x128xf32>, vector<128x384xf32>, vector<8x384xf32> -> vector<8x384xf32>
    %253 = vector.extract_strided_slice %250 {offsets = [0, 0], sizes = [8, 128], strides = [1, 1]} : vector<8x384xf32> to vector<8x128xf32>
    %254 = vector.extract_strided_slice %252 {offsets = [0, 0], sizes = [8, 128], strides = [1, 1]} : vector<8x384xf32> to vector<8x128xf32>
    %255 = arith.addf %253, %254 : vector<8x128xf32>
    %256 = arith.negf %255 : vector<8x128xf32>
    %257 = math.exp %256 : vector<8x128xf32>
    %cst_71 = arith.constant 1.000000e+00 : f32
    %258 = vector.broadcast %cst_71 : f32 to vector<8x128xf32>
    %259 = arith.addf %258, %257 : vector<8x128xf32>
    %260 = arith.divf %258, %259 : vector<8x128xf32>
    %261 = vector.extract_strided_slice %250 {offsets = [0, 128], sizes = [8, 128], strides = [1, 1]} : vector<8x384xf32> to vector<8x128xf32>
    %262 = vector.extract_strided_slice %252 {offsets = [0, 128], sizes = [8, 128], strides = [1, 1]} : vector<8x384xf32> to vector<8x128xf32>
    %263 = arith.addf %261, %262 : vector<8x128xf32>
    %264 = arith.negf %263 : vector<8x128xf32>
    %265 = math.exp %264 : vector<8x128xf32>
    %cst_72 = arith.constant 1.000000e+00 : f32
    %266 = vector.broadcast %cst_72 : f32 to vector<8x128xf32>
    %267 = arith.addf %266, %265 : vector<8x128xf32>
    %268 = arith.divf %266, %267 : vector<8x128xf32>
    %269 = vector.extract_strided_slice %250 {offsets = [0, 256], sizes = [8, 128], strides = [1, 1]} : vector<8x384xf32> to vector<8x128xf32>
    %270 = vector.extract_strided_slice %252 {offsets = [0, 256], sizes = [8, 128], strides = [1, 1]} : vector<8x384xf32> to vector<8x128xf32>
    %271 = vector.broadcast %7 : vector<1x128xf32> to vector<8x128xf32>
    %272 = arith.addf %270, %271 : vector<8x128xf32>
    %273 = arith.mulf %260, %272 : vector<8x128xf32>
    %274 = arith.addf %269, %273 : vector<8x128xf32>
    %275 = math.tanh %274 : vector<8x128xf32>
    %276 = arith.subf %244, %275 : vector<8x128xf32>
    %277 = arith.mulf %268, %276 : vector<8x128xf32>
    %278 = arith.addf %275, %277 : vector<8x128xf32>
    %279 = arith.index_cast %248 : i32 to index
    %c0_73 = arith.constant 0 : index
    %280 = vector.load %arg6[%279, %c0_73] : memref<128x128xf32, #tpu.memory_space<vmem>>, vector<8x128xf32>
    tpu.vector_store %arg6[%279, %c0_73], %278 {strides = array<i32>} : memref<128x128xf32, #tpu.memory_space<vmem>>, vector<8x128xf32>,
    %c8_i32_74 = arith.constant 8 : i32
    %c8_i32_75 = arith.constant 8 : i32
    %281 = arith.muli %c8_i32_74, %c8_i32_75 : i32
    %282 = tpu.assume_multiple %281, 8 : i32
    %283 = arith.index_cast %282 : i32 to index
    %c0_76 = arith.constant 0 : index
    %284 = vector.load %arg7[%283, %c0_76] : memref<128x384xf32, #tpu.memory_space<vmem>>, vector<8x384xf32>
    %c0_77 = arith.constant 0 : index
    %c0_78 = arith.constant 0 : index
    %285 = vector.load %arg3[%c0_77, %c0_78] : memref<128x384xf32, #tpu.memory_space<vmem>>, vector<128x384xf32>
    %cst_79 = arith.constant dense<0.000000e+00> : vector<8x384xf32>
    %286 = tpu.matmul %278, %285, %cst_79 {dimension_numbers = #tpu.dot_dimension_numbers<[1], [0], [0], [1], [0, 0, 1, 1], [], []>} : vector<8x128xf32>, vector<128x384xf32>, vector<8x384xf32> -> vector<8x384xf32>
    %287 = vector.extract_strided_slice %284 {offsets = [0, 0], sizes = [8, 128], strides = [1, 1]} : vector<8x384xf32> to vector<8x128xf32>
    %288 = vector.extract_strided_slice %286 {offsets = [0, 0], sizes = [8, 128], strides = [1, 1]} : vector<8x384xf32> to vector<8x128xf32>
    %289 = arith.addf %287, %288 : vector<8x128xf32>
    %290 = arith.negf %289 : vector<8x128xf32>
    %291 = math.exp %290 : vector<8x128xf32>
    %cst_80 = arith.constant 1.000000e+00 : f32
    %292 = vector.broadcast %cst_80 : f32 to vector<8x128xf32>
    %293 = arith.addf %292, %291 : vector<8x128xf32>
    %294 = arith.divf %292, %293 : vector<8x128xf32>
    %295 = vector.extract_strided_slice %284 {offsets = [0, 128], sizes = [8, 128], strides = [1, 1]} : vector<8x384xf32> to vector<8x128xf32>
    %296 = vector.extract_strided_slice %286 {offsets = [0, 128], sizes = [8, 128], strides = [1, 1]} : vector<8x384xf32> to vector<8x128xf32>
    %297 = arith.addf %295, %296 : vector<8x128xf32>
    %298 = arith.negf %297 : vector<8x128xf32>
    %299 = math.exp %298 : vector<8x128xf32>
    %cst_81 = arith.constant 1.000000e+00 : f32
    %300 = vector.broadcast %cst_81 : f32 to vector<8x128xf32>
    %301 = arith.addf %300, %299 : vector<8x128xf32>
    %302 = arith.divf %300, %301 : vector<8x128xf32>
    %303 = vector.extract_strided_slice %284 {offsets = [0, 256], sizes = [8, 128], strides = [1, 1]} : vector<8x384xf32> to vector<8x128xf32>
    %304 = vector.extract_strided_slice %286 {offsets = [0, 256], sizes = [8, 128], strides = [1, 1]} : vector<8x384xf32> to vector<8x128xf32>
    %305 = vector.broadcast %7 : vector<1x128xf32> to vector<8x128xf32>
    %306 = arith.addf %304, %305 : vector<8x128xf32>
    %307 = arith.mulf %294, %306 : vector<8x128xf32>
    %308 = arith.addf %303, %307 : vector<8x128xf32>
    %309 = math.tanh %308 : vector<8x128xf32>
    %310 = arith.subf %278, %309 : vector<8x128xf32>
    %311 = arith.mulf %302, %310 : vector<8x128xf32>
    %312 = arith.addf %309, %311 : vector<8x128xf32>
    %313 = arith.index_cast %282 : i32 to index
    %c0_82 = arith.constant 0 : index
    %314 = vector.load %arg6[%313, %c0_82] : memref<128x128xf32, #tpu.memory_space<vmem>>, vector<8x128xf32>
    tpu.vector_store %arg6[%313, %c0_82], %312 {strides = array<i32>} : memref<128x128xf32, #tpu.memory_space<vmem>>, vector<8x128xf32>,
    %c9_i32 = arith.constant 9 : i32
    %c8_i32_83 = arith.constant 8 : i32
    %315 = arith.muli %c9_i32, %c8_i32_83 : i32
    %316 = tpu.assume_multiple %315, 8 : i32
    %317 = arith.index_cast %316 : i32 to index
    %c0_84 = arith.constant 0 : index
    %318 = vector.load %arg7[%317, %c0_84] : memref<128x384xf32, #tpu.memory_space<vmem>>, vector<8x384xf32>
    %c0_85 = arith.constant 0 : index
    %c0_86 = arith.constant 0 : index
    %319 = vector.load %arg3[%c0_85, %c0_86] : memref<128x384xf32, #tpu.memory_space<vmem>>, vector<128x384xf32>
    %cst_87 = arith.constant dense<0.000000e+00> : vector<8x384xf32>
    %320 = tpu.matmul %312, %319, %cst_87 {dimension_numbers = #tpu.dot_dimension_numbers<[1], [0], [0], [1], [0, 0, 1, 1], [], []>} : vector<8x128xf32>, vector<128x384xf32>, vector<8x384xf32> -> vector<8x384xf32>
    %321 = vector.extract_strided_slice %318 {offsets = [0, 0], sizes = [8, 128], strides = [1, 1]} : vector<8x384xf32> to vector<8x128xf32>
    %322 = vector.extract_strided_slice %320 {offsets = [0, 0], sizes = [8, 128], strides = [1, 1]} : vector<8x384xf32> to vector<8x128xf32>
    %323 = arith.addf %321, %322 : vector<8x128xf32>
    %324 = arith.negf %323 : vector<8x128xf32>
    %325 = math.exp %324 : vector<8x128xf32>
    %cst_88 = arith.constant 1.000000e+00 : f32
    %326 = vector.broadcast %cst_88 : f32 to vector<8x128xf32>
    %327 = arith.addf %326, %325 : vector<8x128xf32>
    %328 = arith.divf %326, %327 : vector<8x128xf32>
    %329 = vector.extract_strided_slice %318 {offsets = [0, 128], sizes = [8, 128], strides = [1, 1]} : vector<8x384xf32> to vector<8x128xf32>
    %330 = vector.extract_strided_slice %320 {offsets = [0, 128], sizes = [8, 128], strides = [1, 1]} : vector<8x384xf32> to vector<8x128xf32>
    %331 = arith.addf %329, %330 : vector<8x128xf32>
    %332 = arith.negf %331 : vector<8x128xf32>
    %333 = math.exp %332 : vector<8x128xf32>
    %cst_89 = arith.constant 1.000000e+00 : f32
    %334 = vector.broadcast %cst_89 : f32 to vector<8x128xf32>
    %335 = arith.addf %334, %333 : vector<8x128xf32>
    %336 = arith.divf %334, %335 : vector<8x128xf32>
    %337 = vector.extract_strided_slice %318 {offsets = [0, 256], sizes = [8, 128], strides = [1, 1]} : vector<8x384xf32> to vector<8x128xf32>
    %338 = vector.extract_strided_slice %320 {offsets = [0, 256], sizes = [8, 128], strides = [1, 1]} : vector<8x384xf32> to vector<8x128xf32>
    %339 = vector.broadcast %7 : vector<1x128xf32> to vector<8x128xf32>
    %340 = arith.addf %338, %339 : vector<8x128xf32>
    %341 = arith.mulf %328, %340 : vector<8x128xf32>
    %342 = arith.addf %337, %341 : vector<8x128xf32>
    %343 = math.tanh %342 : vector<8x128xf32>
    %344 = arith.subf %312, %343 : vector<8x128xf32>
    %345 = arith.mulf %336, %344 : vector<8x128xf32>
    %346 = arith.addf %343, %345 : vector<8x128xf32>
    %347 = arith.index_cast %316 : i32 to index
    %c0_90 = arith.constant 0 : index
    %348 = vector.load %arg6[%347, %c0_90] : memref<128x128xf32, #tpu.memory_space<vmem>>, vector<8x128xf32>
    tpu.vector_store %arg6[%347, %c0_90], %346 {strides = array<i32>} : memref<128x128xf32, #tpu.memory_space<vmem>>, vector<8x128xf32>,
    %c10_i32 = arith.constant 10 : i32
    %c8_i32_91 = arith.constant 8 : i32
    %349 = arith.muli %c10_i32, %c8_i32_91 : i32
    %350 = tpu.assume_multiple %349, 8 : i32
    %351 = arith.index_cast %350 : i32 to index
    %c0_92 = arith.constant 0 : index
    %352 = vector.load %arg7[%351, %c0_92] : memref<128x384xf32, #tpu.memory_space<vmem>>, vector<8x384xf32>
    %c0_93 = arith.constant 0 : index
    %c0_94 = arith.constant 0 : index
    %353 = vector.load %arg3[%c0_93, %c0_94] : memref<128x384xf32, #tpu.memory_space<vmem>>, vector<128x384xf32>
    %cst_95 = arith.constant dense<0.000000e+00> : vector<8x384xf32>
    %354 = tpu.matmul %346, %353, %cst_95 {dimension_numbers = #tpu.dot_dimension_numbers<[1], [0], [0], [1], [0, 0, 1, 1], [], []>} : vector<8x128xf32>, vector<128x384xf32>, vector<8x384xf32> -> vector<8x384xf32>
    %355 = vector.extract_strided_slice %352 {offsets = [0, 0], sizes = [8, 128], strides = [1, 1]} : vector<8x384xf32> to vector<8x128xf32>
    %356 = vector.extract_strided_slice %354 {offsets = [0, 0], sizes = [8, 128], strides = [1, 1]} : vector<8x384xf32> to vector<8x128xf32>
    %357 = arith.addf %355, %356 : vector<8x128xf32>
    %358 = arith.negf %357 : vector<8x128xf32>
    %359 = math.exp %358 : vector<8x128xf32>
    %cst_96 = arith.constant 1.000000e+00 : f32
    %360 = vector.broadcast %cst_96 : f32 to vector<8x128xf32>
    %361 = arith.addf %360, %359 : vector<8x128xf32>
    %362 = arith.divf %360, %361 : vector<8x128xf32>
    %363 = vector.extract_strided_slice %352 {offsets = [0, 128], sizes = [8, 128], strides = [1, 1]} : vector<8x384xf32> to vector<8x128xf32>
    %364 = vector.extract_strided_slice %354 {offsets = [0, 128], sizes = [8, 128], strides = [1, 1]} : vector<8x384xf32> to vector<8x128xf32>
    %365 = arith.addf %363, %364 : vector<8x128xf32>
    %366 = arith.negf %365 : vector<8x128xf32>
    %367 = math.exp %366 : vector<8x128xf32>
    %cst_97 = arith.constant 1.000000e+00 : f32
    %368 = vector.broadcast %cst_97 : f32 to vector<8x128xf32>
    %369 = arith.addf %368, %367 : vector<8x128xf32>
    %370 = arith.divf %368, %369 : vector<8x128xf32>
    %371 = vector.extract_strided_slice %352 {offsets = [0, 256], sizes = [8, 128], strides = [1, 1]} : vector<8x384xf32> to vector<8x128xf32>
    %372 = vector.extract_strided_slice %354 {offsets = [0, 256], sizes = [8, 128], strides = [1, 1]} : vector<8x384xf32> to vector<8x128xf32>
    %373 = vector.broadcast %7 : vector<1x128xf32> to vector<8x128xf32>
    %374 = arith.addf %372, %373 : vector<8x128xf32>
    %375 = arith.mulf %362, %374 : vector<8x128xf32>
    %376 = arith.addf %371, %375 : vector<8x128xf32>
    %377 = math.tanh %376 : vector<8x128xf32>
    %378 = arith.subf %346, %377 : vector<8x128xf32>
    %379 = arith.mulf %370, %378 : vector<8x128xf32>
    %380 = arith.addf %377, %379 : vector<8x128xf32>
    %381 = arith.index_cast %350 : i32 to index
    %c0_98 = arith.constant 0 : index
    %382 = vector.load %arg6[%381, %c0_98] : memref<128x128xf32, #tpu.memory_space<vmem>>, vector<8x128xf32>
    tpu.vector_store %arg6[%381, %c0_98], %380 {strides = array<i32>} : memref<128x128xf32, #tpu.memory_space<vmem>>, vector<8x128xf32>,
    %c11_i32 = arith.constant 11 : i32
    %c8_i32_99 = arith.constant 8 : i32
    %383 = arith.muli %c11_i32, %c8_i32_99 : i32
    %384 = tpu.assume_multiple %383, 8 : i32
    %385 = arith.index_cast %384 : i32 to index
    %c0_100 = arith.constant 0 : index
    %386 = vector.load %arg7[%385, %c0_100] : memref<128x384xf32, #tpu.memory_space<vmem>>, vector<8x384xf32>
    %c0_101 = arith.constant 0 : index
    %c0_102 = arith.constant 0 : index
    %387 = vector.load %arg3[%c0_101, %c0_102] : memref<128x384xf32, #tpu.memory_space<vmem>>, vector<128x384xf32>
    %cst_103 = arith.constant dense<0.000000e+00> : vector<8x384xf32>
    %388 = tpu.matmul %380, %387, %cst_103 {dimension_numbers = #tpu.dot_dimension_numbers<[1], [0], [0], [1], [0, 0, 1, 1], [], []>} : vector<8x128xf32>, vector<128x384xf32>, vector<8x384xf32> -> vector<8x384xf32>
    %389 = vector.extract_strided_slice %386 {offsets = [0, 0], sizes = [8, 128], strides = [1, 1]} : vector<8x384xf32> to vector<8x128xf32>
    %390 = vector.extract_strided_slice %388 {offsets = [0, 0], sizes = [8, 128], strides = [1, 1]} : vector<8x384xf32> to vector<8x128xf32>
    %391 = arith.addf %389, %390 : vector<8x128xf32>
    %392 = arith.negf %391 : vector<8x128xf32>
    %393 = math.exp %392 : vector<8x128xf32>
    %cst_104 = arith.constant 1.000000e+00 : f32
    %394 = vector.broadcast %cst_104 : f32 to vector<8x128xf32>
    %395 = arith.addf %394, %393 : vector<8x128xf32>
    %396 = arith.divf %394, %395 : vector<8x128xf32>
    %397 = vector.extract_strided_slice %386 {offsets = [0, 128], sizes = [8, 128], strides = [1, 1]} : vector<8x384xf32> to vector<8x128xf32>
    %398 = vector.extract_strided_slice %388 {offsets = [0, 128], sizes = [8, 128], strides = [1, 1]} : vector<8x384xf32> to vector<8x128xf32>
    %399 = arith.addf %397, %398 : vector<8x128xf32>
    %400 = arith.negf %399 : vector<8x128xf32>
    %401 = math.exp %400 : vector<8x128xf32>
    %cst_105 = arith.constant 1.000000e+00 : f32
    %402 = vector.broadcast %cst_105 : f32 to vector<8x128xf32>
    %403 = arith.addf %402, %401 : vector<8x128xf32>
    %404 = arith.divf %402, %403 : vector<8x128xf32>
    %405 = vector.extract_strided_slice %386 {offsets = [0, 256], sizes = [8, 128], strides = [1, 1]} : vector<8x384xf32> to vector<8x128xf32>
    %406 = vector.extract_strided_slice %388 {offsets = [0, 256], sizes = [8, 128], strides = [1, 1]} : vector<8x384xf32> to vector<8x128xf32>
    %407 = vector.broadcast %7 : vector<1x128xf32> to vector<8x128xf32>
    %408 = arith.addf %406, %407 : vector<8x128xf32>
    %409 = arith.mulf %396, %408 : vector<8x128xf32>
    %410 = arith.addf %405, %409 : vector<8x128xf32>
    %411 = math.tanh %410 : vector<8x128xf32>
    %412 = arith.subf %380, %411 : vector<8x128xf32>
    %413 = arith.mulf %404, %412 : vector<8x128xf32>
    %414 = arith.addf %411, %413 : vector<8x128xf32>
    %415 = arith.index_cast %384 : i32 to index
    %c0_106 = arith.constant 0 : index
    %416 = vector.load %arg6[%415, %c0_106] : memref<128x128xf32, #tpu.memory_space<vmem>>, vector<8x128xf32>
    tpu.vector_store %arg6[%415, %c0_106], %414 {strides = array<i32>} : memref<128x128xf32, #tpu.memory_space<vmem>>, vector<8x128xf32>,
    %c12_i32 = arith.constant 12 : i32
    %c8_i32_107 = arith.constant 8 : i32
    %417 = arith.muli %c12_i32, %c8_i32_107 : i32
    %418 = tpu.assume_multiple %417, 8 : i32
    %419 = arith.index_cast %418 : i32 to index
    %c0_108 = arith.constant 0 : index
    %420 = vector.load %arg7[%419, %c0_108] : memref<128x384xf32, #tpu.memory_space<vmem>>, vector<8x384xf32>
    %c0_109 = arith.constant 0 : index
    %c0_110 = arith.constant 0 : index
    %421 = vector.load %arg3[%c0_109, %c0_110] : memref<128x384xf32, #tpu.memory_space<vmem>>, vector<128x384xf32>
    %cst_111 = arith.constant dense<0.000000e+00> : vector<8x384xf32>
    %422 = tpu.matmul %414, %421, %cst_111 {dimension_numbers = #tpu.dot_dimension_numbers<[1], [0], [0], [1], [0, 0, 1, 1], [], []>} : vector<8x128xf32>, vector<128x384xf32>, vector<8x384xf32> -> vector<8x384xf32>
    %423 = vector.extract_strided_slice %420 {offsets = [0, 0], sizes = [8, 128], strides = [1, 1]} : vector<8x384xf32> to vector<8x128xf32>
    %424 = vector.extract_strided_slice %422 {offsets = [0, 0], sizes = [8, 128], strides = [1, 1]} : vector<8x384xf32> to vector<8x128xf32>
    %425 = arith.addf %423, %424 : vector<8x128xf32>
    %426 = arith.negf %425 : vector<8x128xf32>
    %427 = math.exp %426 : vector<8x128xf32>
    %cst_112 = arith.constant 1.000000e+00 : f32
    %428 = vector.broadcast %cst_112 : f32 to vector<8x128xf32>
    %429 = arith.addf %428, %427 : vector<8x128xf32>
    %430 = arith.divf %428, %429 : vector<8x128xf32>
    %431 = vector.extract_strided_slice %420 {offsets = [0, 128], sizes = [8, 128], strides = [1, 1]} : vector<8x384xf32> to vector<8x128xf32>
    %432 = vector.extract_strided_slice %422 {offsets = [0, 128], sizes = [8, 128], strides = [1, 1]} : vector<8x384xf32> to vector<8x128xf32>
    %433 = arith.addf %431, %432 : vector<8x128xf32>
    %434 = arith.negf %433 : vector<8x128xf32>
    %435 = math.exp %434 : vector<8x128xf32>
    %cst_113 = arith.constant 1.000000e+00 : f32
    %436 = vector.broadcast %cst_113 : f32 to vector<8x128xf32>
    %437 = arith.addf %436, %435 : vector<8x128xf32>
    %438 = arith.divf %436, %437 : vector<8x128xf32>
    %439 = vector.extract_strided_slice %420 {offsets = [0, 256], sizes = [8, 128], strides = [1, 1]} : vector<8x384xf32> to vector<8x128xf32>
    %440 = vector.extract_strided_slice %422 {offsets = [0, 256], sizes = [8, 128], strides = [1, 1]} : vector<8x384xf32> to vector<8x128xf32>
    %441 = vector.broadcast %7 : vector<1x128xf32> to vector<8x128xf32>
    %442 = arith.addf %440, %441 : vector<8x128xf32>
    %443 = arith.mulf %430, %442 : vector<8x128xf32>
    %444 = arith.addf %439, %443 : vector<8x128xf32>
    %445 = math.tanh %444 : vector<8x128xf32>
    %446 = arith.subf %414, %445 : vector<8x128xf32>
    %447 = arith.mulf %438, %446 : vector<8x128xf32>
    %448 = arith.addf %445, %447 : vector<8x128xf32>
    %449 = arith.index_cast %418 : i32 to index
    %c0_114 = arith.constant 0 : index
    %450 = vector.load %arg6[%449, %c0_114] : memref<128x128xf32, #tpu.memory_space<vmem>>, vector<8x128xf32>
    tpu.vector_store %arg6[%449, %c0_114], %448 {strides = array<i32>} : memref<128x128xf32, #tpu.memory_space<vmem>>, vector<8x128xf32>,
    %c13_i32 = arith.constant 13 : i32
    %c8_i32_115 = arith.constant 8 : i32
    %451 = arith.muli %c13_i32, %c8_i32_115 : i32
    %452 = tpu.assume_multiple %451, 8 : i32
    %453 = arith.index_cast %452 : i32 to index
    %c0_116 = arith.constant 0 : index
    %454 = vector.load %arg7[%453, %c0_116] : memref<128x384xf32, #tpu.memory_space<vmem>>, vector<8x384xf32>
    %c0_117 = arith.constant 0 : index
    %c0_118 = arith.constant 0 : index
    %455 = vector.load %arg3[%c0_117, %c0_118] : memref<128x384xf32, #tpu.memory_space<vmem>>, vector<128x384xf32>
    %cst_119 = arith.constant dense<0.000000e+00> : vector<8x384xf32>
    %456 = tpu.matmul %448, %455, %cst_119 {dimension_numbers = #tpu.dot_dimension_numbers<[1], [0], [0], [1], [0, 0, 1, 1], [], []>} : vector<8x128xf32>, vector<128x384xf32>, vector<8x384xf32> -> vector<8x384xf32>
    %457 = vector.extract_strided_slice %454 {offsets = [0, 0], sizes = [8, 128], strides = [1, 1]} : vector<8x384xf32> to vector<8x128xf32>
    %458 = vector.extract_strided_slice %456 {offsets = [0, 0], sizes = [8, 128], strides = [1, 1]} : vector<8x384xf32> to vector<8x128xf32>
    %459 = arith.addf %457, %458 : vector<8x128xf32>
    %460 = arith.negf %459 : vector<8x128xf32>
    %461 = math.exp %460 : vector<8x128xf32>
    %cst_120 = arith.constant 1.000000e+00 : f32
    %462 = vector.broadcast %cst_120 : f32 to vector<8x128xf32>
    %463 = arith.addf %462, %461 : vector<8x128xf32>
    %464 = arith.divf %462, %463 : vector<8x128xf32>
    %465 = vector.extract_strided_slice %454 {offsets = [0, 128], sizes = [8, 128], strides = [1, 1]} : vector<8x384xf32> to vector<8x128xf32>
    %466 = vector.extract_strided_slice %456 {offsets = [0, 128], sizes = [8, 128], strides = [1, 1]} : vector<8x384xf32> to vector<8x128xf32>
    %467 = arith.addf %465, %466 : vector<8x128xf32>
    %468 = arith.negf %467 : vector<8x128xf32>
    %469 = math.exp %468 : vector<8x128xf32>
    %cst_121 = arith.constant 1.000000e+00 : f32
    %470 = vector.broadcast %cst_121 : f32 to vector<8x128xf32>
    %471 = arith.addf %470, %469 : vector<8x128xf32>
    %472 = arith.divf %470, %471 : vector<8x128xf32>
    %473 = vector.extract_strided_slice %454 {offsets = [0, 256], sizes = [8, 128], strides = [1, 1]} : vector<8x384xf32> to vector<8x128xf32>
    %474 = vector.extract_strided_slice %456 {offsets = [0, 256], sizes = [8, 128], strides = [1, 1]} : vector<8x384xf32> to vector<8x128xf32>
    %475 = vector.broadcast %7 : vector<1x128xf32> to vector<8x128xf32>
    %476 = arith.addf %474, %475 : vector<8x128xf32>
    %477 = arith.mulf %464, %476 : vector<8x128xf32>
    %478 = arith.addf %473, %477 : vector<8x128xf32>
    %479 = math.tanh %478 : vector<8x128xf32>
    %480 = arith.subf %448, %479 : vector<8x128xf32>
    %481 = arith.mulf %472, %480 : vector<8x128xf32>
    %482 = arith.addf %479, %481 : vector<8x128xf32>
    %483 = arith.index_cast %452 : i32 to index
    %c0_122 = arith.constant 0 : index
    %484 = vector.load %arg6[%483, %c0_122] : memref<128x128xf32, #tpu.memory_space<vmem>>, vector<8x128xf32>
    tpu.vector_store %arg6[%483, %c0_122], %482 {strides = array<i32>} : memref<128x128xf32, #tpu.memory_space<vmem>>, vector<8x128xf32>,
    %c14_i32 = arith.constant 14 : i32
    %c8_i32_123 = arith.constant 8 : i32
    %485 = arith.muli %c14_i32, %c8_i32_123 : i32
    %486 = tpu.assume_multiple %485, 8 : i32
    %487 = arith.index_cast %486 : i32 to index
    %c0_124 = arith.constant 0 : index
    %488 = vector.load %arg7[%487, %c0_124] : memref<128x384xf32, #tpu.memory_space<vmem>>, vector<8x384xf32>
    %c0_125 = arith.constant 0 : index
    %c0_126 = arith.constant 0 : index
    %489 = vector.load %arg3[%c0_125, %c0_126] : memref<128x384xf32, #tpu.memory_space<vmem>>, vector<128x384xf32>
    %cst_127 = arith.constant dense<0.000000e+00> : vector<8x384xf32>
    %490 = tpu.matmul %482, %489, %cst_127 {dimension_numbers = #tpu.dot_dimension_numbers<[1], [0], [0], [1], [0, 0, 1, 1], [], []>} : vector<8x128xf32>, vector<128x384xf32>, vector<8x384xf32> -> vector<8x384xf32>
    %491 = vector.extract_strided_slice %488 {offsets = [0, 0], sizes = [8, 128], strides = [1, 1]} : vector<8x384xf32> to vector<8x128xf32>
    %492 = vector.extract_strided_slice %490 {offsets = [0, 0], sizes = [8, 128], strides = [1, 1]} : vector<8x384xf32> to vector<8x128xf32>
    %493 = arith.addf %491, %492 : vector<8x128xf32>
    %494 = arith.negf %493 : vector<8x128xf32>
    %495 = math.exp %494 : vector<8x128xf32>
    %cst_128 = arith.constant 1.000000e+00 : f32
    %496 = vector.broadcast %cst_128 : f32 to vector<8x128xf32>
    %497 = arith.addf %496, %495 : vector<8x128xf32>
    %498 = arith.divf %496, %497 : vector<8x128xf32>
    %499 = vector.extract_strided_slice %488 {offsets = [0, 128], sizes = [8, 128], strides = [1, 1]} : vector<8x384xf32> to vector<8x128xf32>
    %500 = vector.extract_strided_slice %490 {offsets = [0, 128], sizes = [8, 128], strides = [1, 1]} : vector<8x384xf32> to vector<8x128xf32>
    %501 = arith.addf %499, %500 : vector<8x128xf32>
    %502 = arith.negf %501 : vector<8x128xf32>
    %503 = math.exp %502 : vector<8x128xf32>
    %cst_129 = arith.constant 1.000000e+00 : f32
    %504 = vector.broadcast %cst_129 : f32 to vector<8x128xf32>
    %505 = arith.addf %504, %503 : vector<8x128xf32>
    %506 = arith.divf %504, %505 : vector<8x128xf32>
    %507 = vector.extract_strided_slice %488 {offsets = [0, 256], sizes = [8, 128], strides = [1, 1]} : vector<8x384xf32> to vector<8x128xf32>
    %508 = vector.extract_strided_slice %490 {offsets = [0, 256], sizes = [8, 128], strides = [1, 1]} : vector<8x384xf32> to vector<8x128xf32>
    %509 = vector.broadcast %7 : vector<1x128xf32> to vector<8x128xf32>
    %510 = arith.addf %508, %509 : vector<8x128xf32>
    %511 = arith.mulf %498, %510 : vector<8x128xf32>
    %512 = arith.addf %507, %511 : vector<8x128xf32>
    %513 = math.tanh %512 : vector<8x128xf32>
    %514 = arith.subf %482, %513 : vector<8x128xf32>
    %515 = arith.mulf %506, %514 : vector<8x128xf32>
    %516 = arith.addf %513, %515 : vector<8x128xf32>
    %517 = arith.index_cast %486 : i32 to index
    %c0_130 = arith.constant 0 : index
    %518 = vector.load %arg6[%517, %c0_130] : memref<128x128xf32, #tpu.memory_space<vmem>>, vector<8x128xf32>
    tpu.vector_store %arg6[%517, %c0_130], %516 {strides = array<i32>} : memref<128x128xf32, #tpu.memory_space<vmem>>, vector<8x128xf32>,
    %c15_i32 = arith.constant 15 : i32
    %c8_i32_131 = arith.constant 8 : i32
    %519 = arith.muli %c15_i32, %c8_i32_131 : i32
    %520 = tpu.assume_multiple %519, 8 : i32
    %521 = arith.index_cast %520 : i32 to index
    %c0_132 = arith.constant 0 : index
    %522 = vector.load %arg7[%521, %c0_132] : memref<128x384xf32, #tpu.memory_space<vmem>>, vector<8x384xf32>
    %c0_133 = arith.constant 0 : index
    %c0_134 = arith.constant 0 : index
    %523 = vector.load %arg3[%c0_133, %c0_134] : memref<128x384xf32, #tpu.memory_space<vmem>>, vector<128x384xf32>
    %cst_135 = arith.constant dense<0.000000e+00> : vector<8x384xf32>
    %524 = tpu.matmul %516, %523, %cst_135 {dimension_numbers = #tpu.dot_dimension_numbers<[1], [0], [0], [1], [0, 0, 1, 1], [], []>} : vector<8x128xf32>, vector<128x384xf32>, vector<8x384xf32> -> vector<8x384xf32>
    %525 = vector.extract_strided_slice %522 {offsets = [0, 0], sizes = [8, 128], strides = [1, 1]} : vector<8x384xf32> to vector<8x128xf32>
    %526 = vector.extract_strided_slice %524 {offsets = [0, 0], sizes = [8, 128], strides = [1, 1]} : vector<8x384xf32> to vector<8x128xf32>
    %527 = arith.addf %525, %526 : vector<8x128xf32>
    %528 = arith.negf %527 : vector<8x128xf32>
    %529 = math.exp %528 : vector<8x128xf32>
    %cst_136 = arith.constant 1.000000e+00 : f32
    %530 = vector.broadcast %cst_136 : f32 to vector<8x128xf32>
    %531 = arith.addf %530, %529 : vector<8x128xf32>
    %532 = arith.divf %530, %531 : vector<8x128xf32>
    %533 = vector.extract_strided_slice %522 {offsets = [0, 128], sizes = [8, 128], strides = [1, 1]} : vector<8x384xf32> to vector<8x128xf32>
    %534 = vector.extract_strided_slice %524 {offsets = [0, 128], sizes = [8, 128], strides = [1, 1]} : vector<8x384xf32> to vector<8x128xf32>
    %535 = arith.addf %533, %534 : vector<8x128xf32>
    %536 = arith.negf %535 : vector<8x128xf32>
    %537 = math.exp %536 : vector<8x128xf32>
    %cst_137 = arith.constant 1.000000e+00 : f32
    %538 = vector.broadcast %cst_137 : f32 to vector<8x128xf32>
    %539 = arith.addf %538, %537 : vector<8x128xf32>
    %540 = arith.divf %538, %539 : vector<8x128xf32>
    %541 = vector.extract_strided_slice %522 {offsets = [0, 256], sizes = [8, 128], strides = [1, 1]} : vector<8x384xf32> to vector<8x128xf32>
    %542 = vector.extract_strided_slice %524 {offsets = [0, 256], sizes = [8, 128], strides = [1, 1]} : vector<8x384xf32> to vector<8x128xf32>
    %543 = vector.broadcast %7 : vector<1x128xf32> to vector<8x128xf32>
    %544 = arith.addf %542, %543 : vector<8x128xf32>
    %545 = arith.mulf %532, %544 : vector<8x128xf32>
    %546 = arith.addf %541, %545 : vector<8x128xf32>
    %547 = math.tanh %546 : vector<8x128xf32>
    %548 = arith.subf %516, %547 : vector<8x128xf32>
    %549 = arith.mulf %540, %548 : vector<8x128xf32>
    %550 = arith.addf %547, %549 : vector<8x128xf32>
    %551 = arith.index_cast %520 : i32 to index
    %c0_138 = arith.constant 0 : index
    %552 = vector.load %arg6[%551, %c0_138] : memref<128x128xf32, #tpu.memory_space<vmem>>, vector<8x128xf32>
    tpu.vector_store %arg6[%551, %c0_138], %550 {strides = array<i32>} : memref<128x128xf32, #tpu.memory_space<vmem>>, vector<8x128xf32>,
    %c16_i32 = arith.constant 16 : i32
    return
  }
}

</mosaic_0001>

<bundles_post_ra>
// kernel: tpu_custom_call.1
= control target key start
LH: loop header
LB: loop body
LE: loop exit
PB: predicated region body
PF: predicated region fallthrough
CT: control target
= control target key end

     0   :  { %11 = vsyncpa [#allocation4], 0  ;;  %s7132_s0 = inlined_call_operand.vmem [shape: f32[128,10], index: 0, kind: input, shape index: {}]   ;;  %s7133_s1 = inlined_call_operand.vmem [shape: f32[10,384], index: 1, kind: input, shape index: {}]   ;;  %s7134_s2 = inlined_call_operand.vmem [shape: f32[1,384], index: 2, kind: input, shape index: {}]   ;;  %s7135_s3 = inlined_call_operand.hbm [shape: f32[128,384], index: 3, kind: input, shape index: {}]   ;;  %s7136_s4 = inlined_call_operand.vmem [shape: f32[1,128], index: 4, kind: input, shape index: {}]   ;;  %s7137_s5 = inlined_call_operand.vmem [shape: f32[8,128], index: 5, kind: input, shape index: {}]   ;;  %s7138_s6 = inlined_call_operand.hbm [shape: f32[128,128], index: 6, kind: output, shape index: {}]  }
   0x1   :  { %12 = vsyncpa [#allocation5], 0  ;;  %s5181_s21 = smov [#allocation3]  }
   0x2   :  { %s24_s22 = sshll.u32 %s5181_s21, 4  ;;  %s25_s22 = int_to_ptr.vmem [resolvable:$true] %s24_s22 }
   0x3   :  { %s5145_s23 = scalar_lea.vmem %s25_s22, 6144  ;;  %p5150_p1 = scmp.lt.s32.totalorder %s25_s22, %s25_s22 }
   0x4   :  { %p5146_p0 = scmp.ne.s32.totalorder %s25_s22, %s5145_s23  ;;  %p5151_p2 = scmp.lt.s32.totalorder %s5145_s23, %s5145_s23 }
   0x6   :  { %p5152_p3 = por %p5151_p2, %p5150_p1 }
   0x8   :  { %p5153_p4 = pnand %p5152_p3, %p5146_p0 }
   0xa   :  { %5156 = shalt.err (!%p5153_p4)
}
   0xb   :  { %s5182_s24 = smov 384   ;;  %s5183_s25 = smov 24  }
   0xc   :  { %30 = dma.hbm_to_vmem [thread:$0]  %s7135_s3, 6144, %s25_s22, [#allocation4], %s5182_s24, %s5182_s24, %s5183_s25  }
   0xd   :  { %5177 = dma.done.wait [#allocation4], 6144  }
   0xe   :  { %5178 = vsyncadd [#allocation4], 4294961152  ;;  %v7139_v0 = vmov 0.0   ;;  %vm126_vm0 = vcmask 1041408   ;;  %v58_v1 = vld [vmem:[%s7133_s1 + $0x20] sm:$0x3] }
   0xf   :  { %272 = vmatprep.mubr.f32.mxu1 %v7139_v0  ;;  %200 = vmatprep.mubr.f32.mxu0 %v7139_v0  ;;  %v57_v2 = vld [vmem:[%s7133_s1 + $0x18] sm:$0x3]  ;;  %v55_v3 = vld [vmem:[%s7133_s1 + $0x8] sm:$0xff]  ;;  %v54_v4 = vld [vmem:[%s7133_s1] sm:$0xff]  ;;  %vm77_vm1 = vcmask 80896   ;;  %vm5185_vm2 = vmmov 0  }
  0x10   :  { %4963 = vmatprep.subr.msk.mxu1 %vm126_vm0, %v58_v1  ;;  %4017 = vmatprep.subr.msk.mxu0 %vm126_vm0, %v58_v1  ;;  %v5247_v5 = vld [vmem:[%s7132_s0 + $0x60] sm:$0xff]  ;;  %v59_v6 = vld [vmem:[%s7133_s1 + $0x28] sm:$0x3]  ;;  %v56_v7 = vld [vmem:[%s7133_s1 + $0x10] sm:$0xff] }
  0x11   :  { %4965 = vmatpush1.msk.msra.mxu1 %vm126_vm0, %v57_v2  ;;  %4018 = vmatpush1.msk.msra.mxu0 %vm126_vm0, %v57_v2  ;;  %v5264_v8 = vld [vmem:[%s7132_s0 + $0x68] sm:$0xff]  ;;  %v38_v9 = vld [vmem:[%s7132_s0] sm:$0xff]  ;;  %v5269_v10 = vld [vmem:[#allocation3 + $0x170] sm:$0xff] }
  0x12   :  { %4964 = vmatprep.subr.mxu1 %v55_v3  ;;  %166 = vmatprep.subr.mxu0 %v55_v3  ;;  %v5280_v11 = vld [vmem:[%s7132_s0 + $0x70] sm:$0xff]  ;;  %v39_v12 = vld [vmem:[%s7132_s0 + $0x8] sm:$0xff]  ;;  %v5287_v13 = vld [vmem:[#allocation3 + $0x178] sm:$0xff] }
  0x13   :  { %4966 = vmatpush1.msra.mxu1 %v54_v4  ;;  %167 = vmatpush1.msra.mxu0 %v54_v4  ;;  %v5297_v14 = vld [vmem:[%s7132_s0 + $0x78] sm:$0xff]  ;;  %v5300_v15 = vld [vmem:[#allocation3 + $0x160] sm:$0xff]  ;;  %v40_v16 = vld [vmem:[%s7132_s0 + $0x10] sm:$0xff] }
  0x14   :  { %4031 = vmatmul.mubr.msk.f32.vlgmr.msra.gmra.mxu1 %vm77_vm1, %v5247_v5  ;;  %4375 = vmatprep.subr.msk.mxu1 %vm126_vm0, %v59_v6  ;;  %v5308_v17 = vld [vmem:[#allocation3 + $0x148] sm:$0xff]  ;;  %v5313_v18 = vld [vmem:[#allocation3 + $0x130] sm:$0xff]  ;;  %v5317_v19 = vld [vmem:[#allocation3 + $0x118] sm:$0xff] }
  0x15   :  { %4376 = vmatpush3.msk.msra.mxu1 %vm126_vm0, %v59_v6  ;;  %278 = vmatprep.mubr.f32.mxu1 %v7139_v0  ;;  %v5319_v20 = vld [vmem:[#allocation3 + $0x168] sm:$0xff]  ;;  %v41_v21 = vld [vmem:[%s7132_s0 + $0x18] sm:$0xff]  ;;  %v5331_v23 = vld [vmem:[#allocation3 + $0x150] sm:$0xff] }
  0x16   :  { %4377 = vmatprep.subr.mxu1 %v56_v7  ;;  %4019 = vmatmul.mubr.msk.f32.vlgmr.msra.gmra.mxu0 %vm77_vm1, %v38_v9  ;;  %v5326_v22 = vld [vmem:[#allocation3 + $0x158] sm:$0xff]  ;;  %v5336_v24 = vld [vmem:[#allocation3 + $0x140] sm:$0xff]  ;;  %v5346_v27 = vld [vmem:[#allocation3 + $0x128] sm:$0xff] }
  0x17   :  { %4378 = vmatpush3.msra.mxu1 %v56_v7  ;;  %4403 = vmatprep.subr.mxu0 %v7139_v0  ;;  %v5339_v25 = vld [vmem:[#allocation3 + $0x138] sm:$0xff]  ;;  %v42_v26 = vld [vmem:[%s7132_s0 + $0x20] sm:$0xff]  ;;  %v43_v30 = vld [vmem:[%s7132_s0 + $0x28] sm:$0xff] }
  0x18   :  { %4032 = vmatmul.mubr.msk.f32.gmra.mxu1 %vm77_vm1, %v5264_v8  ;;  %546 = vmatprep.subr.mxu1 %v5269_v10  ;;  %v5351_v28 = vld [vmem:[#allocation3 + $0x120] sm:$0xff]  ;;  %v5360_v31 = vld [vmem:[#allocation3 + $0x110] sm:$0xff]  ;;  %v5363_v32 = vld [vmem:[#allocation3 + $0x108] sm:$0xff] }
  0x19   :  { %284 = vmatprep.mubr.f32.mxu1 %v7139_v0  ;;  %206 = vmatprep.mubr.f32.mxu0 %v7139_v0  ;;  %v5353_v29 = vld [vmem:[#allocation3 + $0x100] sm:$0xff]  ;;  %v44_v33 = vld [vmem:[%s7132_s0 + $0x30] sm:$0xff]  ;;  %v5370_v34 = vld [vmem:[#allocation3 + $0xf8] sm:$0xff] }
  0x1a   :  { %4020 = vmatmul.mubr.msk.f32.gmra.mxu0 %vm77_vm1, %v39_v12  ;;  %v5375_v35 = vld [vmem:[#allocation3 + $0xf0] sm:$0xff]  ;;  %v5382_v36 = vld [vmem:[%s7132_s0 + $0x38] sm:$0xff]  ;;  %v5384_v37 = vld [vmem:[#allocation3 + $0xe0] sm:$0xff] }
  0x1b   :  { %212 = vmatprep.mubr.f32.mxu0 %v7139_v0  ;;  %4404 = vmatpush3.msra.mxu0 %v5287_v13  ;;  %v5387_v38 = vld [vmem:[#allocation3 + $0xd8] sm:$0xff]  ;;  %v5392_v39 = vld [vmem:[%s7132_s0 + $0x40] sm:$0xff]  ;;  %v5396_v40 = vld [vmem:[#allocation3 + $0xc8] sm:$0xff] }
  0x1c   :  { %4033 = vmatmul.mubr.msk.f32.gmra.mxu1 %vm77_vm1, %v5280_v11  ;;  %4405 = vmatprep.subr.mxu0 %v7139_v0  ;;  %v5402_v41 = vld [vmem:[#allocation3 + $0xc0] sm:$0xff]  ;;  %v5404_v42 = vld [vmem:[#allocation3 + $0xe8] sm:$0xff]  ;;  %v5414_v44 = vld [vmem:[#allocation3 + $0xb0] sm:$0xff] }
  0x1d   :  { %290 = vmatprep.mubr.f32.mxu1 %v7139_v0  ;;  %4406 = vmatpush3.msra.mxu0 %v5300_v15  ;;  %v5412_v43 = vld [vmem:[%s7132_s0 + $0x48] sm:$0xff]  ;;  %v5422_v46 = vld [vmem:[%s7132_s0 + $0x50] sm:$0xff]  ;;  %v5426_v47 = vld [vmem:[#allocation3 + $0x98] sm:$0xff] }
  0x1e   :  { %4407 = vmatprep.subr.mxu0 %v7139_v0  ;;  %4021 = vmatmul.mubr.msk.f32.gmra.mxu0 %vm77_vm1, %v40_v16  ;;  %v5417_v45 = vld [vmem:[#allocation3 + $0xa8] sm:$0xff]  ;;  %v5432_v48 = vld [vmem:[#allocation3 + $0x90] sm:$0xff]  ;;  %v5440_v49 = vld [vmem:[%s7132_s0 + $0x58] sm:$0xff] }
  0x1f   :  { %4408 = vmatpush3.msra.mxu0 %v5308_v17  ;;  %218 = vmatprep.mubr.f32.mxu0 %v7139_v0  ;;  %v5442_v50 = vld [vmem:[#allocation3 + $0x80] sm:$0xff]  ;;  %v5445_v51 = vld [vmem:[#allocation3 + $0x78] sm:$0xff]  ;;  %v5449_v52 = vld [vmem:[#allocation3 + $0x68] sm:$0xff] }
  0x20   :  { %4034 = vmatmul.mubr.msk.f32.gmra.mxu1 %vm77_vm1, %v5297_v14  ;;  %4409 = vmatprep.subr.mxu0 %v7139_v0  ;;  %v5452_v53 = vld [vmem:[#allocation3 + $0xd0] sm:$0xff]  ;;  %v5457_v54 = vld [vmem:[#allocation3 + $0x60] sm:$0xff]  ;;  %v5465_v56 = vld [vmem:[#allocation3 + $0x48] sm:$0xff] }
  0x21   :  { %4379 = vmatprep.mubr.msk.f32.mxu1 %vm77_vm1, %v38_v9  ;;  %4410 = vmatpush3.msra.mxu0 %v5313_v18  ;;  %v5462_v55 = vld [vmem:[#allocation3 + $0x50] sm:$0xff]  ;;  %v5469_v57 = vld [vmem:[#allocation3 + $0x38] sm:$0xff]  ;;  %v5482_v60 = vld [vmem:[#allocation3 + $0x20] sm:$0xff]  ;;  %v62_v9 = vlaneseq }
  0x22   :  { %4022 = vmatmul.mubr.msk.f32.gmra.mxu0 %vm77_vm1, %v41_v21  ;;  %4411 = vmatprep.subr.mxu0 %v7139_v0  ;;  %v5475_v58 = vld [vmem:[#allocation3 + $0x30] sm:$0xff]  ;;  %v5477_v59 = vld [vmem:[#allocation3 + $0xb8] sm:$0xff]  ;;  %v5489_v62 = vld [vmem:[#allocation3 + $0x8] sm:$0xff] }
  0x23   :  { %4412 = vmatpush3.msra.mxu0 %v5317_v19  ;;  %224 = vmatprep.mubr.f32.mxu0 %v7139_v0  ;;  %v5485_v61 = vld [vmem:[#allocation3 + $0x18] sm:$0xff]  ;;  %7177 = vst [vmem:[#allocation9_spill] sm:$0xff] %v5489_v62  ;;  %v5495_v63 = vld [vmem:[#allocation3] sm:$0xff]  ;;  %v5515_v3 = vld [vmem:[#allocation3 + $0x88] sm:$0xff] }
  0x24   :  { %4380 = vmatmul.mubr.msk.f32.vlgmr.msra.gmra.mxu1 %vm77_vm1, %v39_v12  ;;  %4413 = vmatprep.subr.mxu0 %v7139_v0  ;;  %7178 = vst [vmem:[#allocation10_spill] sm:$0xff] %v5495_v63  ;;  %v5502_v1 = vld [vmem:[%s7137_s5] sm:$0xff]  ;;  %v5521_v4 = vld [vmem:[#allocation3 + $0x70] sm:$0xff]  ;;  %v5540_v7 = vld [vmem:[#allocation3 + $0x28] sm:$0xff] }
  0x25   :  { %547 = vmatpush1.msra.mxu1 %v5319_v20  ;;  %4382 = vmatprep.mubr.msk.f32.mxu1 %vm77_vm1, %v40_v16  ;;  %v5506_v2 = vld [vmem:[#allocation3 + $0xa0] sm:$0xff] }
  0x26   :  { %548 = vmatprep.subr.mxu1 %v5326_v22  ;;  %4023 = vmatmul.mubr.msk.f32.gmra.mxu0 %vm77_vm1, %v42_v26  ;;  %v5535_v6 = vld [vmem:[#allocation3 + $0x40] sm:$0xff] }
  0x27   :  { %549 = vmatpush1.msra.mxu1 %v5331_v23  ;;  %4414 = vmatpush3.msra.mxu0 %v5353_v29  ;;  %v60_v12 = vld [vmem:[%s7134_s2] sm:$0x7] }
  0x28   :  { %4383 = vmatmul.mubr.msk.f32.gmra.mxu1 %vm77_vm1, %v41_v21  ;;  %550 = vmatprep.subr.mxu1 %v5336_v24 }
  0x29   :  { %551 = vmatpush1.msra.mxu1 %v5339_v25  ;;  %4385 = vmatprep.mubr.msk.f32.mxu1 %vm77_vm1, %v42_v26 }
  0x2a   :  { %552 = vmatprep.subr.mxu1 %v5346_v27  ;;  %230 = vmatprep.mubr.f32.mxu0 %v7139_v0 }
  0x2b   :  { %553 = vmatpush1.msra.mxu1 %v5351_v28  ;;  %4415 = vmatprep.subr.mxu0 %v7139_v0 }
  0x2c   :  { %4386 = vmatmul.mubr.msk.f32.gmra.mxu1 %vm77_vm1, %v43_v30  ;;  %554 = vmatprep.subr.mxu1 %v5360_v31 }
  0x2d   :  { %555 = vmatpush1.msra.mxu1 %v5363_v32  ;;  %4388 = vmatprep.mubr.msk.f32.mxu1 %vm77_vm1, %v44_v33 }
  0x2e   :  { %556 = vmatprep.subr.mxu1 %v5370_v34  ;;  %4024 = vmatmul.mubr.msk.f32.gmra.mxu0 %vm77_vm1, %v43_v30 }
  0x2f   :  { %557 = vmatpush1.msra.mxu1 %v5375_v35  ;;  %4416 = vmatpush3.msra.mxu0 %v5404_v42 }
  0x30   :  { %4389 = vmatmul.mubr.msk.f32.gmra.mxu1 %vm77_vm1, %v5382_v36  ;;  %558 = vmatprep.subr.mxu1 %v5384_v37 }
  0x31   :  { %559 = vmatpush1.msra.mxu1 %v5387_v38  ;;  %4391 = vmatprep.mubr.msk.f32.mxu1 %vm77_vm1, %v5392_v39 }
  0x32   :  { %560 = vmatprep.subr.mxu1 %v5396_v40  ;;  %4417 = vmatprep.subr.mxu0 %v7139_v0 }
  0x33   :  { %561 = vmatpush1.msra.mxu1 %v5402_v41  ;;  %236 = vmatprep.mubr.f32.mxu0 %v7139_v0 }
  0x34   :  { %4392 = vmatmul.mubr.msk.f32.gmra.mxu1 %vm77_vm1, %v5412_v43  ;;  %562 = vmatprep.subr.mxu1 %v5414_v44 }
  0x35   :  { %563 = vmatpush1.msra.mxu1 %v5417_v45  ;;  %4394 = vmatprep.mubr.msk.f32.mxu1 %vm77_vm1, %v5422_v46 }
  0x36   :  { %564 = vmatprep.subr.mxu1 %v5426_v47  ;;  %4418 = vmatpush3.msra.mxu0 %v5452_v53 }
  0x37   :  { %565 = vmatpush1.msra.mxu1 %v5432_v48  ;;  %4025 = vmatmul.mubr.msk.f32.gmra.mxu0 %vm77_vm1, %v44_v33 }
  0x38   :  { %4395 = vmatmul.mubr.msk.f32.gmra.mxu1 %vm77_vm1, %v5440_v49  ;;  %566 = vmatprep.subr.mxu1 %v5442_v50 }
  0x39   :  { %567 = vmatpush1.msra.mxu1 %v5445_v51  ;;  %4397 = vmatprep.mubr.msk.f32.mxu1 %vm77_vm1, %v5247_v5  ;;  %v5527_v5 = vld [vmem:[#allocation3 + $0x58] sm:$0xff] }
  0x3a   :  { %568 = vmatprep.subr.mxu1 %v5449_v52  ;;  %4419 = vmatprep.subr.mxu0 %v7139_v0 }
  0x3b   :  { %569 = vmatpush1.msra.mxu1 %v5457_v54  ;;  %4420 = vmatpush3.msra.mxu0 %v5477_v59 }
  0x3c   :  { %4398 = vmatmul.mubr.msk.f32.gmra.mxu1 %vm77_vm1, %v5264_v8  ;;  %570 = vmatprep.subr.mxu1 %v5462_v55  ;;  %v5548_v8 = vld [vmem:[#allocation3 + $0x10] sm:$0xff] }
  0x3d   :  { %571 = vmatpush1.msra.mxu1 %v5465_v56  ;;  %4400 = vmatprep.mubr.msk.f32.mxu1 %vm77_vm1, %v5280_v11  ;;  %7179 = vst [vmem:[#allocation11_spill] sm:$0xff] %v5548_v8 }
  0x3e   :  { %572 = vmatprep.subr.mxu1 %v5469_v57  ;;  %242 = vmatprep.mubr.f32.mxu0 %v7139_v0 }
  0x3f   :  { %573 = vmatpush1.msra.mxu1 %v5475_v58  ;;  %4026 = vmatmul.mubr.msk.f32.gmra.mxu0 %vm77_vm1, %v5382_v36 }
  0x40   :  { %4401 = vmatmul.mubr.msk.f32.gmra.mxu1 %vm77_vm1, %v5297_v14  ;;  %574 = vmatprep.subr.mxu1 %v5482_v60 }
  0x41   :  { %575 = vmatpush1.msra.mxu1 %v5485_v61  ;;  %610 = vmatprep.mubr.f32.mxu1 %v7139_v0 }
  0x42   :  { %576 = vmatprep.subr.mxu1 %v5489_v62  ;;  %4421 = vmatprep.subr.mxu0 %v7139_v0 }
  0x43   :  { %577 = vmatpush1.msra.mxu1 %v5495_v63  ;;  %4422 = vmatpush3.msra.mxu0 %v5506_v2 }
  0x44   :  { %611 = vmatmul.mubr.f32.vlgmr.msra.gmra.mxu1 %v5502_v1  ;;  %248 = vmatprep.mubr.f32.mxu0 %v7139_v0 }
  0x45   :  { %4423 = vmatprep.subr.mxu0 %v7139_v0  ;;  %769 = vmatprep.subr.mxu1 %v5269_v10 }
  0x46   :  { %4027 = vmatmul.mubr.msk.f32.gmra.mxu0 %vm77_vm1, %v5392_v39  ;;  %770 = vmatpush1.msra.mxu1 %v5319_v20 }
  0x47   :  { %4424 = vmatpush3.msra.mxu0 %v5515_v3  ;;  %254 = vmatprep.mubr.f32.mxu0 %v7139_v0 }
  0x48   :  { %4425 = vmatprep.subr.mxu0 %v7139_v0  ;;  %771 = vmatprep.subr.mxu1 %v5326_v22 }
  0x49   :  { %4426 = vmatpush3.msra.mxu0 %v5521_v4  ;;  %772 = vmatpush1.msra.mxu1 %v5331_v23 }
  0x4a   :  { %4028 = vmatmul.mubr.msk.f32.gmra.mxu0 %vm77_vm1, %v5412_v43  ;;  %4427 = vmatprep.subr.mxu0 %v7139_v0 }
  0x4b   :  { %4428 = vmatpush3.msra.mxu0 %v5527_v5  ;;  %260 = vmatprep.mubr.f32.mxu0 %v7139_v0 }
  0x4c   :  { %4429 = vmatprep.subr.mxu0 %v7139_v0  ;;  %773 = vmatprep.subr.mxu1 %v5336_v24 }
  0x4d   :  { %4430 = vmatpush3.msra.mxu0 %v5535_v6  ;;  %774 = vmatpush1.msra.mxu1 %v5339_v25 }
  0x4e   :  { %4029 = vmatmul.mubr.msk.f32.gmra.mxu0 %vm77_vm1, %v5422_v46  ;;  %4431 = vmatprep.subr.mxu0 %v7139_v0 }
  0x4f   :  { %266 = vmatprep.mubr.f32.mxu0 %v7139_v0  ;;  %4432 = vmatpush3.msra.mxu0 %v5540_v7 }
  0x50   :  { %4433 = vmatprep.subr.mxu0 %v7139_v0  ;;  %775 = vmatprep.subr.mxu1 %v5346_v27 }
  0x51   :  { %4434 = vmatpush3.msra.mxu0 %v5548_v8  ;;  %776 = vmatpush1.msra.mxu1 %v5351_v28 }
  0x52   :  { %4030 = vmatmul.mubr.msk.f32.gmra.mxu0 %vm77_vm1, %v5440_v49  ;;  %4438 = vmatprep.subr.mxu0 %v7139_v0 }
  0x53   :  { %4435 = vmatprep.mubr.msk.f32.mxu0 %vm5185_vm2, %v7139_v0  ;;  %777 = vmatprep.subr.mxu1 %v5360_v31 }
  0x54   :  { %778 = vmatpush1.msra.mxu1 %v5363_v32  ;;  %833 = vmatprep.mubr.f32.mxu1 %v7139_v0 }
  0x55   :  { %779 = vmatprep.subr.mxu1 %v5370_v34 }
  0x56   :  { %4436 = vmatmul.mubr.f32.vlgmr.msra.gmra.mxu0 %v5502_v1  ;;  %780 = vmatpush1.msra.mxu1 %v5375_v35 }
  0x57   :  { %4439 = vmatpush3.msra.mxu0 %v5287_v13  ;;  %781 = vmatprep.subr.mxu1 %v5384_v37 }
  0x58   :  { %4440 = vmatprep.subr.mxu0 %v7139_v0  ;;  %782 = vmatpush1.msra.mxu1 %v5387_v38 }
  0x59   :  { %4441 = vmatpush3.msra.mxu0 %v5300_v15  ;;  %783 = vmatprep.subr.mxu1 %v5396_v40 }
  0x5a   :  { %4442 = vmatprep.subr.mxu0 %v7139_v0  ;;  %784 = vmatpush1.msra.mxu1 %v5402_v41 }
  0x5b   :  { %4443 = vmatpush3.msra.mxu0 %v5308_v17  ;;  %785 = vmatprep.subr.mxu1 %v5414_v44 }
  0x5c   :  { %4444 = vmatprep.subr.mxu0 %v7139_v0  ;;  %786 = vmatpush1.msra.mxu1 %v5417_v45 }
  0x5d   :  { %4445 = vmatpush3.msra.mxu0 %v5313_v18  ;;  %787 = vmatprep.subr.mxu1 %v5426_v47 }
  0x5e   :  { %4446 = vmatprep.subr.mxu0 %v7139_v0  ;;  %788 = vmatpush1.msra.mxu1 %v5432_v48 }
  0x5f   :  { %4447 = vmatpush3.msra.mxu0 %v5317_v19  ;;  %789 = vmatprep.subr.mxu1 %v5442_v50 }
  0x60   :  { %4448 = vmatprep.subr.mxu0 %v7139_v0  ;;  %790 = vmatpush1.msra.mxu1 %v5445_v51 }
  0x61   :  { %4449 = vmatpush3.msra.mxu0 %v5353_v29  ;;  %791 = vmatprep.subr.mxu1 %v5449_v52 }
  0x62   :  { %4450 = vmatprep.subr.mxu0 %v7139_v0  ;;  %792 = vmatpush1.msra.mxu1 %v5457_v54 }
  0x63   :  { %4451 = vmatpush3.msra.mxu0 %v5404_v42  ;;  %793 = vmatprep.subr.mxu1 %v5462_v55 }
  0x64   :  { %4452 = vmatprep.subr.mxu0 %v7139_v0  ;;  %794 = vmatpush1.msra.mxu1 %v5465_v56 }
  0x65   :  { %4453 = vmatpush3.msra.mxu0 %v5452_v53  ;;  %795 = vmatprep.subr.mxu1 %v5469_v57 }
  0x66   :  { %4454 = vmatprep.subr.mxu0 %v7139_v0  ;;  %796 = vmatpush1.msra.mxu1 %v5475_v58 }
  0x67   :  { %4455 = vmatpush3.msra.mxu0 %v5477_v59  ;;  %797 = vmatprep.subr.mxu1 %v5482_v60 }
  0x68   :  { %4456 = vmatprep.subr.mxu0 %v7139_v0  ;;  %798 = vmatpush1.msra.mxu1 %v5485_v61 }
  0x69   :  { %4457 = vmatpush3.msra.mxu0 %v5506_v2  ;;  %799 = vmatprep.subr.mxu1 %v5489_v62 }
  0x6a   :  { %4458 = vmatprep.subr.mxu0 %v7139_v0  ;;  %800 = vmatpush1.msra.mxu1 %v5495_v63 }
  0x6b   :  { %4459 = vmatpush3.msra.mxu0 %v5515_v3  ;;  %4470 = vmatprep.mubr.msk.f32.mxu0 %vm5185_vm2, %v7139_v0 }
  0x6c   :  { %4460 = vmatprep.subr.mxu0 %v7139_v0  ;;  %987 = vmatprep.subr.mxu1 %v5269_v10  ;;  %v63_v10 = vshrl.u32 %v62_v9, 7 }
  0x6d   :  { %4461 = vmatpush3.msra.mxu0 %v5521_v4 }
  0x6e   :  { %4462 = vmatprep.subr.mxu0 %v7139_v0  ;;  %v64_v11 = vsub.s32 0, %v63_v10  ;;  %v68_v14 = vsub.s32 1, %v63_v10 }
  0x6f   :  { %4463 = vmatpush3.msra.mxu0 %v5527_v5 }
  0x70   :  { %4464 = vmatprep.subr.mxu0 %v7139_v0  ;;  %v5625_v16 = vrot.slane %v60_v12, %v64_v11  ;;  %v5627_v21 = vrot.slane %v60_v12, %v68_v14 }
  0x71   :  { %4465 = vmatpush3.msra.mxu0 %v5535_v6 }
  0x72   :  { %4466 = vmatprep.subr.mxu0 %v7139_v0 }
  0x73   :  { %4467 = vmatpush3.msra.mxu0 %v5540_v7 }
  0x74   :  { %4468 = vmatprep.subr.mxu0 %v7139_v0 }
  0x75   :  { %4469 = vmatpush3.msra.mxu0 %v5548_v8 }
  0x76   :  { %4473 = vmatprep.subr.mxu0 %v7139_v0 }
  0xd4   :  { %v274_v26 = vpop.f32.mrf.mxu1 }
  0xd5   :  { %v5630_v30 = vadd.f32 %v274_v26, %v5625_v16 }
  0xd6   :  { %v276_v33 = vpop.f32.mrf.mxu1  ;;  %v5632_v36 = vpop.f32.mrf.mxu0 }
  0xd7   :  { %7180 = vst [vmem:[#allocation12_spill] sm:$0xff] %v5630_v30  ;;  %v5635_v39 = vadd.f32 %v276_v33, %v5627_v21  ;;  %v72_v33 = vsub.s32 2, %v63_v10 }
  0xd8   :  { %v280_v43 = vpop.f32.mrf.mxu1  ;;  %v5637_v46 = vpop.f32.mrf.mxu0 }
  0xd9   :  { %7181 = vst [vmem:[#allocation13_spill] sm:$0xff] %v5635_v39  ;;  %v5640_v49 = vadd.f32 %v280_v43, %v5625_v16 }
  0xda   :  { %v282_v9 = vpop.f32.mrf.mxu1  ;;  %v208_v11 = vpop.f32.mrf.mxu0 }
  0xdb   :  { %7182 = vst [vmem:[#allocation14_spill] sm:$0xff] %v5640_v49  ;;  %v5643_v14 = vadd.f32 %v282_v9, %v5627_v21  ;;  %v5646_v26 = vadd.f32 %v208_v11, %v5625_v16 }
  0xdc   :  { %v286_v0 = vpop.f32.mrf.mxu1  ;;  %v210_v30 = vpop.f32.mrf.mxu0 }
  0xdd   :  { %7183 = vst [vmem:[#allocation15_spill] sm:$0xff] %v5643_v14  ;;  %7184 = vst [vmem:[#allocation16_spill] sm:$0xff] %v5646_v26  ;;  %v5649_v8 = vadd.f32 %v286_v0, %v5625_v16  ;;  %v5652_v39 = vadd.f32 %v210_v30, %v5627_v21  ;;  %v5663_v14 = vrot.slane %v60_v12, %v72_v33 }
  0xde   :  { %v288_v63 = vpop.f32.mrf.mxu1  ;;  %v214_v49 = vpop.f32.mrf.mxu0 }
  0xdf   :  { %7185 = vst [vmem:[#allocation17_spill] sm:$0xff] %v5649_v8  ;;  %7186 = vst [vmem:[#allocation18_spill] sm:$0xff] %v5652_v39  ;;  %v5655_v43 = vadd.f32 %v288_v63, %v5627_v21  ;;  %v5658_v9 = vadd.f32 %v214_v49, %v5625_v16 }
  0xe0   :  { %v292_v62 = vpop.f32.mrf.mxu1  ;;  %v216_v0 = vpop.f32.mrf.mxu0 }
  0xe1   :  { %7187 = vst [vmem:[#allocation19_spill] sm:$0xff] %v5655_v43  ;;  %7188 = vst [vmem:[#allocation20_spill] sm:$0xff] %v5658_v9  ;;  %v5661_v11 = vadd.f32 %v292_v62, %v5625_v16  ;;  %v5666_v10 = vadd.f32 %v216_v0, %v5627_v21 }
  0xe2   :  { %v294_v8 = vpop.f32.mrf.mxu1  ;;  %v220_v63 = vpop.f32.mrf.mxu0 }
  0xe3   :  { %7189 = vst [vmem:[#allocation21_spill] sm:$0xff] %v5661_v11  ;;  %7190 = vst [vmem:[#allocation22_spill] sm:$0xff] %v5666_v10  ;;  %v5669_v30 = vadd.f32 %v294_v8, %v5627_v21  ;;  %v5672_v39 = vadd.f32 %v220_v63, %v5625_v16 }
  0xe4   :  { %v4381_v43 = vpop.f32.mrf.mxu1  ;;  %v222_v62 = vpop.f32.mrf.mxu0 }
  0xe5   :  { %7191 = vst [vmem:[#allocation23_spill] sm:$0xff] %v5669_v30  ;;  %7192 = vst [vmem:[#allocation24_spill] sm:$0xff] %v5672_v39  ;;  %v5675_v49 = vadd.f32 %v4381_v43, %v5663_v14  ;;  %v5680_v12 = vadd.f32 %v222_v62, %v5627_v21 }
  0xe6   :  { %v5677_v11 = vpop.f32.mrf.mxu1  ;;  %v226_v33 = vpop.f32.mrf.mxu0 }
  0xe7   :  { %7193 = vst [vmem:[#allocation25_spill] sm:$0xff] %v5675_v49  ;;  %7194 = vst [vmem:[#allocation26_spill] sm:$0xff] %v5680_v12  ;;  %v5683_v10 = vadd.f32 %v226_v33, %v5625_v16 }
  0xe8   :  { %v4384_v0 = vpop.f32.mrf.mxu1  ;;  %v228_v30 = vpop.f32.mrf.mxu0 }
  0xe9   :  { %7195 = vst [vmem:[#allocation27_spill] sm:$0xff] %v5683_v10  ;;  %v5686_v8 = vadd.f32 %v4384_v0, %v5663_v14  ;;  %v5689_v39 = vadd.f32 %v228_v30, %v5627_v21 }
  0xea   :  { %v373_v63 = vpop.f32.mrf.mxu1 }
  0xeb   :  { %7196 = vst [vmem:[#allocation28_spill] sm:$0xff] %v5686_v8  ;;  %7197 = vst [vmem:[#allocation29_spill] sm:$0xff] %v5689_v39  ;;  %v5692_v43 = vadd.f32 %v373_v63, %v5663_v14 }
  0xec   :  { %v4387_v9 = vpop.f32.mrf.mxu1 }
  0xed   :  { %7198 = vst [vmem:[#allocation30_spill] sm:$0xff] %v5692_v43  ;;  %v5695_v62 = vadd.f32 %v4387_v9, %v5663_v14 }
  0xee   :  { %v383_v12 = vpop.f32.mrf.mxu1  ;;  %v232_v8 = vpop.f32.mrf.mxu0 }
  0xef   :  { %7199 = vst [vmem:[#allocation31_spill] sm:$0xff] %v5695_v62  ;;  %v5698_v49 = vadd.f32 %v383_v12, %v5663_v14  ;;  %v5707_v63 = vadd.f32 %v232_v8, %v5625_v16 }
  0xf0   :  { %v4390_v33 = vpop.f32.mrf.mxu1  ;;  %v234_v43 = vpop.f32.mrf.mxu0 }
  0xf1   :  { %7200 = vst [vmem:[#allocation32_spill] sm:$0xff] %v5698_v49  ;;  %v5701_v0 = vadd.f32 %v4390_v33, %v5663_v14  ;;  %7203 = vst [vmem:[#allocation35_spill] sm:$0xff] %v5707_v63  ;;  %v5713_v12 = vadd.f32 %v234_v43, %v5627_v21 }
  0xf2   :  { %v393_v10 = vpop.f32.mrf.mxu1 }
  0xf3   :  { %7201 = vst [vmem:[#allocation33_spill] sm:$0xff] %v5701_v0  ;;  %v5704_v30 = vadd.f32 %v393_v10, %v5663_v14  ;;  %7205 = vst [vmem:[#allocation37_spill] sm:$0xff] %v5713_v12 }
  0xf4   :  { %v4393_v39 = vpop.f32.mrf.mxu1 }
  0xf5   :  { %7202 = vst [vmem:[#allocation34_spill] sm:$0xff] %v5704_v30  ;;  %v5710_v9 = vadd.f32 %v4393_v39, %v5663_v14 }
  0xf6   :  { %v403_v62 = vpop.f32.mrf.mxu1 }
  0xf7   :  { %7204 = vst [vmem:[#allocation36_spill] sm:$0xff] %v5710_v9  ;;  %v5716_v33 = vadd.f32 %v403_v62, %v5663_v14  ;;  %v238_v30 = vpop.f32.mrf.mxu0 }
  0xf8   :  { %v4396_v0 = vpop.f32.mrf.mxu1  ;;  %v5725_v39 = vadd.f32 %v238_v30, %v5625_v16  ;;  %v203_v30 = vadd.f32 %v5632_v36, %v5625_v16 }
  0xf9   :  { %7206 = vst [vmem:[#allocation38_spill] sm:$0xff] %v5716_v33  ;;  %v5719_v49 = vadd.f32 %v4396_v0, %v5663_v14  ;;  %v240_v9 = vpop.f32.mrf.mxu0 }
  0xfa   :  { %v413_v10 = vpop.f32.mrf.mxu1  ;;  %7209 = vst [vmem:[#allocation41_spill] sm:$0xff] %v5725_v39  ;;  %v5731_v62 = vadd.f32 %v240_v9, %v5627_v21 }
  0xfb   :  { %7207 = vst [vmem:[#allocation39_spill] sm:$0xff] %v5719_v49  ;;  %v5722_v8 = vadd.f32 %v413_v10, %v5663_v14 }
  0xfc   :  { %v4399_v63 = vpop.f32.mrf.mxu1  ;;  %7211 = vst [vmem:[#allocation43_spill] sm:$0xff] %v5731_v62 }
  0xfd   :  { %7208 = vst [vmem:[#allocation40_spill] sm:$0xff] %v5722_v8  ;;  %v5728_v43 = vadd.f32 %v4399_v63, %v5663_v14 }
  0xfe   :  { %v423_v12 = vpop.f32.mrf.mxu1 }
  0xff   :  { %7210 = vst [vmem:[#allocation42_spill] sm:$0xff] %v5728_v43  ;;  %v5734_v0 = vadd.f32 %v423_v12, %v5663_v14  ;;  %v244_v63 = vpop.f32.mrf.mxu0 }
 0x100   :  { %v4402_v49 = vpop.f32.mrf.mxu1  ;;  %v5745_v39 = vadd.f32 %v244_v63, %v5625_v16 }
 0x101   :  { %7212 = vst [vmem:[#allocation44_spill] sm:$0xff] %v5734_v0  ;;  %v5737_v10 = vadd.f32 %v4402_v49, %v5663_v14  ;;  %v246_v62 = vpop.f32.mrf.mxu0 }
 0x102   :  { %v433_v8 = vpop.f32.mrf.mxu1  ;;  %7215 = vst [vmem:[#allocation47_spill] sm:$0xff] %v5745_v39  ;;  %v5748_v12 = vadd.f32 %v246_v62, %v5627_v21  ;;  %v205_v62 = vadd.f32 %v5637_v46, %v5627_v21 }
 0x103   :  { %7213 = vst [vmem:[#allocation45_spill] sm:$0xff] %v5737_v10  ;;  %v5742_v33 = vadd.f32 %v433_v8, %v5663_v14 }
 0x104   :  { %v612_v43 = vpop.f32.mrf.mxu1  ;;  %7216 = vst [vmem:[#allocation48_spill] sm:$0xff] %v5748_v12 }
 0x105   :  { %7214 = vst [vmem:[#allocation46_spill] sm:$0xff] %v5742_v33  ;;  %v687_v9 = vadd.f32 %v612_v43, %v203_v30 }
 0x106   :  { %v250_v49 = vpop.f32.mrf.mxu0  ;;  %v614_v63 = vpop.f32.mrf.mxu1 }
 0x107   :  { %v4052_v0 = vmul.f32 -1.442695, %v687_v9  ;;  %v5751_v10 = vadd.f32 %v250_v49, %v5625_v16  ;;  %v694_v49 = vadd.f32 %v614_v63, %v205_v62 }
 0x108   :  { %v252_v36 = vpop.f32.mrf.mxu0 }
 0x109   :  { %7217 = vst [vmem:[#allocation49_spill] sm:$0xff] %v5751_v10  ;;  %4975 = vpow2.f32 %v4052_v0  ;;  %v5754_v8 = vadd.f32 %v252_v36, %v5627_v21 }
 0x10a   :  { %v256_v33 = vpop.f32.mrf.mxu0 }
 0x10b   :  { %7218 = vst [vmem:[#allocation50_spill] sm:$0xff] %v5754_v8  ;;  %v5757_v26 = vadd.f32 %v256_v33, %v5625_v16  ;;  %v4053_v33 = vmul.f32 -1.442695, %v694_v49 }
 0x10c   :  { %v258_v43 = vpop.f32.mrf.mxu0 }
 0x10d   :  { %7219 = vst [vmem:[#allocation51_spill] sm:$0xff] %v5757_v26  ;;  %v5762_v30 = vadd.f32 %v258_v43, %v5627_v21  ;;  %4977 = vpow2.f32 %v4053_v33 }
 0x10e   :  { %v262_v9 = vpop.f32.mrf.mxu0 }
 0x10f   :  { %7220 = vst [vmem:[#allocation52_spill] sm:$0xff] %v5762_v30  ;;  %v5765_v0 = vadd.f32 %v262_v9, %v5625_v16 }
 0x110   :  { %v264_v10 = vpop.f32.mrf.mxu0 }
 0x111   :  { %7221 = vst [vmem:[#allocation53_spill] sm:$0xff] %v5765_v0  ;;  %v5768_v36 = vadd.f32 %v264_v10, %v5627_v21  ;;  %v5779_v10 = vld [vmem:[%s7136_s4] ss:$0 sm:$0xff] }
 0x112   :  { %v268_v8 = vpop.f32.mrf.mxu0 }
 0x113   :  { %7222 = vst [vmem:[#allocation54_spill] sm:$0xff] %v5768_v36  ;;  %v5771_v26 = vadd.f32 %v268_v8, %v5625_v16  ;;  %v364_v8 = vadd.f32 %v5677_v11, %v5663_v14  ;;  %v7225_v14 = vmov 0.0   ;;  %v5882_v11 = vld [vmem:[#allocation3 + $0x150] sm:$0xff] }
 0x114   :  { %v270_v12 = vpop.f32.mrf.mxu0 }
 0x115   :  { %7223 = vst [vmem:[#allocation55_spill] sm:$0xff] %v5771_v26  ;;  %v5774_v46 = vadd.f32 %v270_v12, %v5627_v21 }
 0x116   :  { %v4976_v39 = vpop.eup %4975  ;;  %v683_v30 = vpop.f32.mrf.mxu0 }
 0x117   :  { %7224 = vst [vmem:[#allocation56_spill] sm:$0xff] %v5774_v46  ;;  %v691_v43 = vadd.f32 1.0, %v4976_v39  ;;  %v707_v62 = vadd.f32 %v5779_v10, %v683_v30  ;;  %v5886_v30 = vld [vmem:[#allocation3 + $0x140] sm:$0xff] }
 0x118   :  { %v4437_v63 = vpop.f32.mrf.mxu0 }
 0x119   :  { %4979 = vrcp.f32 %v691_v43 }
 0x11a   :  { %v4978_v9 = vpop.eup %4977 }
 0x11b   :  { %v698_v21 = vadd.f32 1.0, %v4978_v9  ;;  %v5898_v9 = vld [vmem:[#allocation3 + $0x120] sm:$0xff] }
 0x126   :  { %v4980_v16 = vpop.eup %4979 }
 0x127   :  { %v708_v49 = vmul.f32 %v4980_v16, %v707_v62  ;;  %v5894_v62 = vld [vmem:[#allocation3 + $0x128] sm:$0xff] }
 0x128   :  { %v5906_v16 = vld [vmem:[#allocation3 + $0x108] sm:$0xff] }
 0x129   :  { %v709_v12 = vadd.f32 %v708_v49, %v364_v8  ;;  %v5914_v8 = vld [vmem:[#allocation3 + $0xf0] sm:$0xff]  ;;  %v5922_v49 = vld [vmem:[#allocation3 + $0xd8] sm:$0xff] }
 0x12b   :  { %4981 = vtanh.f32 %v709_v12  ;;  %v5930_v12 = vld [vmem:[#allocation3 + $0xb0] sm:$0xff] }
 0x12c   :  { %4983 = vrcp.f32 %v698_v21  ;;  %v5926_v21 = vld [vmem:[#allocation3 + $0xc0] sm:$0xff] }
 0x138   :  { %v4982_v39 = vpop.eup %4981 }
 0x139   :  { %v711_v33 = vsub.f32 %v5502_v1, %v4982_v39  ;;  %v4984_v43 = vpop.eup %4983  ;;  %v5878_v1 = vld [vmem:[#allocation3 + $0x158] sm:$0xff] }
 0x13b   :  { %v712_v63 = vmul.f32 %v4984_v43, %v711_v33  ;;  %v5942_v33 = vld [vmem:[#allocation3 + $0x90] sm:$0xff]  ;;  %v5950_v43 = vld [vmem:[#allocation3 + $0x78] sm:$0xff] }
 0x13d   :  { %v5785_v46 = vadd.f32 %v4982_v39, %v712_v63  ;;  %v5938_v39 = vld [vmem:[#allocation3 + $0x98] sm:$0xff]  ;;  %v5958_v63 = vld [vmem:[#allocation3 + $0x60] sm:$0xff] }
 0x13f   :  { %714 = vst [vmem:[#allocation6] sm:$0xff] %v5785_v46  ;;  %834 = vmatmul.mubr.f32.vlgmr.msra.gmra.mxu1 %v5785_v46  ;;  %4471 = vmatmul.mubr.f32.vlgmr.msra.gmra.mxu0 %v5785_v46 }
 0x140   :  { %988 = vmatpush1.msra.mxu1 %v5319_v20  ;;  %4474 = vmatpush3.msra.mxu0 %v5287_v13  ;;  %v7226_v13 = vld [vmem:[#allocation9_spill] sm:$0xff]  ;;  %v7227_v20 = vld [vmem:[#allocation10_spill] sm:$0xff] }
 0x141   :  { %989 = vmatprep.subr.mxu1 %v5326_v22  ;;  %4475 = vmatprep.subr.mxu0 %v7225_v14  ;;  %v7228_v22 = vld [vmem:[#allocation11_spill] sm:$0xff] }
 0x142   :  { %990 = vmatpush1.msra.mxu1 %v5331_v23  ;;  %4476 = vmatpush3.msra.mxu0 %v5300_v15 }
 0x143   :  { %991 = vmatprep.subr.mxu1 %v5336_v24  ;;  %4477 = vmatprep.subr.mxu0 %v7225_v14 }
 0x144   :  { %992 = vmatpush1.msra.mxu1 %v5339_v25  ;;  %4478 = vmatpush3.msra.mxu0 %v5308_v17  ;;  %v7229_v25 = vld [vmem:[#allocation16_spill] sm:$0xff] }
 0x145   :  { %993 = vmatprep.subr.mxu1 %v5346_v27  ;;  %4479 = vmatprep.subr.mxu0 %v7225_v14 }
 0x146   :  { %994 = vmatpush1.msra.mxu1 %v5351_v28  ;;  %4480 = vmatpush3.msra.mxu0 %v5313_v18 }
 0x147   :  { %995 = vmatprep.subr.mxu1 %v5360_v31  ;;  %4481 = vmatprep.subr.mxu0 %v7225_v14 }
 0x148   :  { %996 = vmatpush1.msra.mxu1 %v5363_v32  ;;  %4482 = vmatpush3.msra.mxu0 %v5317_v19 }
 0x149   :  { %997 = vmatprep.subr.mxu1 %v5370_v34  ;;  %4483 = vmatprep.subr.mxu0 %v7225_v14  ;;  %v7230_v34 = vld [vmem:[#allocation18_spill] sm:$0xff] }
 0x14a   :  { %998 = vmatpush1.msra.mxu1 %v5375_v35  ;;  %4484 = vmatpush3.msra.mxu0 %v5353_v29 }
 0x14b   :  { %999 = vmatprep.subr.mxu1 %v5384_v37  ;;  %4485 = vmatprep.subr.mxu0 %v7225_v14 }
 0x14c   :  { %1000 = vmatpush1.msra.mxu1 %v5387_v38  ;;  %4486 = vmatpush3.msra.mxu0 %v5404_v42 }
 0x14d   :  { %1001 = vmatprep.subr.mxu1 %v5396_v40  ;;  %4487 = vmatprep.subr.mxu0 %v7225_v14 }
 0x14e   :  { %1002 = vmatpush1.msra.mxu1 %v5402_v41  ;;  %4488 = vmatpush3.msra.mxu0 %v5452_v53 }
 0x14f   :  { %1003 = vmatprep.subr.mxu1 %v5414_v44  ;;  %4489 = vmatprep.subr.mxu0 %v7225_v14 }
 0x150   :  { %1004 = vmatpush1.msra.mxu1 %v5417_v45  ;;  %4490 = vmatpush3.msra.mxu0 %v5477_v59 }
 0x151   :  { %1005 = vmatprep.subr.mxu1 %v5426_v47  ;;  %4491 = vmatprep.subr.mxu0 %v7225_v14 }
 0x152   :  { %1006 = vmatpush1.msra.mxu1 %v5432_v48  ;;  %4492 = vmatpush3.msra.mxu0 %v5506_v2  ;;  %v7231_v48 = vld [vmem:[#allocation25_spill] sm:$0xff] }
 0x153   :  { %1007 = vmatprep.subr.mxu1 %v5442_v50  ;;  %4493 = vmatprep.subr.mxu0 %v7225_v14 }
 0x154   :  { %1008 = vmatpush1.msra.mxu1 %v5445_v51  ;;  %4494 = vmatpush3.msra.mxu0 %v5515_v3 }
 0x155   :  { %1009 = vmatprep.subr.mxu1 %v5449_v52  ;;  %4495 = vmatprep.subr.mxu0 %v7225_v14 }
 0x156   :  { %1010 = vmatpush1.msra.mxu1 %v5457_v54  ;;  %4496 = vmatpush3.msra.mxu0 %v5521_v4 }
 0x157   :  { %1011 = vmatprep.subr.mxu1 %v5462_v55  ;;  %4497 = vmatprep.subr.mxu0 %v7225_v14 }
 0x158   :  { %1012 = vmatpush1.msra.mxu1 %v5465_v56  ;;  %4498 = vmatpush3.msra.mxu0 %v5527_v5 }
 0x159   :  { %1013 = vmatprep.subr.mxu1 %v5469_v57  ;;  %4499 = vmatprep.subr.mxu0 %v7225_v14 }
 0x15a   :  { %1014 = vmatpush1.msra.mxu1 %v5475_v58  ;;  %4500 = vmatpush3.msra.mxu0 %v5535_v6  ;;  %v5869_v58 = vld [vmem:[#allocation3 + $0x170] sm:$0xff] }
 0x15b   :  { %1015 = vmatprep.subr.mxu1 %v5482_v60  ;;  %4501 = vmatprep.subr.mxu0 %v7225_v14  ;;  %7232 = vst [vmem:[#allocation9_spill] sm:$0xff] %v5869_v58  ;;  %v5872_v60 = vld [vmem:[#allocation3 + $0x168] sm:$0xff] }
 0x15c   :  { %1016 = vmatpush1.msra.mxu1 %v5485_v61  ;;  %4502 = vmatpush3.msra.mxu0 %v5540_v7  ;;  %v5874_v61 = vld [vmem:[#allocation3 + $0x178] sm:$0xff] }
 0x15d   :  { %1017 = vmatprep.subr.mxu1 %v7226_v13  ;;  %4503 = vmatprep.subr.mxu0 %v7225_v14  ;;  %v5966_v13 = vld [vmem:[#allocation3 + $0x48] sm:$0xff] }
 0x15e   :  { %1018 = vmatpush1.msra.mxu1 %v7227_v20  ;;  %1051 = vmatprep.mubr.f32.mxu1 %v7225_v14  ;;  %v5974_v20 = vld [vmem:[#allocation3 + $0x30] sm:$0xff] }
 0x15f   :  { %4504 = vmatpush3.msra.mxu0 %v7228_v22  ;;  %4505 = vmatprep.mubr.msk.f32.mxu0 %vm5185_vm2, %v7225_v14  ;;  %v5982_v22 = vld [vmem:[#allocation3 + $0x18] sm:$0xff] }
 0x160   :  { %4508 = vmatprep.subr.mxu0 %v7225_v14  ;;  %1205 = vmatprep.subr.mxu1 %v5869_v58  ;;  %7233 = vst [vmem:[#allocation10_spill] sm:$0xff] %v5982_v22 }
 0x1ff   :  { %v835_v23 = vpop.f32.mrf.mxu1  ;;  %v906_v24 = vpop.f32.mrf.mxu0 }
 0x200   :  { %v910_v27 = vadd.f32 %v835_v23, %v7229_v25  ;;  %v924_v44 = vadd.f32 %v5779_v10, %v906_v24  ;;  %v5990_v23 = vld [vmem:[#allocation3] sm:$0xff]  ;;  %v7237_v25 = vld [vmem:[#allocation20_spill] sm:$0xff] }
 0x201   :  { %v4472_v28 = vpop.f32.mrf.mxu0  ;;  %v837_v32 = vpop.f32.mrf.mxu1  ;;  %7235 = vst [vmem:[#allocation16_spill] sm:$0xff] %v5990_v23 }
 0x202   :  { %v4055_v31 = vmul.f32 -1.442695, %v910_v27  ;;  %v917_v35 = vadd.f32 %v837_v32, %v7230_v34  ;;  %v7238_v32 = vld [vmem:[#allocation22_spill] sm:$0xff] }
 0x204   :  { %4985 = vpow2.f32 %v4055_v31  ;;  %v4056_v37 = vmul.f32 -1.442695, %v917_v35 }
 0x206   :  { %4987 = vpow2.f32 %v4056_v37 }
 0x211   :  { %v4986_v38 = vpop.eup %4985 }
 0x212   :  { %v914_v40 = vadd.f32 1.0, %v4986_v38 }
 0x213   :  { %v4988_v41 = vpop.eup %4987 }
 0x214   :  { %4989 = vrcp.f32 %v914_v40  ;;  %v921_v51 = vadd.f32 1.0, %v4988_v41 }
 0x221   :  { %v4990_v45 = vpop.eup %4989 }
 0x222   :  { %v925_v47 = vmul.f32 %v4990_v45, %v924_v44 }
 0x224   :  { %v926_v50 = vadd.f32 %v925_v47, %v7231_v48  ;;  %v7239_v47 = vld [vmem:[#allocation30_spill] sm:$0xff] }
 0x226   :  { %4991 = vtanh.f32 %v926_v50 }
 0x227   :  { %4993 = vrcp.f32 %v921_v51 }
 0x233   :  { %v4992_v52 = vpop.eup %4991 }
 0x234   :  { %v928_v54 = vsub.f32 %v5785_v46, %v4992_v52  ;;  %v4994_v55 = vpop.eup %4993  ;;  %v5890_v46 = vld [vmem:[#allocation3 + $0x138] sm:$0xff] }
 0x236   :  { %v929_v56 = vmul.f32 %v4994_v55, %v928_v54 }
 0x238   :  { %v5861_v57 = vadd.f32 %v4992_v52, %v929_v56 }
 0x23a   :  { %932 = vst [vmem:[#allocation6 + $0x8] sm:$0xff] %v5861_v57  ;;  %1052 = vmatmul.mubr.f32.vlgmr.msra.gmra.mxu1 %v5861_v57  ;;  %4506 = vmatmul.mubr.f32.vlgmr.msra.gmra.mxu0 %v5861_v57 }
 0x23b   :  { %1269 = vmatprep.mubr.f32.mxu1 %v7225_v14  ;;  %4540 = vmatprep.mubr.msk.f32.mxu0 %vm5185_vm2, %v7225_v14 }
 0x23c   :  { %1206 = vmatpush1.msra.mxu1 %v5872_v60  ;;  %4509 = vmatpush3.msra.mxu0 %v5874_v61 }
 0x23d   :  { %1207 = vmatprep.subr.mxu1 %v5878_v1  ;;  %4510 = vmatprep.subr.mxu0 %v7225_v14 }
 0x23e   :  { %1208 = vmatpush1.msra.mxu1 %v5882_v11  ;;  %4511 = vmatpush3.msra.mxu0 %v5300_v15  ;;  %v5902_v15 = vld [vmem:[#allocation3 + $0x110] sm:$0xff] }
 0x23f   :  { %1209 = vmatprep.subr.mxu1 %v5886_v30  ;;  %4512 = vmatprep.subr.mxu0 %v7225_v14 }
 0x240   :  { %1210 = vmatpush1.msra.mxu1 %v5890_v46  ;;  %4513 = vmatpush3.msra.mxu0 %v5308_v17  ;;  %v5910_v17 = vld [vmem:[#allocation3 + $0xf8] sm:$0xff] }
 0x241   :  { %1211 = vmatprep.subr.mxu1 %v5894_v62  ;;  %4514 = vmatprep.subr.mxu0 %v7225_v14 }
 0x242   :  { %1212 = vmatpush1.msra.mxu1 %v5898_v9  ;;  %4515 = vmatpush3.msra.mxu0 %v5313_v18  ;;  %v5918_v18 = vld [vmem:[#allocation3 + $0xe0] sm:$0xff] }
 0x243   :  { %1213 = vmatprep.subr.mxu1 %v5902_v15  ;;  %4516 = vmatprep.subr.mxu0 %v7225_v14 }
 0x244   :  { %1214 = vmatpush1.msra.mxu1 %v5906_v16  ;;  %4517 = vmatpush3.msra.mxu0 %v5317_v19  ;;  %v5924_v19 = vld [vmem:[#allocation3 + $0xc8] sm:$0xff] }
 0x245   :  { %1215 = vmatprep.subr.mxu1 %v5910_v17  ;;  %4518 = vmatprep.subr.mxu0 %v7225_v14 }
 0x246   :  { %1216 = vmatpush1.msra.mxu1 %v5914_v8  ;;  %4519 = vmatpush3.msra.mxu0 %v5353_v29  ;;  %v5934_v29 = vld [vmem:[#allocation3 + $0xa8] sm:$0xff] }
 0x247   :  { %1217 = vmatprep.subr.mxu1 %v5918_v18  ;;  %4520 = vmatprep.subr.mxu0 %v7225_v14 }
 0x248   :  { %1218 = vmatpush1.msra.mxu1 %v5922_v49  ;;  %4521 = vmatpush3.msra.mxu0 %v5404_v42  ;;  %v5946_v42 = vld [vmem:[#allocation3 + $0x80] sm:$0xff] }
 0x249   :  { %1219 = vmatprep.subr.mxu1 %v5924_v19  ;;  %4522 = vmatprep.subr.mxu0 %v7225_v14 }
 0x24a   :  { %1220 = vmatpush1.msra.mxu1 %v5926_v21  ;;  %4523 = vmatpush3.msra.mxu0 %v5452_v53  ;;  %v5954_v53 = vld [vmem:[#allocation3 + $0x68] sm:$0xff] }
 0x24b   :  { %1221 = vmatprep.subr.mxu1 %v5930_v12  ;;  %4524 = vmatprep.subr.mxu0 %v7225_v14 }
 0x24c   :  { %1222 = vmatpush1.msra.mxu1 %v5934_v29  ;;  %4525 = vmatpush3.msra.mxu0 %v5477_v59  ;;  %v5962_v59 = vld [vmem:[#allocation3 + $0x50] sm:$0xff] }
 0x24d   :  { %1223 = vmatprep.subr.mxu1 %v5938_v39  ;;  %4526 = vmatprep.subr.mxu0 %v7225_v14 }
 0x24e   :  { %1224 = vmatpush1.msra.mxu1 %v5942_v33  ;;  %4527 = vmatpush3.msra.mxu0 %v5506_v2  ;;  %v5970_v2 = vld [vmem:[#allocation3 + $0x38] sm:$0xff] }
 0x24f   :  { %1225 = vmatprep.subr.mxu1 %v5946_v42  ;;  %4528 = vmatprep.subr.mxu0 %v7225_v14 }
 0x250   :  { %1226 = vmatpush1.msra.mxu1 %v5950_v43  ;;  %4529 = vmatpush3.msra.mxu0 %v5515_v3  ;;  %v5978_v3 = vld [vmem:[#allocation3 + $0x20] sm:$0xff] }
 0x251   :  { %1227 = vmatprep.subr.mxu1 %v5954_v53  ;;  %4530 = vmatprep.subr.mxu0 %v7225_v14 }
 0x252   :  { %1228 = vmatpush1.msra.mxu1 %v5958_v63  ;;  %4531 = vmatpush3.msra.mxu0 %v5521_v4  ;;  %v5986_v4 = vld [vmem:[#allocation3 + $0x8] sm:$0xff] }
 0x253   :  { %1229 = vmatprep.subr.mxu1 %v5962_v59  ;;  %4532 = vmatprep.subr.mxu0 %v7225_v14  ;;  %7234 = vst [vmem:[#allocation11_spill] sm:$0xff] %v5986_v4 }
 0x254   :  { %1230 = vmatpush1.msra.mxu1 %v5966_v13  ;;  %4533 = vmatpush3.msra.mxu0 %v5527_v5  ;;  %v5992_v5 = vld [vmem:[#allocation3 + $0x10] sm:$0xff] }
 0x255   :  { %1231 = vmatprep.subr.mxu1 %v5970_v2  ;;  %4534 = vmatprep.subr.mxu0 %v7225_v14  ;;  %7236 = vst [vmem:[#allocation18_spill] sm:$0xff] %v5992_v5 }
 0x256   :  { %1232 = vmatpush1.msra.mxu1 %v5974_v20  ;;  %4535 = vmatpush3.msra.mxu0 %v5535_v6 }
 0x257   :  { %1233 = vmatprep.subr.mxu1 %v5978_v3  ;;  %4536 = vmatprep.subr.mxu0 %v7225_v14 }
 0x258   :  { %1234 = vmatpush1.msra.mxu1 %v5982_v22  ;;  %4537 = vmatpush3.msra.mxu0 %v5540_v7 }
 0x259   :  { %1235 = vmatprep.subr.mxu1 %v5986_v4  ;;  %4538 = vmatprep.subr.mxu0 %v7225_v14 }
 0x25a   :  { %1236 = vmatpush1.msra.mxu1 %v5990_v23  ;;  %4539 = vmatpush3.msra.mxu0 %v5992_v5 }
 0x25b   :  { %1423 = vmatprep.subr.mxu1 %v5869_v58  ;;  %4543 = vmatprep.subr.mxu0 %v7225_v14 }
 0x2fa   :  { %v1053_v6 = vpop.f32.mrf.mxu1  ;;  %v1124_v24 = vpop.f32.mrf.mxu0 }
 0x2fb   :  { %v1128_v27 = vadd.f32 %v1053_v6, %v7237_v25  ;;  %v1142_v41 = vadd.f32 %v5779_v10, %v1124_v24  ;;  %v6053_v6 = vld [vmem:[#allocation3 + $0x148] sm:$0xff]  ;;  %v6057_v24 = vld [vmem:[#allocation3 + $0x130] sm:$0xff]  ;;  %v6061_v25 = vld [vmem:[#allocation3 + $0x118] sm:$0xff] }
 0x2fc   :  { %v4507_v28 = vpop.f32.mrf.mxu0  ;;  %v1055_v7 = vpop.f32.mrf.mxu1 }
 0x2fd   :  { %v4057_v31 = vmul.f32 -1.442695, %v1128_v27  ;;  %v1135_v34 = vadd.f32 %v1055_v7, %v7238_v32  ;;  %v6065_v27 = vld [vmem:[#allocation3 + $0x100] sm:$0xff]  ;;  %v6069_v28 = vld [vmem:[#allocation3 + $0xe8] sm:$0xff]  ;;  %v6075_v7 = vld [vmem:[#allocation3 + $0xb8] sm:$0xff] }
 0x2fe   :  { %v6079_v32 = vld [vmem:[#allocation3 + $0xa0] sm:$0xff] }
 0x2ff   :  { %4995 = vpow2.f32 %v4057_v31  ;;  %v4058_v35 = vmul.f32 -1.442695, %v1135_v34  ;;  %v6071_v31 = vld [vmem:[#allocation3 + $0xd0] sm:$0xff]  ;;  %v6083_v34 = vld [vmem:[#allocation3 + $0x88] sm:$0xff] }
 0x301   :  { %4997 = vpow2.f32 %v4058_v35  ;;  %v6087_v35 = vld [vmem:[#allocation3 + $0x70] sm:$0xff] }
 0x30c   :  { %v4996_v37 = vpop.eup %4995 }
 0x30d   :  { %v1132_v38 = vadd.f32 1.0, %v4996_v37  ;;  %v6091_v37 = vld [vmem:[#allocation3 + $0x58] sm:$0xff] }
 0x30e   :  { %v4998_v40 = vpop.eup %4997 }
 0x30f   :  { %4999 = vrcp.f32 %v1132_v38  ;;  %v1139_v50 = vadd.f32 1.0, %v4998_v40  ;;  %v6095_v38 = vld [vmem:[#allocation3 + $0x40] sm:$0xff]  ;;  %v6099_v40 = vld [vmem:[#allocation3 + $0x28] sm:$0xff] }
 0x310   :  { %7240 = vst [vmem:[#allocation25_spill] sm:$0xff] %v6099_v40 }
 0x31c   :  { %v5000_v44 = vpop.eup %4999 }
 0x31d   :  { %v1143_v45 = vmul.f32 %v5000_v44, %v1142_v41 }
 0x31f   :  { %v1144_v48 = vadd.f32 %v1143_v45, %v7239_v47  ;;  %v7241_v45 = vld [vmem:[#allocation24_spill] sm:$0xff] }
 0x321   :  { %5001 = vtanh.f32 %v1144_v48 }
 0x322   :  { %5003 = vrcp.f32 %v1139_v50 }
 0x32e   :  { %v5002_v51 = vpop.eup %5001 }
 0x32f   :  { %v1146_v52 = vsub.f32 %v5861_v57, %v5002_v51  ;;  %v5004_v54 = vpop.eup %5003  ;;  %v6049_v57 = vld [vmem:[#allocation3 + $0x160] sm:$0xff] }
 0x331   :  { %v1147_v55 = vmul.f32 %v5004_v54, %v1146_v52  ;;  %v7242_v52 = vld [vmem:[#allocation26_spill] sm:$0xff] }
 0x333   :  { %v6007_v56 = vadd.f32 %v5002_v51, %v1147_v55 }
 0x335   :  { %1150 = vst [vmem:[#allocation6 + $0x10] sm:$0xff] %v6007_v56  ;;  %1270 = vmatmul.mubr.f32.vlgmr.msra.gmra.mxu1 %v6007_v56  ;;  %4541 = vmatmul.mubr.f32.vlgmr.msra.gmra.mxu0 %v6007_v56 }
 0x336   :  { %1424 = vmatpush1.msra.mxu1 %v5872_v60  ;;  %4544 = vmatpush3.msra.mxu0 %v5874_v61 }
 0x337   :  { %1425 = vmatprep.subr.mxu1 %v5878_v1  ;;  %4545 = vmatprep.subr.mxu0 %v7225_v14 }
 0x338   :  { %1426 = vmatpush1.msra.mxu1 %v5882_v11  ;;  %1487 = vmatprep.mubr.f32.mxu1 %v7225_v14 }
 0x339   :  { %1427 = vmatprep.subr.mxu1 %v5886_v30  ;;  %4575 = vmatprep.mubr.msk.f32.mxu0 %vm5185_vm2, %v7225_v14 }
 0x33a   :  { %1428 = vmatpush1.msra.mxu1 %v5890_v46  ;;  %4546 = vmatpush3.msra.mxu0 %v6049_v57 }
 0x33b   :  { %1429 = vmatprep.subr.mxu1 %v5894_v62  ;;  %4547 = vmatprep.subr.mxu0 %v7225_v14 }
 0x33c   :  { %1430 = vmatpush1.msra.mxu1 %v5898_v9  ;;  %4548 = vmatpush3.msra.mxu0 %v6053_v6 }
 0x33d   :  { %1431 = vmatprep.subr.mxu1 %v5902_v15  ;;  %4549 = vmatprep.subr.mxu0 %v7225_v14 }
 0x33e   :  { %1432 = vmatpush1.msra.mxu1 %v5906_v16  ;;  %4550 = vmatpush3.msra.mxu0 %v6057_v24 }
 0x33f   :  { %1433 = vmatprep.subr.mxu1 %v5910_v17  ;;  %4551 = vmatprep.subr.mxu0 %v7225_v14 }
 0x340   :  { %1434 = vmatpush1.msra.mxu1 %v5914_v8  ;;  %4552 = vmatpush3.msra.mxu0 %v6061_v25 }
 0x341   :  { %1435 = vmatprep.subr.mxu1 %v5918_v18  ;;  %4553 = vmatprep.subr.mxu0 %v7225_v14 }
 0x342   :  { %1436 = vmatpush1.msra.mxu1 %v5922_v49  ;;  %4554 = vmatpush3.msra.mxu0 %v6065_v27 }
 0x343   :  { %1437 = vmatprep.subr.mxu1 %v5924_v19  ;;  %4555 = vmatprep.subr.mxu0 %v7225_v14 }
 0x344   :  { %1438 = vmatpush1.msra.mxu1 %v5926_v21  ;;  %4556 = vmatpush3.msra.mxu0 %v6069_v28 }
 0x345   :  { %1439 = vmatprep.subr.mxu1 %v5930_v12  ;;  %4557 = vmatprep.subr.mxu0 %v7225_v14 }
 0x346   :  { %1440 = vmatpush1.msra.mxu1 %v5934_v29  ;;  %4558 = vmatpush3.msra.mxu0 %v6071_v31 }
 0x347   :  { %1441 = vmatprep.subr.mxu1 %v5938_v39  ;;  %4559 = vmatprep.subr.mxu0 %v7225_v14 }
 0x348   :  { %1442 = vmatpush1.msra.mxu1 %v5942_v33  ;;  %4560 = vmatpush3.msra.mxu0 %v6075_v7 }
 0x349   :  { %1443 = vmatprep.subr.mxu1 %v5946_v42  ;;  %4561 = vmatprep.subr.mxu0 %v7225_v14 }
 0x34a   :  { %1444 = vmatpush1.msra.mxu1 %v5950_v43  ;;  %4562 = vmatpush3.msra.mxu0 %v6079_v32 }
 0x34b   :  { %1445 = vmatprep.subr.mxu1 %v5954_v53  ;;  %4563 = vmatprep.subr.mxu0 %v7225_v14 }
 0x34c   :  { %1446 = vmatpush1.msra.mxu1 %v5958_v63  ;;  %4564 = vmatpush3.msra.mxu0 %v6083_v34 }
 0x34d   :  { %1447 = vmatprep.subr.mxu1 %v5962_v59  ;;  %4565 = vmatprep.subr.mxu0 %v7225_v14 }
 0x34e   :  { %1448 = vmatpush1.msra.mxu1 %v5966_v13  ;;  %4566 = vmatpush3.msra.mxu0 %v6087_v35 }
 0x34f   :  { %1449 = vmatprep.subr.mxu1 %v5970_v2  ;;  %4567 = vmatprep.subr.mxu0 %v7225_v14 }
 0x350   :  { %1450 = vmatpush1.msra.mxu1 %v5974_v20  ;;  %4568 = vmatpush3.msra.mxu0 %v6091_v37 }
 0x351   :  { %1451 = vmatprep.subr.mxu1 %v5978_v3  ;;  %4569 = vmatprep.subr.mxu0 %v7225_v14 }
 0x352   :  { %1452 = vmatpush1.msra.mxu1 %v5982_v22  ;;  %4570 = vmatpush3.msra.mxu0 %v6095_v38 }
 0x353   :  { %1453 = vmatprep.subr.mxu1 %v5986_v4  ;;  %4571 = vmatprep.subr.mxu0 %v7225_v14  ;;  %v7243_v4 = vld [vmem:[#allocation28_spill] sm:$0xff] }
 0x354   :  { %1454 = vmatpush1.msra.mxu1 %v5990_v23  ;;  %4572 = vmatpush3.msra.mxu0 %v6099_v40 }
 0x355   :  { %1641 = vmatprep.subr.mxu1 %v5869_v58  ;;  %4573 = vmatprep.subr.mxu0 %v7225_v14 }
 0x356   :  { %4574 = vmatpush3.msra.mxu0 %v5992_v5 }
 0x357   :  { %4578 = vmatprep.subr.mxu0 %v7225_v14 }
 0x3f5   :  { %v1271_v41 = vpop.f32.mrf.mxu1  ;;  %v1342_v44 = vpop.f32.mrf.mxu0 }
 0x3f6   :  { %v1346_v47 = vadd.f32 %v1271_v41, %v7241_v45  ;;  %v1360_v58 = vadd.f32 %v5779_v10, %v1342_v44 }
 0x3f7   :  { %v4542_v48 = vpop.f32.mrf.mxu0  ;;  %v1273_v51 = vpop.f32.mrf.mxu1 }
 0x3f8   :  { %v4059_v50 = vmul.f32 -1.442695, %v1346_v47  ;;  %v1353_v54 = vadd.f32 %v1273_v51, %v7242_v52 }
 0x3fa   :  { %5005 = vpow2.f32 %v4059_v50  ;;  %v4060_v55 = vmul.f32 -1.442695, %v1353_v54  ;;  %v7251_v54 = vld [vmem:[#allocation29_spill] sm:$0xff] }
 0x3fc   :  { %5007 = vpow2.f32 %v4060_v55 }
 0x407   :  { %v5006_v26 = vpop.eup %5005 }
 0x408   :  { %v1350_v36 = vadd.f32 1.0, %v5006_v26  ;;  %v7244_v26 = vld [vmem:[#allocation10_spill] sm:$0xff] }
 0x409   :  { %v5008_v0 = vpop.eup %5007 }
 0x40a   :  { %5009 = vrcp.f32 %v1350_v36  ;;  %v1357_v22 = vadd.f32 1.0, %v5008_v0  ;;  %v7245_v0 = vld [vmem:[#allocation25_spill] sm:$0xff]  ;;  %v7246_v36 = vld [vmem:[#allocation11_spill] sm:$0xff] }
 0x417   :  { %v5010_v5 = vpop.eup %5009 }
 0x418   :  { %v1361_v23 = vmul.f32 %v5010_v5, %v1360_v58  ;;  %v7247_v58 = vld [vmem:[#allocation16_spill] sm:$0xff] }
 0x41a   :  { %v1362_v40 = vadd.f32 %v1361_v23, %v7243_v4  ;;  %v7249_v4 = vld [vmem:[#allocation9_spill] sm:$0xff] }
 0x41c   :  { %5011 = vtanh.f32 %v1362_v40 }
 0x41d   :  { %5013 = vrcp.f32 %v1357_v22  ;;  %v7248_v22 = vld [vmem:[#allocation18_spill] sm:$0xff] }
 0x429   :  { %v5012_v41 = vpop.eup %5011 }
 0x42a   :  { %v1364_v45 = vsub.f32 %v6007_v56, %v5012_v41  ;;  %v5014_v47 = vpop.eup %5013  ;;  %v7250_v56 = vld [vmem:[#allocation27_spill] sm:$0xff] }
 0x42c   :  { %v1365_v48 = vmul.f32 %v5014_v47, %v1364_v45 }
 0x42e   :  { %v6112_v50 = vadd.f32 %v5012_v41, %v1365_v48 }
 0x430   :  { %1368 = vst [vmem:[#allocation6 + $0x18] sm:$0xff] %v6112_v50  ;;  %1488 = vmatmul.mubr.f32.vlgmr.msra.gmra.mxu1 %v6112_v50  ;;  %4576 = vmatmul.mubr.f32.vlgmr.msra.gmra.mxu0 %v6112_v50 }
 0x431   :  { %1642 = vmatpush1.msra.mxu1 %v5872_v60  ;;  %4579 = vmatpush3.msra.mxu0 %v5874_v61 }
 0x432   :  { %1643 = vmatprep.subr.mxu1 %v5878_v1  ;;  %4580 = vmatprep.subr.mxu0 %v7225_v14 }
 0x433   :  { %1644 = vmatpush1.msra.mxu1 %v5882_v11  ;;  %4581 = vmatpush3.msra.mxu0 %v6049_v57 }
 0x434   :  { %1645 = vmatprep.subr.mxu1 %v5886_v30  ;;  %4582 = vmatprep.subr.mxu0 %v7225_v14 }
 0x435   :  { %1646 = vmatpush1.msra.mxu1 %v5890_v46  ;;  %4583 = vmatpush3.msra.mxu0 %v6053_v6 }
 0x436   :  { %1647 = vmatprep.subr.mxu1 %v5894_v62  ;;  %4584 = vmatprep.subr.mxu0 %v7225_v14 }
 0x437   :  { %1648 = vmatpush1.msra.mxu1 %v5898_v9  ;;  %4585 = vmatpush3.msra.mxu0 %v6057_v24 }
 0x438   :  { %1649 = vmatprep.subr.mxu1 %v5902_v15  ;;  %4586 = vmatprep.subr.mxu0 %v7225_v14 }
 0x439   :  { %1650 = vmatpush1.msra.mxu1 %v5906_v16  ;;  %4587 = vmatpush3.msra.mxu0 %v6061_v25 }
 0x43a   :  { %1651 = vmatprep.subr.mxu1 %v5910_v17  ;;  %4588 = vmatprep.subr.mxu0 %v7225_v14 }
 0x43b   :  { %1652 = vmatpush1.msra.mxu1 %v5914_v8  ;;  %4589 = vmatpush3.msra.mxu0 %v6065_v27 }
 0x43c   :  { %1653 = vmatprep.subr.mxu1 %v5918_v18  ;;  %4590 = vmatprep.subr.mxu0 %v7225_v14 }
 0x43d   :  { %1654 = vmatpush1.msra.mxu1 %v5922_v49  ;;  %4591 = vmatpush3.msra.mxu0 %v6069_v28 }
 0x43e   :  { %1655 = vmatprep.subr.mxu1 %v5924_v19  ;;  %4592 = vmatprep.subr.mxu0 %v7225_v14 }
 0x43f   :  { %1656 = vmatpush1.msra.mxu1 %v5926_v21  ;;  %4593 = vmatpush3.msra.mxu0 %v6071_v31 }
 0x440   :  { %1657 = vmatprep.subr.mxu1 %v5930_v12  ;;  %4594 = vmatprep.subr.mxu0 %v7225_v14 }
 0x441   :  { %1658 = vmatpush1.msra.mxu1 %v5934_v29  ;;  %4595 = vmatpush3.msra.mxu0 %v6075_v7 }
 0x442   :  { %1659 = vmatprep.subr.mxu1 %v5938_v39  ;;  %4596 = vmatprep.subr.mxu0 %v7225_v14 }
 0x443   :  { %1660 = vmatpush1.msra.mxu1 %v5942_v33  ;;  %4597 = vmatpush3.msra.mxu0 %v6079_v32 }
 0x444   :  { %1661 = vmatprep.subr.mxu1 %v5946_v42  ;;  %4598 = vmatprep.subr.mxu0 %v7225_v14 }
 0x445   :  { %1662 = vmatpush1.msra.mxu1 %v5950_v43  ;;  %4599 = vmatpush3.msra.mxu0 %v6083_v34 }
 0x446   :  { %1663 = vmatprep.subr.mxu1 %v5954_v53  ;;  %4600 = vmatprep.subr.mxu0 %v7225_v14 }
 0x447   :  { %1664 = vmatpush1.msra.mxu1 %v5958_v63  ;;  %4601 = vmatpush3.msra.mxu0 %v6087_v35 }
 0x448   :  { %1665 = vmatprep.subr.mxu1 %v5962_v59  ;;  %4602 = vmatprep.subr.mxu0 %v7225_v14 }
 0x449   :  { %1666 = vmatpush1.msra.mxu1 %v5966_v13  ;;  %4603 = vmatpush3.msra.mxu0 %v6091_v37 }
 0x44a   :  { %1667 = vmatprep.subr.mxu1 %v5970_v2  ;;  %4604 = vmatprep.subr.mxu0 %v7225_v14 }
 0x44b   :  { %1668 = vmatpush1.msra.mxu1 %v5974_v20  ;;  %4605 = vmatpush3.msra.mxu0 %v6095_v38 }
 0x44c   :  { %1669 = vmatprep.subr.mxu1 %v5978_v3  ;;  %4606 = vmatprep.subr.mxu0 %v7225_v14 }
 0x44d   :  { %1670 = vmatpush1.msra.mxu1 %v7244_v26  ;;  %4607 = vmatpush3.msra.mxu0 %v7245_v0 }
 0x44e   :  { %1671 = vmatprep.subr.mxu1 %v7246_v36  ;;  %4608 = vmatprep.subr.mxu0 %v7225_v14  ;;  %v7252_v36 = vld [vmem:[#allocation32_spill] sm:$0xff] }
 0x44f   :  { %1672 = vmatpush1.msra.mxu1 %v7247_v58  ;;  %1705 = vmatprep.mubr.f32.mxu1 %v7225_v14 }
 0x450   :  { %4609 = vmatpush3.msra.mxu0 %v7248_v22  ;;  %4610 = vmatprep.mubr.msk.f32.mxu0 %vm5185_vm2, %v7225_v14 }
 0x451   :  { %1859 = vmatprep.subr.mxu1 %v7249_v4  ;;  %4613 = vmatprep.subr.mxu0 %v7225_v14 }
 0x4f0   :  { %v1489_v23 = vpop.f32.mrf.mxu1  ;;  %v1560_v5 = vpop.f32.mrf.mxu0 }
 0x4f1   :  { %v1564_v40 = vadd.f32 %v1489_v23, %v7250_v56  ;;  %v1578_v4 = vadd.f32 %v5779_v10, %v1560_v5  ;;  %v7253_v10 = vld [vmem:[#allocation10_spill] sm:$0xff]  ;;  %v6299_v5 = vld [vmem:[#allocation3 + $0x138] sm:$0xff] }
 0x4f2   :  { %v4577_v44 = vpop.f32.mrf.mxu0  ;;  %v1491_v52 = vpop.f32.mrf.mxu1 }
 0x4f3   :  { %v4061_v51 = vmul.f32 -1.442695, %v1564_v40  ;;  %v1571_v55 = vadd.f32 %v1491_v52, %v7251_v54  ;;  %v6303_v52 = vld [vmem:[#allocation3 + $0x128] sm:$0xff]  ;;  %v6307_v54 = vld [vmem:[#allocation3 + $0x120] sm:$0xff] }
 0x4f5   :  { %5015 = vpow2.f32 %v4061_v51  ;;  %v4062_v41 = vmul.f32 -1.442695, %v1571_v55  ;;  %v6315_v55 = vld [vmem:[#allocation3 + $0x108] sm:$0xff] }
 0x4f7   :  { %5017 = vpow2.f32 %v4062_v41  ;;  %v6323_v41 = vld [vmem:[#allocation3 + $0xf0] sm:$0xff] }
 0x502   :  { %v5016_v45 = vpop.eup %5015 }
 0x503   :  { %v1568_v47 = vadd.f32 1.0, %v5016_v45  ;;  %v6331_v45 = vld [vmem:[#allocation3 + $0xd8] sm:$0xff] }
 0x504   :  { %v5018_v48 = vpop.eup %5017 }
 0x505   :  { %5019 = vrcp.f32 %v1568_v47  ;;  %v1575_v26 = vadd.f32 1.0, %v5018_v48  ;;  %v6335_v47 = vld [vmem:[#allocation3 + $0xc0] sm:$0xff]  ;;  %v6339_v48 = vld [vmem:[#allocation3 + $0xb0] sm:$0xff] }
 0x512   :  { %v5020_v22 = vpop.eup %5019 }
 0x513   :  { %v1579_v58 = vmul.f32 %v5020_v22, %v1578_v4  ;;  %v6295_v22 = vld [vmem:[#allocation3 + $0x140] sm:$0xff]  ;;  %v6347_v4 = vld [vmem:[#allocation3 + $0x98] sm:$0xff] }
 0x515   :  { %v1580_v0 = vadd.f32 %v1579_v58, %v7252_v36  ;;  %v6287_v36 = vld [vmem:[#allocation3 + $0x158] sm:$0xff]  ;;  %v6291_v58 = vld [vmem:[#allocation3 + $0x150] sm:$0xff] }
 0x517   :  { %5021 = vtanh.f32 %v1580_v0  ;;  %v6283_v0 = vld [vmem:[#allocation3 + $0x178] sm:$0xff] }
 0x518   :  { %5023 = vrcp.f32 %v1575_v26  ;;  %v6281_v26 = vld [vmem:[#allocation3 + $0x168] sm:$0xff] }
 0x524   :  { %v5022_v23 = vpop.eup %5021 }
 0x525   :  { %v1582_v56 = vsub.f32 %v6112_v50, %v5022_v23  ;;  %v5024_v40 = vpop.eup %5023  ;;  %v6278_v50 = vld [vmem:[#allocation3 + $0x170] sm:$0xff] }
 0x526   :  { %7261 = vst [vmem:[#allocation20_spill] sm:$0xff] %v6278_v50 }
 0x527   :  { %v1583_v44 = vmul.f32 %v5024_v40, %v1582_v56  ;;  %v6359_v56 = vld [vmem:[#allocation3 + $0x78] sm:$0xff]  ;;  %v6367_v40 = vld [vmem:[#allocation3 + $0x60] sm:$0xff] }
 0x529   :  { %v6189_v51 = vadd.f32 %v5022_v23, %v1583_v44  ;;  %v6351_v23 = vld [vmem:[#allocation3 + $0x90] sm:$0xff]  ;;  %v6375_v44 = vld [vmem:[#allocation3 + $0x48] sm:$0xff] }
 0x52b   :  { %1586 = vst [vmem:[#allocation6 + $0x20] sm:$0xff] %v6189_v51  ;;  %1706 = vmatmul.mubr.f32.vlgmr.msra.gmra.mxu1 %v6189_v51  ;;  %4611 = vmatmul.mubr.f32.vlgmr.msra.gmra.mxu0 %v6189_v51 }
 0x52c   :  { %1860 = vmatpush1.msra.mxu1 %v5872_v60  ;;  %4614 = vmatpush3.msra.mxu0 %v5874_v61  ;;  %v7254_v60 = vld [vmem:[#allocation25_spill] sm:$0xff]  ;;  %v7255_v61 = vld [vmem:[#allocation11_spill] sm:$0xff] }
 0x52d   :  { %1861 = vmatprep.subr.mxu1 %v5878_v1  ;;  %4615 = vmatprep.subr.mxu0 %v7225_v14  ;;  %v7256_v1 = vld [vmem:[#allocation16_spill] sm:$0xff] }
 0x52e   :  { %1862 = vmatpush1.msra.mxu1 %v5882_v11  ;;  %4616 = vmatpush3.msra.mxu0 %v6049_v57  ;;  %v7257_v11 = vld [vmem:[#allocation18_spill] sm:$0xff] }
 0x52f   :  { %1863 = vmatprep.subr.mxu1 %v5886_v30  ;;  %4617 = vmatprep.subr.mxu0 %v7225_v14 }
 0x530   :  { %1864 = vmatpush1.msra.mxu1 %v5890_v46  ;;  %4618 = vmatpush3.msra.mxu0 %v6053_v6 }
 0x531   :  { %1865 = vmatprep.subr.mxu1 %v5894_v62  ;;  %4619 = vmatprep.subr.mxu0 %v7225_v14  ;;  %v7258_v62 = vld [vmem:[#allocation35_spill] sm:$0xff] }
 0x532   :  { %1866 = vmatpush1.msra.mxu1 %v5898_v9  ;;  %4620 = vmatpush3.msra.mxu0 %v6057_v24 }
 0x533   :  { %1867 = vmatprep.subr.mxu1 %v5902_v15  ;;  %4621 = vmatprep.subr.mxu0 %v7225_v14 }
 0x534   :  { %1868 = vmatpush1.msra.mxu1 %v5906_v16  ;;  %4622 = vmatpush3.msra.mxu0 %v6061_v25 }
 0x535   :  { %1869 = vmatprep.subr.mxu1 %v5910_v17  ;;  %4623 = vmatprep.subr.mxu0 %v7225_v14 }
 0x536   :  { %1870 = vmatpush1.msra.mxu1 %v5914_v8  ;;  %4624 = vmatpush3.msra.mxu0 %v6065_v27  ;;  %v7259_v8 = vld [vmem:[#allocation37_spill] sm:$0xff] }
 0x537   :  { %1871 = vmatprep.subr.mxu1 %v5918_v18  ;;  %4625 = vmatprep.subr.mxu0 %v7225_v14 }
 0x538   :  { %1872 = vmatpush1.msra.mxu1 %v5922_v49  ;;  %4626 = vmatpush3.msra.mxu0 %v6069_v28 }
 0x539   :  { %1873 = vmatprep.subr.mxu1 %v5924_v19  ;;  %4627 = vmatprep.subr.mxu0 %v7225_v14 }
 0x53a   :  { %1874 = vmatpush1.msra.mxu1 %v5926_v21  ;;  %4628 = vmatpush3.msra.mxu0 %v6071_v31 }
 0x53b   :  { %1875 = vmatprep.subr.mxu1 %v5930_v12  ;;  %4629 = vmatprep.subr.mxu0 %v7225_v14 }
 0x53c   :  { %1876 = vmatpush1.msra.mxu1 %v5934_v29  ;;  %4630 = vmatpush3.msra.mxu0 %v6075_v7  ;;  %v6265_v29 = vld [vmem:[%s7136_s4] ss:$0 sm:$0xff] }
 0x53d   :  { %1877 = vmatprep.subr.mxu1 %v5938_v39  ;;  %4631 = vmatprep.subr.mxu0 %v7225_v14 }
 0x53e   :  { %1878 = vmatpush1.msra.mxu1 %v5942_v33  ;;  %4632 = vmatpush3.msra.mxu0 %v6079_v32 }
 0x53f   :  { %1879 = vmatprep.subr.mxu1 %v5946_v42  ;;  %4633 = vmatprep.subr.mxu0 %v7225_v14 }
 0x540   :  { %1880 = vmatpush1.msra.mxu1 %v5950_v43  ;;  %4634 = vmatpush3.msra.mxu0 %v6083_v34  ;;  %v7260_v43 = vld [vmem:[#allocation31_spill] sm:$0xff] }
 0x541   :  { %1881 = vmatprep.subr.mxu1 %v5954_v53  ;;  %4635 = vmatprep.subr.mxu0 %v7225_v14 }
 0x542   :  { %1882 = vmatpush1.msra.mxu1 %v5958_v63  ;;  %4636 = vmatpush3.msra.mxu0 %v6087_v35 }
 0x543   :  { %1883 = vmatprep.subr.mxu1 %v5962_v59  ;;  %4637 = vmatprep.subr.mxu0 %v7225_v14 }
 0x544   :  { %1884 = vmatpush1.msra.mxu1 %v5966_v13  ;;  %4638 = vmatpush3.msra.mxu0 %v6091_v37 }
 0x545   :  { %1885 = vmatprep.subr.mxu1 %v5970_v2  ;;  %4639 = vmatprep.subr.mxu0 %v7225_v14 }
 0x546   :  { %1886 = vmatpush1.msra.mxu1 %v5974_v20  ;;  %4640 = vmatpush3.msra.mxu0 %v6095_v38 }
 0x547   :  { %1887 = vmatprep.subr.mxu1 %v5978_v3  ;;  %4641 = vmatprep.subr.mxu0 %v7225_v14 }
 0x548   :  { %1888 = vmatpush1.msra.mxu1 %v7253_v10  ;;  %4642 = vmatpush3.msra.mxu0 %v7254_v60  ;;  %v6391_v10 = vld [vmem:[#allocation3 + $0x18] sm:$0xff] }
 0x549   :  { %1889 = vmatprep.subr.mxu1 %v7255_v61  ;;  %4643 = vmatprep.subr.mxu0 %v7225_v14  ;;  %7262 = vst [vmem:[#allocation22_spill] sm:$0xff] %v6391_v10  ;;  %v6399_v61 = vld [vmem:[#allocation3] sm:$0xff] }
 0x54a   :  { %1890 = vmatpush1.msra.mxu1 %v7256_v1  ;;  %1923 = vmatprep.mubr.f32.mxu1 %v7225_v14  ;;  %7264 = vst [vmem:[#allocation24_spill] sm:$0xff] %v6399_v61 }
 0x54b   :  { %4644 = vmatpush3.msra.mxu0 %v7257_v11  ;;  %4645 = vmatprep.mubr.msk.f32.mxu0 %vm5185_vm2, %v7225_v14  ;;  %v7266_v11 = vld [vmem:[#allocation41_spill] sm:$0xff] }
 0x54c   :  { %4648 = vmatprep.subr.mxu0 %v7225_v14  ;;  %2077 = vmatprep.subr.mxu1 %v6278_v50 }
 0x5eb   :  { %v1707_v30 = vpop.f32.mrf.mxu1  ;;  %v1778_v46 = vpop.f32.mrf.mxu0 }
 0x5ec   :  { %v1782_v9 = vadd.f32 %v1707_v30, %v7258_v62  ;;  %v1796_v39 = vadd.f32 %v6265_v29, %v1778_v46 }
 0x5ed   :  { %v4612_v15 = vpop.f32.mrf.mxu0  ;;  %v1709_v17 = vpop.f32.mrf.mxu1 }
 0x5ee   :  { %v4063_v16 = vmul.f32 -1.442695, %v1782_v9  ;;  %v1789_v18 = vadd.f32 %v1709_v17, %v7259_v8  ;;  %v7267_v9 = vld [vmem:[#allocation43_spill] sm:$0xff] }
 0x5f0   :  { %5025 = vpow2.f32 %v4063_v16  ;;  %v4064_v49 = vmul.f32 -1.442695, %v1789_v18 }
 0x5f2   :  { %5027 = vpow2.f32 %v4064_v49 }
 0x5fd   :  { %v5026_v19 = vpop.eup %5025 }
 0x5fe   :  { %v1786_v21 = vadd.f32 1.0, %v5026_v19 }
 0x5ff   :  { %v5028_v12 = vpop.eup %5027 }
 0x600   :  { %5029 = vrcp.f32 %v1786_v21  ;;  %v1793_v63 = vadd.f32 1.0, %v5028_v12  ;;  %v7268_v12 = vld [vmem:[#allocation34_spill] sm:$0xff] }
 0x60d   :  { %v5030_v33 = vpop.eup %5029 }
 0x60e   :  { %v1797_v42 = vmul.f32 %v5030_v33, %v1796_v39 }
 0x610   :  { %v1798_v53 = vadd.f32 %v1797_v42, %v7260_v43 }
 0x612   :  { %5031 = vtanh.f32 %v1798_v53 }
 0x613   :  { %5033 = vrcp.f32 %v1793_v63 }
 0x61f   :  { %v5032_v59 = vpop.eup %5031 }
 0x620   :  { %v1800_v13 = vsub.f32 %v6189_v51, %v5032_v59  ;;  %v5034_v2 = vpop.eup %5033  ;;  %v6383_v51 = vld [vmem:[#allocation3 + $0x30] sm:$0xff] }
 0x622   :  { %v1801_v20 = vmul.f32 %v5034_v2, %v1800_v13  ;;  %v6458_v13 = vld [vmem:[#allocation3 + $0x160] sm:$0xff]  ;;  %v6462_v2 = vld [vmem:[#allocation3 + $0x148] sm:$0xff] }
 0x624   :  { %v6270_v3 = vadd.f32 %v5032_v59, %v1801_v20  ;;  %v6466_v20 = vld [vmem:[#allocation3 + $0x130] sm:$0xff] }
 0x626   :  { %1804 = vst [vmem:[#allocation6 + $0x28] sm:$0xff] %v6270_v3  ;;  %1924 = vmatmul.mubr.f32.vlgmr.msra.gmra.mxu1 %v6270_v3  ;;  %4646 = vmatmul.mubr.f32.vlgmr.msra.gmra.mxu0 %v6270_v3 }
 0x627   :  { %2141 = vmatprep.mubr.f32.mxu1 %v7225_v14  ;;  %4680 = vmatprep.mubr.msk.f32.mxu0 %vm5185_vm2, %v7225_v14 }
 0x628   :  { %2078 = vmatpush1.msra.mxu1 %v6281_v26  ;;  %4649 = vmatpush3.msra.mxu0 %v6283_v0 }
 0x629   :  { %2079 = vmatprep.subr.mxu1 %v6287_v36  ;;  %4650 = vmatprep.subr.mxu0 %v7225_v14 }
 0x62a   :  { %2080 = vmatpush1.msra.mxu1 %v6291_v58  ;;  %4651 = vmatpush3.msra.mxu0 %v6049_v57  ;;  %v6311_v57 = vld [vmem:[#allocation3 + $0x110] sm:$0xff] }
 0x62b   :  { %2081 = vmatprep.subr.mxu1 %v6295_v22  ;;  %4652 = vmatprep.subr.mxu0 %v7225_v14 }
 0x62c   :  { %2082 = vmatpush1.msra.mxu1 %v6299_v5  ;;  %4653 = vmatpush3.msra.mxu0 %v6053_v6  ;;  %v6319_v6 = vld [vmem:[#allocation3 + $0xf8] sm:$0xff] }
 0x62d   :  { %2083 = vmatprep.subr.mxu1 %v6303_v52  ;;  %4654 = vmatprep.subr.mxu0 %v7225_v14 }
 0x62e   :  { %2084 = vmatpush1.msra.mxu1 %v6307_v54  ;;  %4655 = vmatpush3.msra.mxu0 %v6057_v24  ;;  %v6327_v24 = vld [vmem:[#allocation3 + $0xe0] sm:$0xff] }
 0x62f   :  { %2085 = vmatprep.subr.mxu1 %v6311_v57  ;;  %4656 = vmatprep.subr.mxu0 %v7225_v14 }
 0x630   :  { %2086 = vmatpush1.msra.mxu1 %v6315_v55  ;;  %4657 = vmatpush3.msra.mxu0 %v6061_v25  ;;  %v6333_v25 = vld [vmem:[#allocation3 + $0xc8] sm:$0xff] }
 0x631   :  { %2087 = vmatprep.subr.mxu1 %v6319_v6  ;;  %4658 = vmatprep.subr.mxu0 %v7225_v14 }
 0x632   :  { %2088 = vmatpush1.msra.mxu1 %v6323_v41  ;;  %4659 = vmatpush3.msra.mxu0 %v6065_v27  ;;  %v6343_v27 = vld [vmem:[#allocation3 + $0xa8] sm:$0xff] }
 0x633   :  { %2089 = vmatprep.subr.mxu1 %v6327_v24  ;;  %4660 = vmatprep.subr.mxu0 %v7225_v14 }
 0x634   :  { %2090 = vmatpush1.msra.mxu1 %v6331_v45  ;;  %4661 = vmatpush3.msra.mxu0 %v6069_v28  ;;  %v6355_v28 = vld [vmem:[#allocation3 + $0x80] sm:$0xff] }
 0x635   :  { %2091 = vmatprep.subr.mxu1 %v6333_v25  ;;  %4662 = vmatprep.subr.mxu0 %v7225_v14 }
 0x636   :  { %2092 = vmatpush1.msra.mxu1 %v6335_v47  ;;  %4663 = vmatpush3.msra.mxu0 %v6071_v31  ;;  %v6363_v31 = vld [vmem:[#allocation3 + $0x68] sm:$0xff] }
 0x637   :  { %2093 = vmatprep.subr.mxu1 %v6339_v48  ;;  %4664 = vmatprep.subr.mxu0 %v7225_v14 }
 0x638   :  { %2094 = vmatpush1.msra.mxu1 %v6343_v27  ;;  %4665 = vmatpush3.msra.mxu0 %v6075_v7  ;;  %v6371_v7 = vld [vmem:[#allocation3 + $0x50] sm:$0xff] }
 0x639   :  { %2095 = vmatprep.subr.mxu1 %v6347_v4  ;;  %4666 = vmatprep.subr.mxu0 %v7225_v14 }
 0x63a   :  { %2096 = vmatpush1.msra.mxu1 %v6351_v23  ;;  %4667 = vmatpush3.msra.mxu0 %v6079_v32  ;;  %v6379_v32 = vld [vmem:[#allocation3 + $0x38] sm:$0xff] }
 0x63b   :  { %2097 = vmatprep.subr.mxu1 %v6355_v28  ;;  %4668 = vmatprep.subr.mxu0 %v7225_v14 }
 0x63c   :  { %2098 = vmatpush1.msra.mxu1 %v6359_v56  ;;  %4669 = vmatpush3.msra.mxu0 %v6083_v34  ;;  %v6387_v34 = vld [vmem:[#allocation3 + $0x20] sm:$0xff] }
 0x63d   :  { %2099 = vmatprep.subr.mxu1 %v6363_v31  ;;  %4670 = vmatprep.subr.mxu0 %v7225_v14 }
 0x63e   :  { %2100 = vmatpush1.msra.mxu1 %v6367_v40  ;;  %4671 = vmatpush3.msra.mxu0 %v6087_v35  ;;  %v6395_v35 = vld [vmem:[#allocation3 + $0x8] sm:$0xff] }
 0x63f   :  { %2101 = vmatprep.subr.mxu1 %v6371_v7  ;;  %4672 = vmatprep.subr.mxu0 %v7225_v14  ;;  %7263 = vst [vmem:[#allocation30_spill] sm:$0xff] %v6395_v35 }
 0x640   :  { %2102 = vmatpush1.msra.mxu1 %v6375_v44  ;;  %4673 = vmatpush3.msra.mxu0 %v6091_v37  ;;  %v6401_v37 = vld [vmem:[#allocation3 + $0x10] sm:$0xff] }
 0x641   :  { %2103 = vmatprep.subr.mxu1 %v6379_v32  ;;  %4674 = vmatprep.subr.mxu0 %v7225_v14  ;;  %7265 = vst [vmem:[#allocation26_spill] sm:$0xff] %v6401_v37 }
 0x642   :  { %2104 = vmatpush1.msra.mxu1 %v6383_v51  ;;  %4675 = vmatpush3.msra.mxu0 %v6095_v38 }
 0x643   :  { %2105 = vmatprep.subr.mxu1 %v6387_v34  ;;  %4676 = vmatprep.subr.mxu0 %v7225_v14 }
 0x644   :  { %2106 = vmatpush1.msra.mxu1 %v6391_v10  ;;  %4677 = vmatpush3.msra.mxu0 %v7254_v60 }
 0x645   :  { %2107 = vmatprep.subr.mxu1 %v6395_v35  ;;  %4678 = vmatprep.subr.mxu0 %v7225_v14 }
 0x646   :  { %2108 = vmatpush1.msra.mxu1 %v6399_v61  ;;  %4679 = vmatpush3.msra.mxu0 %v6401_v37 }
 0x647   :  { %2295 = vmatprep.subr.mxu1 %v6278_v50  ;;  %4683 = vmatprep.subr.mxu0 %v7225_v14 }
 0x6e6   :  { %v1925_v38 = vpop.f32.mrf.mxu1  ;;  %v1996_v1 = vpop.f32.mrf.mxu0 }
 0x6e7   :  { %v2000_v30 = vadd.f32 %v1925_v38, %v7266_v11  ;;  %v2014_v49 = vadd.f32 %v6265_v29, %v1996_v1  ;;  %v6474_v38 = vld [vmem:[#allocation3 + $0x100] sm:$0xff]  ;;  %v6478_v1 = vld [vmem:[#allocation3 + $0xe8] sm:$0xff]  ;;  %v6480_v11 = vld [vmem:[#allocation3 + $0xd0] sm:$0xff] }
 0x6e8   :  { %v4647_v46 = vpop.f32.mrf.mxu0  ;;  %v1927_v60 = vpop.f32.mrf.mxu1 }
 0x6e9   :  { %v4065_v62 = vmul.f32 -1.442695, %v2000_v30  ;;  %v2007_v15 = vadd.f32 %v1927_v60, %v7267_v9  ;;  %v6484_v30 = vld [vmem:[#allocation3 + $0xb8] sm:$0xff]  ;;  %v6488_v46 = vld [vmem:[#allocation3 + $0xa0] sm:$0xff]  ;;  %v6496_v60 = vld [vmem:[#allocation3 + $0x70] sm:$0xff] }
 0x6ea   :  { %v6500_v9 = vld [vmem:[#allocation3 + $0x58] sm:$0xff] }
 0x6eb   :  { %5035 = vpow2.f32 %v4065_v62  ;;  %v4066_v16 = vmul.f32 -1.442695, %v2007_v15  ;;  %v6492_v62 = vld [vmem:[#allocation3 + $0x88] sm:$0xff]  ;;  %v6504_v15 = vld [vmem:[#allocation3 + $0x40] sm:$0xff] }
 0x6ed   :  { %5037 = vpow2.f32 %v4066_v16  ;;  %v6508_v16 = vld [vmem:[#allocation3 + $0x28] sm:$0xff] }
 0x6ee   :  { %7269 = vst [vmem:[#allocation28_spill] sm:$0xff] %v6508_v16 }
 0x6f8   :  { %v5036_v17 = vpop.eup %5035 }
 0x6f9   :  { %v2004_v8 = vadd.f32 1.0, %v5036_v17 }
 0x6fa   :  { %v5038_v18 = vpop.eup %5037 }
 0x6fb   :  { %5039 = vrcp.f32 %v2004_v8  ;;  %v2011_v33 = vadd.f32 1.0, %v5038_v18  ;;  %v7270_v18 = vld [vmem:[#allocation47_spill] sm:$0xff] }
 0x708   :  { %v5040_v19 = vpop.eup %5039 }
 0x709   :  { %v2015_v21 = vmul.f32 %v5040_v19, %v2014_v49 }
 0x70b   :  { %v2016_v39 = vadd.f32 %v2015_v21, %v7268_v12 }
 0x70d   :  { %5041 = vtanh.f32 %v2016_v39  ;;  %v7271_v39 = vld [vmem:[#allocation48_spill] sm:$0xff] }
 0x70e   :  { %5043 = vrcp.f32 %v2011_v33 }
 0x71a   :  { %v5042_v42 = vpop.eup %5041 }
 0x71b   :  { %v2018_v43 = vsub.f32 %v6270_v3, %v5042_v42  ;;  %v5044_v53 = vpop.eup %5043  ;;  %v6470_v3 = vld [vmem:[#allocation3 + $0x118] sm:$0xff] }
 0x71d   :  { %v2019_v63 = vmul.f32 %v5044_v53, %v2018_v43 }
 0x71f   :  { %v6416_v59 = vadd.f32 %v5042_v42, %v2019_v63 }
 0x721   :  { %2022 = vst [vmem:[#allocation6 + $0x30] sm:$0xff] %v6416_v59  ;;  %2142 = vmatmul.mubr.f32.vlgmr.msra.gmra.mxu1 %v6416_v59  ;;  %4681 = vmatmul.mubr.f32.vlgmr.msra.gmra.mxu0 %v6416_v59 }
 0x722   :  { %2296 = vmatpush1.msra.mxu1 %v6281_v26  ;;  %4684 = vmatpush3.msra.mxu0 %v6283_v0 }
 0x723   :  { %2297 = vmatprep.subr.mxu1 %v6287_v36  ;;  %4685 = vmatprep.subr.mxu0 %v7225_v14 }
 0x724   :  { %2298 = vmatpush1.msra.mxu1 %v6291_v58  ;;  %2359 = vmatprep.mubr.f32.mxu1 %v7225_v14 }
 0x725   :  { %2299 = vmatprep.subr.mxu1 %v6295_v22  ;;  %4715 = vmatprep.mubr.msk.f32.mxu0 %vm5185_vm2, %v7225_v14 }
 0x726   :  { %2300 = vmatpush1.msra.mxu1 %v6299_v5  ;;  %4686 = vmatpush3.msra.mxu0 %v6458_v13 }
 0x727   :  { %2301 = vmatprep.subr.mxu1 %v6303_v52  ;;  %4687 = vmatprep.subr.mxu0 %v7225_v14 }
 0x728   :  { %2302 = vmatpush1.msra.mxu1 %v6307_v54  ;;  %4688 = vmatpush3.msra.mxu0 %v6462_v2 }
 0x729   :  { %2303 = vmatprep.subr.mxu1 %v6311_v57  ;;  %4689 = vmatprep.subr.mxu0 %v7225_v14 }
 0x72a   :  { %2304 = vmatpush1.msra.mxu1 %v6315_v55  ;;  %4690 = vmatpush3.msra.mxu0 %v6466_v20 }
 0x72b   :  { %2305 = vmatprep.subr.mxu1 %v6319_v6  ;;  %4691 = vmatprep.subr.mxu0 %v7225_v14 }
 0x72c   :  { %2306 = vmatpush1.msra.mxu1 %v6323_v41  ;;  %4692 = vmatpush3.msra.mxu0 %v6470_v3 }
 0x72d   :  { %2307 = vmatprep.subr.mxu1 %v6327_v24  ;;  %4693 = vmatprep.subr.mxu0 %v7225_v14 }
 0x72e   :  { %2308 = vmatpush1.msra.mxu1 %v6331_v45  ;;  %4694 = vmatpush3.msra.mxu0 %v6474_v38 }
 0x72f   :  { %2309 = vmatprep.subr.mxu1 %v6333_v25  ;;  %4695 = vmatprep.subr.mxu0 %v7225_v14 }
 0x730   :  { %2310 = vmatpush1.msra.mxu1 %v6335_v47  ;;  %4696 = vmatpush3.msra.mxu0 %v6478_v1 }
 0x731   :  { %2311 = vmatprep.subr.mxu1 %v6339_v48  ;;  %4697 = vmatprep.subr.mxu0 %v7225_v14 }
 0x732   :  { %2312 = vmatpush1.msra.mxu1 %v6343_v27  ;;  %4698 = vmatpush3.msra.mxu0 %v6480_v11 }
 0x733   :  { %2313 = vmatprep.subr.mxu1 %v6347_v4  ;;  %4699 = vmatprep.subr.mxu0 %v7225_v14 }
 0x734   :  { %2314 = vmatpush1.msra.mxu1 %v6351_v23  ;;  %4700 = vmatpush3.msra.mxu0 %v6484_v30 }
 0x735   :  { %2315 = vmatprep.subr.mxu1 %v6355_v28  ;;  %4701 = vmatprep.subr.mxu0 %v7225_v14 }
 0x736   :  { %2316 = vmatpush1.msra.mxu1 %v6359_v56  ;;  %4702 = vmatpush3.msra.mxu0 %v6488_v46 }
 0x737   :  { %2317 = vmatprep.subr.mxu1 %v6363_v31  ;;  %4703 = vmatprep.subr.mxu0 %v7225_v14 }
 0x738   :  { %2318 = vmatpush1.msra.mxu1 %v6367_v40  ;;  %4704 = vmatpush3.msra.mxu0 %v6492_v62 }
 0x739   :  { %2319 = vmatprep.subr.mxu1 %v6371_v7  ;;  %4705 = vmatprep.subr.mxu0 %v7225_v14 }
 0x73a   :  { %2320 = vmatpush1.msra.mxu1 %v6375_v44  ;;  %4706 = vmatpush3.msra.mxu0 %v6496_v60 }
 0x73b   :  { %2321 = vmatprep.subr.mxu1 %v6379_v32  ;;  %4707 = vmatprep.subr.mxu0 %v7225_v14 }
 0x73c   :  { %2322 = vmatpush1.msra.mxu1 %v6383_v51  ;;  %4708 = vmatpush3.msra.mxu0 %v6500_v9 }
 0x73d   :  { %2323 = vmatprep.subr.mxu1 %v6387_v34  ;;  %4709 = vmatprep.subr.mxu0 %v7225_v14 }
 0x73e   :  { %2324 = vmatpush1.msra.mxu1 %v6391_v10  ;;  %4710 = vmatpush3.msra.mxu0 %v6504_v15 }
 0x73f   :  { %2325 = vmatprep.subr.mxu1 %v6395_v35  ;;  %4711 = vmatprep.subr.mxu0 %v7225_v14  ;;  %v7272_v35 = vld [vmem:[#allocation33_spill] sm:$0xff] }
 0x740   :  { %2326 = vmatpush1.msra.mxu1 %v6399_v61  ;;  %4712 = vmatpush3.msra.mxu0 %v6508_v16 }
 0x741   :  { %2513 = vmatprep.subr.mxu1 %v6278_v50  ;;  %4713 = vmatprep.subr.mxu0 %v7225_v14 }
 0x742   :  { %4714 = vmatpush3.msra.mxu0 %v6401_v37 }
 0x743   :  { %4718 = vmatprep.subr.mxu0 %v7225_v14 }
 0x7e1   :  { %v2143_v17 = vpop.f32.mrf.mxu1  ;;  %v2214_v8 = vpop.f32.mrf.mxu0 }
 0x7e2   :  { %v2218_v49 = vadd.f32 %v2143_v17, %v7270_v18  ;;  %v2232_v50 = vadd.f32 %v6265_v29, %v2214_v8 }
 0x7e3   :  { %v4682_v19 = vpop.f32.mrf.mxu0  ;;  %v2145_v12 = vpop.f32.mrf.mxu1 }
 0x7e4   :  { %v4067_v21 = vmul.f32 -1.442695, %v2218_v49  ;;  %v2225_v33 = vadd.f32 %v2145_v12, %v7271_v39  ;;  %v7279_v12 = vld [vmem:[#allocation49_spill] sm:$0xff] }
 0x7e6   :  { %5045 = vpow2.f32 %v4067_v21  ;;  %v4068_v42 = vmul.f32 -1.442695, %v2225_v33 }
 0x7e8   :  { %5047 = vpow2.f32 %v4068_v42 }
 0x7f3   :  { %v5046_v43 = vpop.eup %5045 }
 0x7f4   :  { %v2222_v53 = vadd.f32 1.0, %v5046_v43 }
 0x7f5   :  { %v5048_v63 = vpop.eup %5047 }
 0x7f6   :  { %5049 = vrcp.f32 %v2222_v53  ;;  %v2229_v10 = vadd.f32 1.0, %v5048_v63  ;;  %v7280_v53 = vld [vmem:[#allocation50_spill] sm:$0xff] }
 0x803   :  { %v5050_v37 = vpop.eup %5049 }
 0x804   :  { %v2233_v61 = vmul.f32 %v5050_v37, %v2232_v50  ;;  %v7273_v50 = vld [vmem:[#allocation22_spill] sm:$0xff] }
 0x805   :  { %v7277_v37 = vld [vmem:[#allocation26_spill] sm:$0xff] }
 0x806   :  { %v2234_v16 = vadd.f32 %v2233_v61, %v7272_v35  ;;  %v7275_v35 = vld [vmem:[#allocation30_spill] sm:$0xff]  ;;  %v7276_v61 = vld [vmem:[#allocation24_spill] sm:$0xff] }
 0x808   :  { %5051 = vtanh.f32 %v2234_v16 }
 0x809   :  { %5053 = vrcp.f32 %v2229_v10  ;;  %v7274_v10 = vld [vmem:[#allocation28_spill] sm:$0xff] }
 0x815   :  { %v5052_v17 = vpop.eup %5051 }
 0x816   :  { %v2236_v18 = vsub.f32 %v6416_v59, %v5052_v17  ;;  %v5054_v49 = vpop.eup %5053  ;;  %v7278_v59 = vld [vmem:[#allocation20_spill] sm:$0xff] }
 0x818   :  { %v2237_v19 = vmul.f32 %v5054_v49, %v2236_v18 }
 0x81a   :  { %v6521_v21 = vadd.f32 %v5052_v17, %v2237_v19 }
 0x81c   :  { %2240 = vst [vmem:[#allocation6 + $0x38] sm:$0xff] %v6521_v21  ;;  %2360 = vmatmul.mubr.f32.vlgmr.msra.gmra.mxu1 %v6521_v21  ;;  %4716 = vmatmul.mubr.f32.vlgmr.msra.gmra.mxu0 %v6521_v21 }
 0x81d   :  { %2514 = vmatpush1.msra.mxu1 %v6281_v26  ;;  %4719 = vmatpush3.msra.mxu0 %v6283_v0 }
 0x81e   :  { %2515 = vmatprep.subr.mxu1 %v6287_v36  ;;  %4720 = vmatprep.subr.mxu0 %v7225_v14 }
 0x81f   :  { %2516 = vmatpush1.msra.mxu1 %v6291_v58  ;;  %4721 = vmatpush3.msra.mxu0 %v6458_v13 }
 0x820   :  { %2517 = vmatprep.subr.mxu1 %v6295_v22  ;;  %4722 = vmatprep.subr.mxu0 %v7225_v14 }
 0x821   :  { %2518 = vmatpush1.msra.mxu1 %v6299_v5  ;;  %4723 = vmatpush3.msra.mxu0 %v6462_v2 }
 0x822   :  { %2519 = vmatprep.subr.mxu1 %v6303_v52  ;;  %4724 = vmatprep.subr.mxu0 %v7225_v14 }
 0x823   :  { %2520 = vmatpush1.msra.mxu1 %v6307_v54  ;;  %4725 = vmatpush3.msra.mxu0 %v6466_v20 }
 0x824   :  { %2521 = vmatprep.subr.mxu1 %v6311_v57  ;;  %4726 = vmatprep.subr.mxu0 %v7225_v14 }
 0x825   :  { %2522 = vmatpush1.msra.mxu1 %v6315_v55  ;;  %4727 = vmatpush3.msra.mxu0 %v6470_v3 }
 0x826   :  { %2523 = vmatprep.subr.mxu1 %v6319_v6  ;;  %4728 = vmatprep.subr.mxu0 %v7225_v14 }
 0x827   :  { %2524 = vmatpush1.msra.mxu1 %v6323_v41  ;;  %4729 = vmatpush3.msra.mxu0 %v6474_v38 }
 0x828   :  { %2525 = vmatprep.subr.mxu1 %v6327_v24  ;;  %4730 = vmatprep.subr.mxu0 %v7225_v14 }
 0x829   :  { %2526 = vmatpush1.msra.mxu1 %v6331_v45  ;;  %4731 = vmatpush3.msra.mxu0 %v6478_v1 }
 0x82a   :  { %2527 = vmatprep.subr.mxu1 %v6333_v25  ;;  %4732 = vmatprep.subr.mxu0 %v7225_v14 }
 0x82b   :  { %2528 = vmatpush1.msra.mxu1 %v6335_v47  ;;  %4733 = vmatpush3.msra.mxu0 %v6480_v11 }
 0x82c   :  { %2529 = vmatprep.subr.mxu1 %v6339_v48  ;;  %4734 = vmatprep.subr.mxu0 %v7225_v14 }
 0x82d   :  { %2530 = vmatpush1.msra.mxu1 %v6343_v27  ;;  %4735 = vmatpush3.msra.mxu0 %v6484_v30 }
 0x82e   :  { %2531 = vmatprep.subr.mxu1 %v6347_v4  ;;  %4736 = vmatprep.subr.mxu0 %v7225_v14 }
 0x82f   :  { %2532 = vmatpush1.msra.mxu1 %v6351_v23  ;;  %4737 = vmatpush3.msra.mxu0 %v6488_v46 }
 0x830   :  { %2533 = vmatprep.subr.mxu1 %v6355_v28  ;;  %4738 = vmatprep.subr.mxu0 %v7225_v14 }
 0x831   :  { %2534 = vmatpush1.msra.mxu1 %v6359_v56  ;;  %4739 = vmatpush3.msra.mxu0 %v6492_v62 }
 0x832   :  { %2535 = vmatprep.subr.mxu1 %v6363_v31  ;;  %4740 = vmatprep.subr.mxu0 %v7225_v14 }
 0x833   :  { %2536 = vmatpush1.msra.mxu1 %v6367_v40  ;;  %4741 = vmatpush3.msra.mxu0 %v6496_v60 }
 0x834   :  { %2537 = vmatprep.subr.mxu1 %v6371_v7  ;;  %4742 = vmatprep.subr.mxu0 %v7225_v14 }
 0x835   :  { %2538 = vmatpush1.msra.mxu1 %v6375_v44  ;;  %4743 = vmatpush3.msra.mxu0 %v6500_v9 }
 0x836   :  { %2539 = vmatprep.subr.mxu1 %v6379_v32  ;;  %4744 = vmatprep.subr.mxu0 %v7225_v14 }
 0x837   :  { %2540 = vmatpush1.msra.mxu1 %v6383_v51  ;;  %4745 = vmatpush3.msra.mxu0 %v6504_v15 }
 0x838   :  { %2541 = vmatprep.subr.mxu1 %v6387_v34  ;;  %4746 = vmatprep.subr.mxu0 %v7225_v14 }
 0x839   :  { %2542 = vmatpush1.msra.mxu1 %v7273_v50  ;;  %4747 = vmatpush3.msra.mxu0 %v7274_v10 }
 0x83a   :  { %2543 = vmatprep.subr.mxu1 %v7275_v35  ;;  %4748 = vmatprep.subr.mxu0 %v7225_v14  ;;  %v7281_v35 = vld [vmem:[#allocation38_spill] sm:$0xff] }
 0x83b   :  { %2544 = vmatpush1.msra.mxu1 %v7276_v61  ;;  %2577 = vmatprep.mubr.f32.mxu1 %v7225_v14 }
 0x83c   :  { %4749 = vmatpush3.msra.mxu0 %v7277_v37  ;;  %4750 = vmatprep.mubr.msk.f32.mxu0 %vm5185_vm2, %v7225_v14 }
 0x83d   :  { %2731 = vmatprep.subr.mxu1 %v7278_v59  ;;  %4753 = vmatprep.subr.mxu0 %v7225_v14 }
 0x8dc   :  { %v2361_v16 = vpop.f32.mrf.mxu1  ;;  %v2432_v8 = vpop.f32.mrf.mxu0 }
 0x8dd   :  { %v2436_v39 = vadd.f32 %v2361_v16, %v7279_v12  ;;  %v2450_v59 = vadd.f32 %v6265_v29, %v2432_v8  ;;  %v6707_v8 = vld [vmem:[#allocation3 + $0x128] sm:$0xff] }
 0x8de   :  { %v4717_v33 = vpop.f32.mrf.mxu0  ;;  %v2363_v43 = vpop.f32.mrf.mxu1 }
 0x8df   :  { %v4069_v42 = vmul.f32 -1.442695, %v2436_v39  ;;  %v2443_v63 = vadd.f32 %v2363_v43, %v7280_v53  ;;  %v6711_v43 = vld [vmem:[#allocation3 + $0x120] sm:$0xff]  ;;  %v6719_v53 = vld [vmem:[#allocation3 + $0x108] sm:$0xff] }
 0x8e1   :  { %5055 = vpow2.f32 %v4069_v42  ;;  %v4070_v17 = vmul.f32 -1.442695, %v2443_v63  ;;  %v6727_v63 = vld [vmem:[#allocation3 + $0xf0] sm:$0xff] }
 0x8e3   :  { %5057 = vpow2.f32 %v4070_v17  ;;  %v6735_v17 = vld [vmem:[#allocation3 + $0xd8] sm:$0xff] }
 0x8ee   :  { %v5056_v18 = vpop.eup %5055 }
 0x8ef   :  { %v2440_v49 = vadd.f32 1.0, %v5056_v18  ;;  %v6739_v18 = vld [vmem:[#allocation3 + $0xc0] sm:$0xff] }
 0x8f0   :  { %v5058_v19 = vpop.eup %5057 }
 0x8f1   :  { %5059 = vrcp.f32 %v2440_v49  ;;  %v2447_v50 = vadd.f32 1.0, %v5058_v19  ;;  %v6743_v49 = vld [vmem:[#allocation3 + $0xb0] sm:$0xff]  ;;  %v6751_v19 = vld [vmem:[#allocation3 + $0x98] sm:$0xff] }
 0x8fe   :  { %v5060_v37 = vpop.eup %5059 }
 0x8ff   :  { %v2451_v61 = vmul.f32 %v5060_v37, %v2450_v59  ;;  %v6703_v37 = vld [vmem:[#allocation3 + $0x138] sm:$0xff]  ;;  %v6755_v59 = vld [vmem:[#allocation3 + $0x90] sm:$0xff] }
 0x901   :  { %v2452_v10 = vadd.f32 %v2451_v61, %v7281_v35  ;;  %v6695_v35 = vld [vmem:[#allocation3 + $0x150] sm:$0xff]  ;;  %v6699_v61 = vld [vmem:[#allocation3 + $0x140] sm:$0xff] }
 0x903   :  { %5061 = vtanh.f32 %v2452_v10  ;;  %v6691_v10 = vld [vmem:[#allocation3 + $0x158] sm:$0xff] }
 0x904   :  { %5063 = vrcp.f32 %v2447_v50  ;;  %v6687_v50 = vld [vmem:[#allocation3 + $0x178] sm:$0xff] }
 0x910   :  { %v5062_v16 = vpop.eup %5061 }
 0x911   :  { %v2454_v12 = vsub.f32 %v6521_v21, %v5062_v16  ;;  %v5064_v39 = vpop.eup %5063  ;;  %v6685_v21 = vld [vmem:[#allocation3 + $0x168] sm:$0xff] }
 0x913   :  { %v2455_v33 = vmul.f32 %v5064_v39, %v2454_v12  ;;  %v6771_v12 = vld [vmem:[#allocation3 + $0x60] sm:$0xff]  ;;  %v6779_v39 = vld [vmem:[#allocation3 + $0x48] sm:$0xff] }
 0x915   :  { %v6598_v42 = vadd.f32 %v5062_v16, %v2455_v33  ;;  %v6763_v16 = vld [vmem:[#allocation3 + $0x78] sm:$0xff]  ;;  %v6787_v33 = vld [vmem:[#allocation3 + $0x30] sm:$0xff] }
 0x917   :  { %2458 = vst [vmem:[#allocation6 + $0x40] sm:$0xff] %v6598_v42  ;;  %2578 = vmatmul.mubr.f32.vlgmr.msra.gmra.mxu1 %v6598_v42  ;;  %4751 = vmatmul.mubr.f32.vlgmr.msra.gmra.mxu0 %v6598_v42 }
 0x918   :  { %2732 = vmatpush1.msra.mxu1 %v6281_v26  ;;  %4754 = vmatpush3.msra.mxu0 %v6283_v0  ;;  %v7282_v26 = vld [vmem:[#allocation22_spill] sm:$0xff]  ;;  %v7283_v0 = vld [vmem:[#allocation28_spill] sm:$0xff] }
 0x919   :  { %2733 = vmatprep.subr.mxu1 %v6287_v36  ;;  %4755 = vmatprep.subr.mxu0 %v7225_v14  ;;  %v7284_v36 = vld [vmem:[#allocation30_spill] sm:$0xff] }
 0x91a   :  { %2734 = vmatpush1.msra.mxu1 %v6291_v58  ;;  %4756 = vmatpush3.msra.mxu0 %v6458_v13  ;;  %v7285_v58 = vld [vmem:[#allocation24_spill] sm:$0xff] }
 0x91b   :  { %2735 = vmatprep.subr.mxu1 %v6295_v22  ;;  %4757 = vmatprep.subr.mxu0 %v7225_v14  ;;  %v7286_v22 = vld [vmem:[#allocation26_spill] sm:$0xff] }
 0x91c   :  { %2736 = vmatpush1.msra.mxu1 %v6299_v5  ;;  %4758 = vmatpush3.msra.mxu0 %v6462_v2 }
 0x91d   :  { %2737 = vmatprep.subr.mxu1 %v6303_v52  ;;  %4759 = vmatprep.subr.mxu0 %v7225_v14 }
 0x91e   :  { %2738 = vmatpush1.msra.mxu1 %v6307_v54  ;;  %4760 = vmatpush3.msra.mxu0 %v6466_v20  ;;  %v7287_v54 = vld [vmem:[#allocation51_spill] sm:$0xff] }
 0x91f   :  { %2739 = vmatprep.subr.mxu1 %v6311_v57  ;;  %4761 = vmatprep.subr.mxu0 %v7225_v14 }
 0x920   :  { %2740 = vmatpush1.msra.mxu1 %v6315_v55  ;;  %4762 = vmatpush3.msra.mxu0 %v6470_v3 }
 0x921   :  { %2741 = vmatprep.subr.mxu1 %v6319_v6  ;;  %4763 = vmatprep.subr.mxu0 %v7225_v14 }
 0x922   :  { %2742 = vmatpush1.msra.mxu1 %v6323_v41  ;;  %4764 = vmatpush3.msra.mxu0 %v6474_v38 }
 0x923   :  { %2743 = vmatprep.subr.mxu1 %v6327_v24  ;;  %4765 = vmatprep.subr.mxu0 %v7225_v14  ;;  %v7288_v24 = vld [vmem:[#allocation52_spill] sm:$0xff] }
 0x924   :  { %2744 = vmatpush1.msra.mxu1 %v6331_v45  ;;  %4766 = vmatpush3.msra.mxu0 %v6478_v1 }
 0x925   :  { %2745 = vmatprep.subr.mxu1 %v6333_v25  ;;  %4767 = vmatprep.subr.mxu0 %v7225_v14 }
 0x926   :  { %2746 = vmatpush1.msra.mxu1 %v6335_v47  ;;  %4768 = vmatpush3.msra.mxu0 %v6480_v11 }
 0x927   :  { %2747 = vmatprep.subr.mxu1 %v6339_v48  ;;  %4769 = vmatprep.subr.mxu0 %v7225_v14 }
 0x928   :  { %2748 = vmatpush1.msra.mxu1 %v6343_v27  ;;  %4770 = vmatpush3.msra.mxu0 %v6484_v30 }
 0x929   :  { %2749 = vmatprep.subr.mxu1 %v6347_v4  ;;  %4771 = vmatprep.subr.mxu0 %v7225_v14 }
 0x92a   :  { %2750 = vmatpush1.msra.mxu1 %v6351_v23  ;;  %4772 = vmatpush3.msra.mxu0 %v6488_v46 }
 0x92b   :  { %2751 = vmatprep.subr.mxu1 %v6355_v28  ;;  %4773 = vmatprep.subr.mxu0 %v7225_v14 }
 0x92c   :  { %2752 = vmatpush1.msra.mxu1 %v6359_v56  ;;  %4774 = vmatpush3.msra.mxu0 %v6492_v62  ;;  %v7289_v56 = vld [vmem:[#allocation36_spill] sm:$0xff] }
 0x92d   :  { %2753 = vmatprep.subr.mxu1 %v6363_v31  ;;  %4775 = vmatprep.subr.mxu0 %v7225_v14 }
 0x92e   :  { %2754 = vmatpush1.msra.mxu1 %v6367_v40  ;;  %4776 = vmatpush3.msra.mxu0 %v6496_v60 }
 0x92f   :  { %2755 = vmatprep.subr.mxu1 %v6371_v7  ;;  %4777 = vmatprep.subr.mxu0 %v7225_v14 }
 0x930   :  { %2756 = vmatpush1.msra.mxu1 %v6375_v44  ;;  %4778 = vmatpush3.msra.mxu0 %v6500_v9 }
 0x931   :  { %2757 = vmatprep.subr.mxu1 %v6379_v32  ;;  %4779 = vmatprep.subr.mxu0 %v7225_v14 }
 0x932   :  { %2758 = vmatpush1.msra.mxu1 %v6383_v51  ;;  %4780 = vmatpush3.msra.mxu0 %v6504_v15 }
 0x933   :  { %2759 = vmatprep.subr.mxu1 %v6387_v34  ;;  %4781 = vmatprep.subr.mxu0 %v7225_v14 }
 0x934   :  { %2760 = vmatpush1.msra.mxu1 %v7282_v26  ;;  %4782 = vmatpush3.msra.mxu0 %v7283_v0  ;;  %v6803_v26 = vld [vmem:[#allocation3] sm:$0xff] }
 0x935   :  { %2761 = vmatprep.subr.mxu1 %v7284_v36  ;;  %4783 = vmatprep.subr.mxu0 %v7225_v14  ;;  %7293 = vst [vmem:[#allocation32_spill] sm:$0xff] %v6803_v26 }
 0x936   :  { %2762 = vmatpush1.msra.mxu1 %v7285_v58  ;;  %2795 = vmatprep.mubr.f32.mxu1 %v7225_v14  ;;  %v7295_v58 = vld [vmem:[#allocation53_spill] sm:$0xff] }
 0x937   :  { %4784 = vmatpush3.msra.mxu0 %v7286_v22  ;;  %4785 = vmatprep.mubr.msk.f32.mxu0 %vm5185_vm2, %v7225_v14 }
 0x938   :  { %4788 = vmatprep.subr.mxu0 %v7225_v14 }
 0x9d7   :  { %v2579_v5 = vpop.f32.mrf.mxu1  ;;  %v2650_v52 = vpop.f32.mrf.mxu0 }
 0x9d8   :  { %v2654_v57 = vadd.f32 %v2579_v5, %v7287_v54  ;;  %v2668_v4 = vadd.f32 %v6265_v29, %v2650_v52  ;;  %v6682_v29 = vld [vmem:[#allocation3 + $0x170] sm:$0xff]  ;;  %v7296_v54 = vld [vmem:[#allocation54_spill] sm:$0xff] }
 0x9d9   :  { %v4752_v55 = vpop.f32.mrf.mxu0  ;;  %v2581_v41 = vpop.f32.mrf.mxu1  ;;  %7290 = vst [vmem:[#allocation9_spill] sm:$0xff] %v6682_v29  ;;  %2949 = vmatprep.subr.mxu1 %v6682_v29 }
 0x9da   :  { %v4071_v6 = vmul.f32 -1.442695, %v2654_v57  ;;  %v2661_v45 = vadd.f32 %v2581_v41, %v7288_v24 }
 0x9dc   :  { %5065 = vpow2.f32 %v4071_v6  ;;  %v4072_v25 = vmul.f32 -1.442695, %v2661_v45  ;;  %v6820_v45 = vld [vmem:[%s7136_s4] ss:$0 sm:$0xff]  ;;  %s5186_s4 = smov [#allocation6]  }
 0x9dd   :  { %s3990_s27 = sshll.u32 %s5186_s4, 4  ;;  %s3991_s27 = int_to_ptr.vmem [resolvable:$true] %s3990_s27 }
 0x9de   :  { %5067 = vpow2.f32 %v4072_v25  ;;  %s5157_s28 = scalar_lea.vmem %s3991_s27, 2048  ;;  %p5162_p6 = scmp.lt.s32.totalorder %s3991_s27, %s3991_s27 }
 0x9df   :  { %p5158_p5 = scmp.ne.s32.totalorder %s3991_s27, %s5157_s28  ;;  %p5163_p7 = scmp.lt.s32.totalorder %s5157_s28, %s5157_s28 }
 0x9e1   :  { %p5164_p8 = por %p5163_p7, %p5162_p6 }
 0x9e3   :  { %p5165_p9 = pnand %p5164_p8, %p5158_p5 }
 0x9e9   :  { %v5066_v47 = vpop.eup %5065 }
 0x9ea   :  { %v2658_v48 = vadd.f32 1.0, %v5066_v47 }
 0x9eb   :  { %v5068_v27 = vpop.eup %5067 }
 0x9ec   :  { %5069 = vrcp.f32 %v2658_v48  ;;  %v2665_v40 = vadd.f32 1.0, %v5068_v27  ;;  %v7297_v27 = vld [vmem:[#allocation40_spill] sm:$0xff] }
 0x9f9   :  { %v5070_v23 = vpop.eup %5069 }
 0x9fa   :  { %v2669_v28 = vmul.f32 %v5070_v23, %v2668_v4 }
 0x9fc   :  { %v2670_v31 = vadd.f32 %v2669_v28, %v7289_v56 }
 0x9fe   :  { %5071 = vtanh.f32 %v2670_v31 }
 0x9ff   :  { %5073 = vrcp.f32 %v2665_v40 }
 0xa0b   :  { %v5072_v7 = vpop.eup %5071 }
 0xa0c   :  { %v2672_v44 = vsub.f32 %v6598_v42, %v5072_v7  ;;  %v5074_v32 = vpop.eup %5073  ;;  %v6795_v42 = vld [vmem:[#allocation3 + $0x18] sm:$0xff] }
 0xa0d   :  { %7291 = vst [vmem:[#allocation27_spill] sm:$0xff] %v6795_v42 }
 0xa0e   :  { %v2673_v51 = vmul.f32 %v5074_v32, %v2672_v44  ;;  %v6867_v44 = vld [vmem:[#allocation3 + $0x160] sm:$0xff]  ;;  %v6871_v32 = vld [vmem:[#allocation3 + $0x148] sm:$0xff] }
 0xa10   :  { %v6674_v34 = vadd.f32 %v5072_v7, %v2673_v51  ;;  %v6875_v51 = vld [vmem:[#allocation3 + $0x130] sm:$0xff] }
 0xa12   :  { %2676 = vst [vmem:[#allocation6 + $0x48] sm:$0xff] %v6674_v34  ;;  %2796 = vmatmul.mubr.f32.vlgmr.msra.gmra.mxu1 %v6674_v34  ;;  %4786 = vmatmul.mubr.f32.vlgmr.msra.gmra.mxu0 %v6674_v34 }
 0xa13   :  { %3013 = vmatprep.mubr.f32.mxu1 %v7225_v14  ;;  %4820 = vmatprep.mubr.msk.f32.mxu0 %vm5185_vm2, %v7225_v14 }
 0xa14   :  { %2950 = vmatpush1.msra.mxu1 %v6685_v21  ;;  %4789 = vmatpush3.msra.mxu0 %v6687_v50 }
 0xa15   :  { %2951 = vmatprep.subr.mxu1 %v6691_v10  ;;  %4790 = vmatprep.subr.mxu0 %v7225_v14 }
 0xa16   :  { %2952 = vmatpush1.msra.mxu1 %v6695_v35  ;;  %4791 = vmatpush3.msra.mxu0 %v6458_v13  ;;  %v6715_v13 = vld [vmem:[#allocation3 + $0x110] sm:$0xff] }
 0xa17   :  { %2953 = vmatprep.subr.mxu1 %v6699_v61  ;;  %4792 = vmatprep.subr.mxu0 %v7225_v14 }
 0xa18   :  { %2954 = vmatpush1.msra.mxu1 %v6703_v37  ;;  %4793 = vmatpush3.msra.mxu0 %v6462_v2  ;;  %v6723_v2 = vld [vmem:[#allocation3 + $0xf8] sm:$0xff] }
 0xa19   :  { %2955 = vmatprep.subr.mxu1 %v6707_v8  ;;  %4794 = vmatprep.subr.mxu0 %v7225_v14 }
 0xa1a   :  { %2956 = vmatpush1.msra.mxu1 %v6711_v43  ;;  %4795 = vmatpush3.msra.mxu0 %v6466_v20  ;;  %v6731_v20 = vld [vmem:[#allocation3 + $0xe0] sm:$0xff] }
 0xa1b   :  { %2957 = vmatprep.subr.mxu1 %v6715_v13  ;;  %4796 = vmatprep.subr.mxu0 %v7225_v14 }
 0xa1c   :  { %2958 = vmatpush1.msra.mxu1 %v6719_v53  ;;  %4797 = vmatpush3.msra.mxu0 %v6470_v3  ;;  %v6737_v3 = vld [vmem:[#allocation3 + $0xc8] sm:$0xff] }
 0xa1d   :  { %2959 = vmatprep.subr.mxu1 %v6723_v2  ;;  %4798 = vmatprep.subr.mxu0 %v7225_v14 }
 0xa1e   :  { %2960 = vmatpush1.msra.mxu1 %v6727_v63  ;;  %4799 = vmatpush3.msra.mxu0 %v6474_v38  ;;  %v6747_v38 = vld [vmem:[#allocation3 + $0xa8] sm:$0xff] }
 0xa1f   :  { %2961 = vmatprep.subr.mxu1 %v6731_v20  ;;  %4800 = vmatprep.subr.mxu0 %v7225_v14 }
 0xa20   :  { %2962 = vmatpush1.msra.mxu1 %v6735_v17  ;;  %4801 = vmatpush3.msra.mxu0 %v6478_v1  ;;  %v6759_v1 = vld [vmem:[#allocation3 + $0x80] sm:$0xff] }
 0xa21   :  { %2963 = vmatprep.subr.mxu1 %v6737_v3  ;;  %4802 = vmatprep.subr.mxu0 %v7225_v14 }
 0xa22   :  { %2964 = vmatpush1.msra.mxu1 %v6739_v18  ;;  %4803 = vmatpush3.msra.mxu0 %v6480_v11  ;;  %v6767_v11 = vld [vmem:[#allocation3 + $0x68] sm:$0xff] }
 0xa23   :  { %2965 = vmatprep.subr.mxu1 %v6743_v49  ;;  %4804 = vmatprep.subr.mxu0 %v7225_v14 }
 0xa24   :  { %2966 = vmatpush1.msra.mxu1 %v6747_v38  ;;  %4805 = vmatpush3.msra.mxu0 %v6484_v30  ;;  %v6775_v30 = vld [vmem:[#allocation3 + $0x50] sm:$0xff] }
 0xa25   :  { %2967 = vmatprep.subr.mxu1 %v6751_v19  ;;  %4806 = vmatprep.subr.mxu0 %v7225_v14 }
 0xa26   :  { %2968 = vmatpush1.msra.mxu1 %v6755_v59  ;;  %4807 = vmatpush3.msra.mxu0 %v6488_v46  ;;  %v6783_v46 = vld [vmem:[#allocation3 + $0x38] sm:$0xff] }
 0xa27   :  { %2969 = vmatprep.subr.mxu1 %v6759_v1  ;;  %4808 = vmatprep.subr.mxu0 %v7225_v14 }
 0xa28   :  { %2970 = vmatpush1.msra.mxu1 %v6763_v16  ;;  %4809 = vmatpush3.msra.mxu0 %v6492_v62  ;;  %v6791_v62 = vld [vmem:[#allocation3 + $0x20] sm:$0xff] }
 0xa29   :  { %2971 = vmatprep.subr.mxu1 %v6767_v11  ;;  %4810 = vmatprep.subr.mxu0 %v7225_v14 }
 0xa2a   :  { %2972 = vmatpush1.msra.mxu1 %v6771_v12  ;;  %4811 = vmatpush3.msra.mxu0 %v6496_v60  ;;  %v6799_v60 = vld [vmem:[#allocation3 + $0x8] sm:$0xff] }
 0xa2b   :  { %2973 = vmatprep.subr.mxu1 %v6775_v30  ;;  %4812 = vmatprep.subr.mxu0 %v7225_v14  ;;  %7292 = vst [vmem:[#allocation29_spill] sm:$0xff] %v6799_v60 }
 0xa2c   :  { %2974 = vmatpush1.msra.mxu1 %v6779_v39  ;;  %4813 = vmatpush3.msra.mxu0 %v6500_v9  ;;  %v6805_v9 = vld [vmem:[#allocation3 + $0x10] sm:$0xff] }
 0xa2d   :  { %2975 = vmatprep.subr.mxu1 %v6783_v46  ;;  %4814 = vmatprep.subr.mxu0 %v7225_v14  ;;  %7294 = vst [vmem:[#allocation10_spill] sm:$0xff] %v6805_v9 }
 0xa2e   :  { %2976 = vmatpush1.msra.mxu1 %v6787_v33  ;;  %4815 = vmatpush3.msra.mxu0 %v6504_v15 }
 0xa2f   :  { %2977 = vmatprep.subr.mxu1 %v6791_v62  ;;  %4816 = vmatprep.subr.mxu0 %v7225_v14 }
 0xa30   :  { %2978 = vmatpush1.msra.mxu1 %v6795_v42  ;;  %4817 = vmatpush3.msra.mxu0 %v7283_v0 }
 0xa31   :  { %2979 = vmatprep.subr.mxu1 %v6799_v60  ;;  %4818 = vmatprep.subr.mxu0 %v7225_v14 }
 0xa32   :  { %2980 = vmatpush1.msra.mxu1 %v6803_v26  ;;  %4819 = vmatpush3.msra.mxu0 %v6805_v9 }
 0xa33   :  { %3167 = vmatprep.subr.mxu1 %v6682_v29  ;;  %4823 = vmatprep.subr.mxu0 %v7225_v14 }
 0xad2   :  { %v2797_v15 = vpop.f32.mrf.mxu1  ;;  %v2868_v36 = vpop.f32.mrf.mxu0 }
 0xad3   :  { %v2872_v22 = vadd.f32 %v2797_v15, %v7295_v58  ;;  %v2886_v25 = vadd.f32 %v6820_v45, %v2868_v36  ;;  %v6883_v15 = vld [vmem:[#allocation3 + $0x100] sm:$0xff]  ;;  %v6887_v36 = vld [vmem:[#allocation3 + $0xe8] sm:$0xff]  ;;  %v6889_v58 = vld [vmem:[#allocation3 + $0xd0] sm:$0xff] }
 0xad4   :  { %v4787_v5 = vpop.f32.mrf.mxu0  ;;  %v2799_v0 = vpop.f32.mrf.mxu1 }
 0xad5   :  { %v4073_v52 = vmul.f32 -1.442695, %v2872_v22  ;;  %v2879_v57 = vadd.f32 %v2799_v0, %v7296_v54  ;;  %v6893_v22 = vld [vmem:[#allocation3 + $0xb8] sm:$0xff]  ;;  %v6897_v5 = vld [vmem:[#allocation3 + $0xa0] sm:$0xff]  ;;  %v6905_v0 = vld [vmem:[#allocation3 + $0x70] sm:$0xff] }
 0xad6   :  { %v6909_v54 = vld [vmem:[#allocation3 + $0x58] sm:$0xff] }
 0xad7   :  { %5075 = vpow2.f32 %v4073_v52  ;;  %v4074_v55 = vmul.f32 -1.442695, %v2879_v57  ;;  %v6901_v52 = vld [vmem:[#allocation3 + $0x88] sm:$0xff]  ;;  %v6913_v57 = vld [vmem:[#allocation3 + $0x40] sm:$0xff] }
 0xad9   :  { %5077 = vpow2.f32 %v4074_v55  ;;  %v6917_v55 = vld [vmem:[#allocation3 + $0x28] sm:$0xff] }
 0xada   :  { %7298 = vst [vmem:[#allocation25_spill] sm:$0xff] %v6917_v55 }
 0xae4   :  { %v5076_v6 = vpop.eup %5075 }
 0xae5   :  { %v2876_v41 = vadd.f32 1.0, %v5076_v6 }
 0xae6   :  { %v5078_v24 = vpop.eup %5077 }
 0xae7   :  { %5079 = vrcp.f32 %v2876_v41  ;;  %v2883_v23 = vadd.f32 1.0, %v5078_v24  ;;  %v7299_v24 = vld [vmem:[#allocation55_spill] sm:$0xff] }
 0xaf4   :  { %v5080_v47 = vpop.eup %5079 }
 0xaf5   :  { %v2887_v48 = vmul.f32 %v5080_v47, %v2886_v25 }
 0xaf7   :  { %v2888_v4 = vadd.f32 %v2887_v48, %v7297_v27 }
 0xaf9   :  { %5081 = vtanh.f32 %v2888_v4  ;;  %v7300_v4 = vld [vmem:[#allocation56_spill] sm:$0xff] }
 0xafa   :  { %5083 = vrcp.f32 %v2883_v23 }
 0xb06   :  { %v5082_v28 = vpop.eup %5081 }
 0xb07   :  { %v2890_v56 = vsub.f32 %v6674_v34, %v5082_v28  ;;  %v5084_v31 = vpop.eup %5083  ;;  %v6879_v34 = vld [vmem:[#allocation3 + $0x118] sm:$0xff] }
 0xb09   :  { %v2891_v40 = vmul.f32 %v5084_v31, %v2890_v56 }
 0xb0b   :  { %v6825_v7 = vadd.f32 %v5082_v28, %v2891_v40 }
 0xb0d   :  { %2894 = vst [vmem:[#allocation6 + $0x50] sm:$0xff] %v6825_v7  ;;  %3014 = vmatmul.mubr.f32.vlgmr.msra.gmra.mxu1 %v6825_v7  ;;  %4821 = vmatmul.mubr.f32.vlgmr.msra.gmra.mxu0 %v6825_v7 }
 0xb0e   :  { %3168 = vmatpush1.msra.mxu1 %v6685_v21  ;;  %4824 = vmatpush3.msra.mxu0 %v6687_v50 }
 0xb0f   :  { %3169 = vmatprep.subr.mxu1 %v6691_v10  ;;  %4825 = vmatprep.subr.mxu0 %v7225_v14 }
 0xb10   :  { %3170 = vmatpush1.msra.mxu1 %v6695_v35  ;;  %3231 = vmatprep.mubr.f32.mxu1 %v7225_v14 }
 0xb11   :  { %3171 = vmatprep.subr.mxu1 %v6699_v61  ;;  %4855 = vmatprep.mubr.msk.f32.mxu0 %vm5185_vm2, %v7225_v14 }
 0xb12   :  { %3172 = vmatpush1.msra.mxu1 %v6703_v37  ;;  %4826 = vmatpush3.msra.mxu0 %v6867_v44 }
 0xb13   :  { %3173 = vmatprep.subr.mxu1 %v6707_v8  ;;  %4827 = vmatprep.subr.mxu0 %v7225_v14 }
 0xb14   :  { %3174 = vmatpush1.msra.mxu1 %v6711_v43  ;;  %4828 = vmatpush3.msra.mxu0 %v6871_v32 }
 0xb15   :  { %3175 = vmatprep.subr.mxu1 %v6715_v13  ;;  %4829 = vmatprep.subr.mxu0 %v7225_v14 }
 0xb16   :  { %3176 = vmatpush1.msra.mxu1 %v6719_v53  ;;  %4830 = vmatpush3.msra.mxu0 %v6875_v51 }
 0xb17   :  { %3177 = vmatprep.subr.mxu1 %v6723_v2  ;;  %4831 = vmatprep.subr.mxu0 %v7225_v14 }
 0xb18   :  { %3178 = vmatpush1.msra.mxu1 %v6727_v63  ;;  %4832 = vmatpush3.msra.mxu0 %v6879_v34 }
 0xb19   :  { %3179 = vmatprep.subr.mxu1 %v6731_v20  ;;  %4833 = vmatprep.subr.mxu0 %v7225_v14 }
 0xb1a   :  { %3180 = vmatpush1.msra.mxu1 %v6735_v17  ;;  %4834 = vmatpush3.msra.mxu0 %v6883_v15 }
 0xb1b   :  { %3181 = vmatprep.subr.mxu1 %v6737_v3  ;;  %4835 = vmatprep.subr.mxu0 %v7225_v14 }
 0xb1c   :  { %3182 = vmatpush1.msra.mxu1 %v6739_v18  ;;  %4836 = vmatpush3.msra.mxu0 %v6887_v36 }
 0xb1d   :  { %3183 = vmatprep.subr.mxu1 %v6743_v49  ;;  %4837 = vmatprep.subr.mxu0 %v7225_v14 }
 0xb1e   :  { %3184 = vmatpush1.msra.mxu1 %v6747_v38  ;;  %4838 = vmatpush3.msra.mxu0 %v6889_v58 }
 0xb1f   :  { %3185 = vmatprep.subr.mxu1 %v6751_v19  ;;  %4839 = vmatprep.subr.mxu0 %v7225_v14 }
 0xb20   :  { %3186 = vmatpush1.msra.mxu1 %v6755_v59  ;;  %4840 = vmatpush3.msra.mxu0 %v6893_v22 }
 0xb21   :  { %3187 = vmatprep.subr.mxu1 %v6759_v1  ;;  %4841 = vmatprep.subr.mxu0 %v7225_v14 }
 0xb22   :  { %3188 = vmatpush1.msra.mxu1 %v6763_v16  ;;  %4842 = vmatpush3.msra.mxu0 %v6897_v5 }
 0xb23   :  { %3189 = vmatprep.subr.mxu1 %v6767_v11  ;;  %4843 = vmatprep.subr.mxu0 %v7225_v14 }
 0xb24   :  { %3190 = vmatpush1.msra.mxu1 %v6771_v12  ;;  %4844 = vmatpush3.msra.mxu0 %v6901_v52 }
 0xb25   :  { %3191 = vmatprep.subr.mxu1 %v6775_v30  ;;  %4845 = vmatprep.subr.mxu0 %v7225_v14 }
 0xb26   :  { %3192 = vmatpush1.msra.mxu1 %v6779_v39  ;;  %4846 = vmatpush3.msra.mxu0 %v6905_v0 }
 0xb27   :  { %3193 = vmatprep.subr.mxu1 %v6783_v46  ;;  %4847 = vmatprep.subr.mxu0 %v7225_v14 }
 0xb28   :  { %3194 = vmatpush1.msra.mxu1 %v6787_v33  ;;  %4848 = vmatpush3.msra.mxu0 %v6909_v54 }
 0xb29   :  { %3195 = vmatprep.subr.mxu1 %v6791_v62  ;;  %4849 = vmatprep.subr.mxu0 %v7225_v14 }
 0xb2a   :  { %3196 = vmatpush1.msra.mxu1 %v6795_v42  ;;  %4850 = vmatpush3.msra.mxu0 %v6913_v57 }
 0xb2b   :  { %3197 = vmatprep.subr.mxu1 %v6799_v60  ;;  %4851 = vmatprep.subr.mxu0 %v7225_v14  ;;  %v7301_v60 = vld [vmem:[#allocation39_spill] sm:$0xff] }
 0xb2c   :  { %3198 = vmatpush1.msra.mxu1 %v6803_v26  ;;  %4852 = vmatpush3.msra.mxu0 %v6917_v55 }
 0xb2d   :  { %3385 = vmatprep.subr.mxu1 %v6682_v29  ;;  %4853 = vmatprep.subr.mxu0 %v7225_v14 }
 0xb2e   :  { %4854 = vmatpush3.msra.mxu0 %v6805_v9 }
 0xb2f   :  { %4858 = vmatprep.subr.mxu0 %v7225_v14 }
 0xbcd   :  { %v3015_v6 = vpop.f32.mrf.mxu1  ;;  %v3086_v41 = vpop.f32.mrf.mxu0 }
 0xbce   :  { %v3090_v25 = vadd.f32 %v3015_v6, %v7299_v24  ;;  %v3104_v29 = vadd.f32 %v6820_v45, %v3086_v41 }
 0xbcf   :  { %v4822_v47 = vpop.f32.mrf.mxu0  ;;  %v3017_v27 = vpop.f32.mrf.mxu1 }
 0xbd0   :  { %v4075_v48 = vmul.f32 -1.442695, %v3090_v25  ;;  %v3097_v23 = vadd.f32 %v3017_v27, %v7300_v4  ;;  %v7308_v27 = vld [vmem:[#allocation12_spill] sm:$0xff] }
 0xbd2   :  { %5085 = vpow2.f32 %v4075_v48  ;;  %v4076_v28 = vmul.f32 -1.442695, %v3097_v23 }
 0xbd4   :  { %5087 = vpow2.f32 %v4076_v28 }
 0xbdf   :  { %v5086_v56 = vpop.eup %5085 }
 0xbe0   :  { %v3094_v31 = vadd.f32 1.0, %v5086_v56 }
 0xbe1   :  { %v5088_v40 = vpop.eup %5087 }
 0xbe2   :  { %5089 = vrcp.f32 %v3094_v31  ;;  %v3101_v42 = vadd.f32 1.0, %v5088_v40  ;;  %v7309_v31 = vld [vmem:[#allocation13_spill] sm:$0xff] }
 0xbef   :  { %v5090_v9 = vpop.eup %5089 }
 0xbf0   :  { %v3105_v26 = vmul.f32 %v5090_v9, %v3104_v29  ;;  %v7302_v29 = vld [vmem:[#allocation27_spill] sm:$0xff]  ;;  %v7306_v9 = vld [vmem:[#allocation10_spill] sm:$0xff] }
 0xbf2   :  { %v3106_v55 = vadd.f32 %v3105_v26, %v7301_v60  ;;  %v7304_v60 = vld [vmem:[#allocation29_spill] sm:$0xff]  ;;  %v7305_v26 = vld [vmem:[#allocation32_spill] sm:$0xff] }
 0xbf4   :  { %5091 = vtanh.f32 %v3106_v55 }
 0xbf5   :  { %5093 = vrcp.f32 %v3101_v42  ;;  %v7303_v42 = vld [vmem:[#allocation25_spill] sm:$0xff] }
 0xc01   :  { %v5092_v6 = vpop.eup %5091 }
 0xc02   :  { %v3108_v24 = vsub.f32 %v6825_v7, %v5092_v6  ;;  %v5094_v25 = vpop.eup %5093  ;;  %v7307_v7 = vld [vmem:[#allocation9_spill] sm:$0xff] }
 0xc04   :  { %v3109_v47 = vmul.f32 %v5094_v25, %v3108_v24 }
 0xc06   :  { %v6930_v48 = vadd.f32 %v5092_v6, %v3109_v47 }
 0xc08   :  { %3112 = vst [vmem:[#allocation6 + $0x58] sm:$0xff] %v6930_v48  ;;  %3232 = vmatmul.mubr.f32.vlgmr.msra.gmra.mxu1 %v6930_v48  ;;  %4856 = vmatmul.mubr.f32.vlgmr.msra.gmra.mxu0 %v6930_v48 }
 0xc09   :  { %3386 = vmatpush1.msra.mxu1 %v6685_v21  ;;  %4859 = vmatpush3.msra.mxu0 %v6687_v50 }
 0xc0a   :  { %3387 = vmatprep.subr.mxu1 %v6691_v10  ;;  %4860 = vmatprep.subr.mxu0 %v7225_v14 }
 0xc0b   :  { %3388 = vmatpush1.msra.mxu1 %v6695_v35  ;;  %4861 = vmatpush3.msra.mxu0 %v6867_v44 }
 0xc0c   :  { %3389 = vmatprep.subr.mxu1 %v6699_v61  ;;  %4862 = vmatprep.subr.mxu0 %v7225_v14 }
 0xc0d   :  { %3390 = vmatpush1.msra.mxu1 %v6703_v37  ;;  %4863 = vmatpush3.msra.mxu0 %v6871_v32 }
 0xc0e   :  { %3391 = vmatprep.subr.mxu1 %v6707_v8  ;;  %4864 = vmatprep.subr.mxu0 %v7225_v14 }
 0xc0f   :  { %3392 = vmatpush1.msra.mxu1 %v6711_v43  ;;  %4865 = vmatpush3.msra.mxu0 %v6875_v51 }
 0xc10   :  { %3393 = vmatprep.subr.mxu1 %v6715_v13  ;;  %4866 = vmatprep.subr.mxu0 %v7225_v14 }
 0xc11   :  { %3394 = vmatpush1.msra.mxu1 %v6719_v53  ;;  %4867 = vmatpush3.msra.mxu0 %v6879_v34 }
 0xc12   :  { %3395 = vmatprep.subr.mxu1 %v6723_v2  ;;  %4868 = vmatprep.subr.mxu0 %v7225_v14 }
 0xc13   :  { %3396 = vmatpush1.msra.mxu1 %v6727_v63  ;;  %4869 = vmatpush3.msra.mxu0 %v6883_v15 }
 0xc14   :  { %3397 = vmatprep.subr.mxu1 %v6731_v20  ;;  %4870 = vmatprep.subr.mxu0 %v7225_v14 }
 0xc15   :  { %3398 = vmatpush1.msra.mxu1 %v6735_v17  ;;  %4871 = vmatpush3.msra.mxu0 %v6887_v36 }
 0xc16   :  { %3399 = vmatprep.subr.mxu1 %v6737_v3  ;;  %4872 = vmatprep.subr.mxu0 %v7225_v14 }
 0xc17   :  { %3400 = vmatpush1.msra.mxu1 %v6739_v18  ;;  %4873 = vmatpush3.msra.mxu0 %v6889_v58 }
 0xc18   :  { %3401 = vmatprep.subr.mxu1 %v6743_v49  ;;  %4874 = vmatprep.subr.mxu0 %v7225_v14 }
 0xc19   :  { %3402 = vmatpush1.msra.mxu1 %v6747_v38  ;;  %4875 = vmatpush3.msra.mxu0 %v6893_v22 }
 0xc1a   :  { %3403 = vmatprep.subr.mxu1 %v6751_v19  ;;  %4876 = vmatprep.subr.mxu0 %v7225_v14 }
 0xc1b   :  { %3404 = vmatpush1.msra.mxu1 %v6755_v59  ;;  %4877 = vmatpush3.msra.mxu0 %v6897_v5 }
 0xc1c   :  { %3405 = vmatprep.subr.mxu1 %v6759_v1  ;;  %4878 = vmatprep.subr.mxu0 %v7225_v14 }
 0xc1d   :  { %3406 = vmatpush1.msra.mxu1 %v6763_v16  ;;  %4879 = vmatpush3.msra.mxu0 %v6901_v52 }
 0xc1e   :  { %3407 = vmatprep.subr.mxu1 %v6767_v11  ;;  %4880 = vmatprep.subr.mxu0 %v7225_v14 }
 0xc1f   :  { %3408 = vmatpush1.msra.mxu1 %v6771_v12  ;;  %4881 = vmatpush3.msra.mxu0 %v6905_v0 }
 0xc20   :  { %3409 = vmatprep.subr.mxu1 %v6775_v30  ;;  %4882 = vmatprep.subr.mxu0 %v7225_v14 }
 0xc21   :  { %3410 = vmatpush1.msra.mxu1 %v6779_v39  ;;  %4883 = vmatpush3.msra.mxu0 %v6909_v54 }
 0xc22   :  { %3411 = vmatprep.subr.mxu1 %v6783_v46  ;;  %4884 = vmatprep.subr.mxu0 %v7225_v14 }
 0xc23   :  { %3412 = vmatpush1.msra.mxu1 %v6787_v33  ;;  %4885 = vmatpush3.msra.mxu0 %v6913_v57 }
 0xc24   :  { %3413 = vmatprep.subr.mxu1 %v6791_v62  ;;  %4886 = vmatprep.subr.mxu0 %v7225_v14 }
 0xc25   :  { %3414 = vmatpush1.msra.mxu1 %v7302_v29  ;;  %4887 = vmatpush3.msra.mxu0 %v7303_v42 }
 0xc26   :  { %3415 = vmatprep.subr.mxu1 %v7304_v60  ;;  %4888 = vmatprep.subr.mxu0 %v7225_v14  ;;  %v7310_v60 = vld [vmem:[#allocation44_spill] sm:$0xff] }
 0xc27   :  { %3416 = vmatpush1.msra.mxu1 %v7305_v26  ;;  %3449 = vmatprep.mubr.f32.mxu1 %v7225_v14 }
 0xc28   :  { %4889 = vmatpush3.msra.mxu0 %v7306_v9  ;;  %4890 = vmatprep.mubr.msk.f32.mxu0 %vm5185_vm2, %v7225_v14 }
 0xc29   :  { %3603 = vmatprep.subr.mxu1 %v7307_v7  ;;  %4893 = vmatprep.subr.mxu0 %v7225_v14 }
 0xcc8   :  { %v3233_v55 = vpop.f32.mrf.mxu1  ;;  %v3304_v41 = vpop.f32.mrf.mxu0 }
 0xcc9   :  { %v3308_v4 = vadd.f32 %v3233_v55, %v7308_v27  ;;  %v3322_v7 = vadd.f32 %v6820_v45, %v3304_v41  ;;  %v3812_v41 = vld [vmem:[#allocation3 + $0x138] sm:$0xff] }
 0xcca   :  { %v4857_v23 = vpop.f32.mrf.mxu0  ;;  %v3235_v56 = vpop.f32.mrf.mxu1 }
 0xccb   :  { %v4077_v28 = vmul.f32 -1.442695, %v3308_v4  ;;  %v3315_v40 = vadd.f32 %v3235_v56, %v7309_v31  ;;  %v3810_v56 = vld [vmem:[#allocation3 + $0x128] sm:$0xff]  ;;  %v3809_v31 = vld [vmem:[#allocation3 + $0x120] sm:$0xff] }
 0xccd   :  { %5095 = vpow2.f32 %v4077_v28  ;;  %v4078_v6 = vmul.f32 -1.442695, %v3315_v40  ;;  %v3807_v40 = vld [vmem:[#allocation3 + $0x110] sm:$0xff] }
 0xccf   :  { %5097 = vpow2.f32 %v4078_v6  ;;  %v3804_v6 = vld [vmem:[#allocation3 + $0xf8] sm:$0xff] }
 0xcda   :  { %v5096_v24 = vpop.eup %5095 }
 0xcdb   :  { %v3312_v25 = vadd.f32 1.0, %v5096_v24  ;;  %v3801_v24 = vld [vmem:[#allocation3 + $0xe0] sm:$0xff] }
 0xcdc   :  { %v5098_v47 = vpop.eup %5097 }
 0xcdd   :  { %5099 = vrcp.f32 %v3312_v25  ;;  %v3319_v29 = vadd.f32 1.0, %v5098_v47  ;;  %v3798_v25 = vld [vmem:[#allocation3 + $0xc8] sm:$0xff]  ;;  %v3797_v47 = vld [vmem:[#allocation3 + $0xc0] sm:$0xff] }
 0xcea   :  { %v5100_v9 = vpop.eup %5099 }
 0xceb   :  { %v3323_v26 = vmul.f32 %v5100_v9, %v3322_v7  ;;  %v3813_v9 = vld [vmem:[#allocation3 + $0x140] sm:$0xff]  ;;  %v3795_v7 = vld [vmem:[#allocation3 + $0xb0] sm:$0xff] }
 0xced   :  { %v3324_v42 = vadd.f32 %v3323_v26, %v7310_v60  ;;  %v3816_v60 = vld [vmem:[#allocation3 + $0x158] sm:$0xff]  ;;  %v3815_v26 = vld [vmem:[#allocation3 + $0x150] sm:$0xff] }
 0xcef   :  { %5101 = vtanh.f32 %v3324_v42  ;;  %v3820_v42 = vld [vmem:[#allocation3 + $0x178] sm:$0xff] }
 0xcf0   :  { %5103 = vrcp.f32 %v3319_v29  ;;  %v3818_v29 = vld [vmem:[#allocation3 + $0x168] sm:$0xff] }
 0xcfc   :  { %v5102_v55 = vpop.eup %5101 }
 0xcfd   :  { %v3326_v27 = vsub.f32 %v6930_v48, %v5102_v55  ;;  %v5104_v4 = vpop.eup %5103  ;;  %v3819_v48 = vld [vmem:[#allocation3 + $0x170] sm:$0xff] }
 0xcff   :  { %v3327_v23 = vmul.f32 %v5104_v4, %v3326_v27  ;;  %v3789_v27 = vld [vmem:[#allocation3 + $0x80] sm:$0xff]  ;;  %v3786_v4 = vld [vmem:[#allocation3 + $0x68] sm:$0xff] }
 0xd01   :  { %v7007_v28 = vadd.f32 %v5102_v55, %v3327_v23  ;;  %v3792_v55 = vld [vmem:[#allocation3 + $0x98] sm:$0xff]  ;;  %v3783_v23 = vld [vmem:[#allocation3 + $0x50] sm:$0xff] }
 0xd03   :  { %3330 = vst [vmem:[#allocation6 + $0x60] sm:$0xff] %v7007_v28  ;;  %3450 = vmatmul.mubr.f32.vlgmr.msra.gmra.mxu1 %v7007_v28  ;;  %4891 = vmatmul.mubr.f32.vlgmr.msra.gmra.mxu0 %v7007_v28 }
 0xd04   :  { %3604 = vmatpush1.msra.mxu1 %v6685_v21  ;;  %4894 = vmatpush3.msra.mxu0 %v6687_v50  ;;  %v7311_v21 = vld [vmem:[#allocation27_spill] sm:$0xff]  ;;  %v7312_v50 = vld [vmem:[#allocation25_spill] sm:$0xff] }
 0xd05   :  { %3605 = vmatprep.subr.mxu1 %v6691_v10  ;;  %4895 = vmatprep.subr.mxu0 %v7225_v14  ;;  %v7313_v10 = vld [vmem:[#allocation29_spill] sm:$0xff] }
 0xd06   :  { %3606 = vmatpush1.msra.mxu1 %v6695_v35  ;;  %4896 = vmatpush3.msra.mxu0 %v6867_v44  ;;  %v7314_v35 = vld [vmem:[#allocation32_spill] sm:$0xff] }
 0xd07   :  { %3607 = vmatprep.subr.mxu1 %v6699_v61  ;;  %4897 = vmatprep.subr.mxu0 %v7225_v14  ;;  %v7315_v61 = vld [vmem:[#allocation10_spill] sm:$0xff] }
 0xd08   :  { %3608 = vmatpush1.msra.mxu1 %v6703_v37  ;;  %4898 = vmatpush3.msra.mxu0 %v6871_v32 }
 0xd09   :  { %3609 = vmatprep.subr.mxu1 %v6707_v8  ;;  %4899 = vmatprep.subr.mxu0 %v7225_v14 }
 0xd0a   :  { %3610 = vmatpush1.msra.mxu1 %v6711_v43  ;;  %4900 = vmatpush3.msra.mxu0 %v6875_v51  ;;  %v7316_v43 = vld [vmem:[#allocation14_spill] sm:$0xff] }
 0xd0b   :  { %3611 = vmatprep.subr.mxu1 %v6715_v13  ;;  %4901 = vmatprep.subr.mxu0 %v7225_v14 }
 0xd0c   :  { %3612 = vmatpush1.msra.mxu1 %v6719_v53  ;;  %4902 = vmatpush3.msra.mxu0 %v6879_v34 }
 0xd0d   :  { %3613 = vmatprep.subr.mxu1 %v6723_v2  ;;  %4903 = vmatprep.subr.mxu0 %v7225_v14 }
 0xd0e   :  { %3614 = vmatpush1.msra.mxu1 %v6727_v63  ;;  %4904 = vmatpush3.msra.mxu0 %v6883_v15 }
 0xd0f   :  { %3615 = vmatprep.subr.mxu1 %v6731_v20  ;;  %4905 = vmatprep.subr.mxu0 %v7225_v14  ;;  %v7317_v20 = vld [vmem:[#allocation15_spill] sm:$0xff] }
 0xd10   :  { %3616 = vmatpush1.msra.mxu1 %v6735_v17  ;;  %4906 = vmatpush3.msra.mxu0 %v6887_v36 }
 0xd11   :  { %3617 = vmatprep.subr.mxu1 %v6737_v3  ;;  %4907 = vmatprep.subr.mxu0 %v7225_v14 }
 0xd12   :  { %3618 = vmatpush1.msra.mxu1 %v6739_v18  ;;  %4908 = vmatpush3.msra.mxu0 %v6889_v58 }
 0xd13   :  { %3619 = vmatprep.subr.mxu1 %v6743_v49  ;;  %4909 = vmatprep.subr.mxu0 %v7225_v14 }
 0xd14   :  { %3620 = vmatpush1.msra.mxu1 %v6747_v38  ;;  %4910 = vmatpush3.msra.mxu0 %v6893_v22 }
 0xd15   :  { %3621 = vmatprep.subr.mxu1 %v6751_v19  ;;  %4911 = vmatprep.subr.mxu0 %v7225_v14 }
 0xd16   :  { %3622 = vmatpush1.msra.mxu1 %v6755_v59  ;;  %4912 = vmatpush3.msra.mxu0 %v6897_v5 }
 0xd17   :  { %3623 = vmatprep.subr.mxu1 %v6759_v1  ;;  %4913 = vmatprep.subr.mxu0 %v7225_v14 }
 0xd18   :  { %3624 = vmatpush1.msra.mxu1 %v6763_v16  ;;  %4914 = vmatpush3.msra.mxu0 %v6901_v52  ;;  %v7318_v16 = vld [vmem:[#allocation42_spill] sm:$0xff] }
 0xd19   :  { %3625 = vmatprep.subr.mxu1 %v6767_v11  ;;  %4915 = vmatprep.subr.mxu0 %v7225_v14 }
 0xd1a   :  { %3626 = vmatpush1.msra.mxu1 %v6771_v12  ;;  %4916 = vmatpush3.msra.mxu0 %v6905_v0 }
 0xd1b   :  { %3627 = vmatprep.subr.mxu1 %v6775_v30  ;;  %4917 = vmatprep.subr.mxu0 %v7225_v14 }
 0xd1c   :  { %3628 = vmatpush1.msra.mxu1 %v6779_v39  ;;  %4918 = vmatpush3.msra.mxu0 %v6909_v54 }
 0xd1d   :  { %3629 = vmatprep.subr.mxu1 %v6783_v46  ;;  %4919 = vmatprep.subr.mxu0 %v7225_v14 }
 0xd1e   :  { %3630 = vmatpush1.msra.mxu1 %v6787_v33  ;;  %4920 = vmatpush3.msra.mxu0 %v6913_v57 }
 0xd1f   :  { %3631 = vmatprep.subr.mxu1 %v6791_v62  ;;  %4921 = vmatprep.subr.mxu0 %v7225_v14 }
 0xd20   :  { %3632 = vmatpush1.msra.mxu1 %v7311_v21  ;;  %4922 = vmatpush3.msra.mxu0 %v7312_v50  ;;  %v3777_v21 = vld [vmem:[#allocation3 + $0x20] sm:$0xff] }
 0xd21   :  { %3633 = vmatprep.subr.mxu1 %v7313_v10  ;;  %4923 = vmatprep.subr.mxu0 %v7225_v14  ;;  %v3774_v10 = vld [vmem:[#allocation3 + $0x8] sm:$0xff] }
 0xd22   :  { %3634 = vmatpush1.msra.mxu1 %v7314_v35  ;;  %3667 = vmatprep.mubr.f32.mxu1 %v7225_v14  ;;  %v3775_v35 = vld [vmem:[#allocation3 + $0x10] sm:$0xff] }
 0xd23   :  { %4924 = vmatpush3.msra.mxu0 %v7315_v61  ;;  %4925 = vmatprep.mubr.msk.f32.mxu0 %vm5185_vm2, %v7225_v14 }
 0xd24   :  { %4928 = vmatprep.subr.mxu0 %v7225_v14  ;;  %3821 = vmatprep.subr.mxu1 %v3819_v48 }
 0xdc3   :  { %v3451_v37 = vpop.f32.mrf.mxu1  ;;  %v3522_v8 = vpop.f32.mrf.mxu0 }
 0xdc4   :  { %v3526_v13 = vadd.f32 %v3451_v37, %v7316_v43  ;;  %v3540_v19 = vadd.f32 %v6820_v45, %v3522_v8  ;;  %v7319_v37 = vld [vmem:[#allocation17_spill] sm:$0xff] }
 0xdc5   :  { %v4892_v53 = vpop.f32.mrf.mxu0  ;;  %v3453_v63 = vpop.f32.mrf.mxu1 }
 0xdc6   :  { %v4079_v2 = vmul.f32 -1.442695, %v3526_v13  ;;  %v3533_v17 = vadd.f32 %v3453_v63, %v7317_v20  ;;  %v7320_v53 = vld [vmem:[#allocation19_spill] sm:$0xff] }
 0xdc8   :  { %5105 = vpow2.f32 %v4079_v2  ;;  %v4080_v3 = vmul.f32 -1.442695, %v3533_v17 }
 0xdca   :  { %5107 = vpow2.f32 %v4080_v3 }
 0xdd5   :  { %v5106_v18 = vpop.eup %5105 }
 0xdd6   :  { %v3530_v49 = vadd.f32 1.0, %v5106_v18 }
 0xdd7   :  { %v5108_v38 = vpop.eup %5107 }
 0xdd8   :  { %5109 = vrcp.f32 %v3530_v49  ;;  %v3537_v12 = vadd.f32 1.0, %v5108_v38  ;;  %v7321_v49 = vld [vmem:[#allocation46_spill] sm:$0xff] }
 0xde5   :  { %v5110_v59 = vpop.eup %5109 }
 0xde6   :  { %v3541_v1 = vmul.f32 %v5110_v59, %v3540_v19 }
 0xde8   :  { %v3542_v11 = vadd.f32 %v3541_v1, %v7318_v16 }
 0xdea   :  { %5111 = vtanh.f32 %v3542_v11 }
 0xdeb   :  { %5113 = vrcp.f32 %v3537_v12 }
 0xdf7   :  { %v5112_v30 = vpop.eup %5111 }
 0xdf8   :  { %v3544_v39 = vsub.f32 %v7007_v28, %v5112_v30  ;;  %v5114_v46 = vpop.eup %5113  ;;  %v3780_v28 = vld [vmem:[#allocation3 + $0x38] sm:$0xff] }
 0xdfa   :  { %v3545_v33 = vmul.f32 %v5114_v46, %v3544_v39  ;;  %v7322_v46 = vld [vmem:[#allocation21_spill] sm:$0xff] }
 0xdfc   :  { %v7083_v62 = vadd.f32 %v5112_v30, %v3545_v33 }
 0xdfe   :  { %3548 = vst [vmem:[#allocation6 + $0x68] sm:$0xff] %v7083_v62  ;;  %3668 = vmatmul.mubr.f32.vlgmr.msra.gmra.mxu1 %v7083_v62  ;;  %4926 = vmatmul.mubr.f32.vlgmr.msra.gmra.mxu0 %v7083_v62 }
 0xdff   :  { %3885 = vmatprep.mubr.f32.mxu1 %v7225_v14  ;;  %4960 = vmatprep.mubr.msk.f32.mxu0 %vm5185_vm2, %v7225_v14 }
 0xe00   :  { %3822 = vmatpush1.msra.mxu1 %v3818_v29  ;;  %4929 = vmatpush3.msra.mxu0 %v3820_v42 }
 0xe01   :  { %3823 = vmatprep.subr.mxu1 %v3816_v60  ;;  %4930 = vmatprep.subr.mxu0 %v7225_v14  ;;  %v7323_v60 = vld [vmem:[#allocation23_spill] sm:$0xff] }
 0xe02   :  { %3824 = vmatpush1.msra.mxu1 %v3815_v26  ;;  %4931 = vmatpush3.msra.mxu0 %v6867_v44  ;;  %v3806_v44 = vld [vmem:[#allocation3 + $0x108] sm:$0xff] }
 0xe03   :  { %3825 = vmatprep.subr.mxu1 %v3813_v9  ;;  %4932 = vmatprep.subr.mxu0 %v7225_v14 }
 0xe04   :  { %3826 = vmatpush1.msra.mxu1 %v3812_v41  ;;  %4933 = vmatpush3.msra.mxu0 %v6871_v32  ;;  %v3803_v32 = vld [vmem:[#allocation3 + $0xf0] sm:$0xff] }
 0xe05   :  { %3827 = vmatprep.subr.mxu1 %v3810_v56  ;;  %4934 = vmatprep.subr.mxu0 %v7225_v14 }
 0xe06   :  { %3828 = vmatpush1.msra.mxu1 %v3809_v31  ;;  %4935 = vmatpush3.msra.mxu0 %v6875_v51  ;;  %v3800_v51 = vld [vmem:[#allocation3 + $0xd8] sm:$0xff] }
 0xe07   :  { %3829 = vmatprep.subr.mxu1 %v3807_v40  ;;  %4936 = vmatprep.subr.mxu0 %v7225_v14 }
 0xe08   :  { %3830 = vmatpush1.msra.mxu1 %v3806_v44  ;;  %4937 = vmatpush3.msra.mxu0 %v6879_v34  ;;  %v3794_v34 = vld [vmem:[#allocation3 + $0xa8] sm:$0xff] }
 0xe09   :  { %3831 = vmatprep.subr.mxu1 %v3804_v6  ;;  %4938 = vmatprep.subr.mxu0 %v7225_v14  ;;  %v7324_v6 = vld [vmem:[#allocation45_spill] sm:$0xff] }
 0xe0a   :  { %3832 = vmatpush1.msra.mxu1 %v3803_v32  ;;  %4939 = vmatpush3.msra.mxu0 %v6883_v15  ;;  %v3791_v15 = vld [vmem:[#allocation3 + $0x90] sm:$0xff] }
 0xe0b   :  { %3833 = vmatprep.subr.mxu1 %v3801_v24  ;;  %4940 = vmatprep.subr.mxu0 %v7225_v14 }
 0xe0c   :  { %3834 = vmatpush1.msra.mxu1 %v3800_v51  ;;  %4941 = vmatpush3.msra.mxu0 %v6887_v36  ;;  %v3788_v36 = vld [vmem:[#allocation3 + $0x78] sm:$0xff] }
 0xe0d   :  { %3835 = vmatprep.subr.mxu1 %v3798_v25  ;;  %4942 = vmatprep.subr.mxu0 %v7225_v14 }
 0xe0e   :  { %3836 = vmatpush1.msra.mxu1 %v3797_v47  ;;  %4943 = vmatpush3.msra.mxu0 %v6889_v58  ;;  %v3785_v58 = vld [vmem:[#allocation3 + $0x60] sm:$0xff] }
 0xe0f   :  { %3837 = vmatprep.subr.mxu1 %v3795_v7  ;;  %4944 = vmatprep.subr.mxu0 %v7225_v14 }
 0xe10   :  { %3838 = vmatpush1.msra.mxu1 %v3794_v34  ;;  %4945 = vmatpush3.msra.mxu0 %v6893_v22  ;;  %v3782_v22 = vld [vmem:[#allocation3 + $0x48] sm:$0xff] }
 0xe11   :  { %3839 = vmatprep.subr.mxu1 %v3792_v55  ;;  %4946 = vmatprep.subr.mxu0 %v7225_v14 }
 0xe12   :  { %3840 = vmatpush1.msra.mxu1 %v3791_v15  ;;  %4947 = vmatpush3.msra.mxu0 %v6897_v5  ;;  %v3779_v5 = vld [vmem:[#allocation3 + $0x30] sm:$0xff] }
 0xe13   :  { %3841 = vmatprep.subr.mxu1 %v3789_v27  ;;  %4948 = vmatprep.subr.mxu0 %v7225_v14 }
 0xe14   :  { %3842 = vmatpush1.msra.mxu1 %v3788_v36  ;;  %4949 = vmatpush3.msra.mxu0 %v6901_v52  ;;  %v3776_v52 = vld [vmem:[#allocation3 + $0x18] sm:$0xff] }
 0xe15   :  { %3843 = vmatprep.subr.mxu1 %v3786_v4  ;;  %4950 = vmatprep.subr.mxu0 %v7225_v14 }
 0xe16   :  { %3844 = vmatpush1.msra.mxu1 %v3785_v58  ;;  %4951 = vmatpush3.msra.mxu0 %v6905_v0  ;;  %v3773_v0 = vld [vmem:[#allocation3] sm:$0xff] }
 0xe17   :  { %3845 = vmatprep.subr.mxu1 %v3783_v23  ;;  %4952 = vmatprep.subr.mxu0 %v7225_v14 }
 0xe18   :  { %3846 = vmatpush1.msra.mxu1 %v3782_v22  ;;  %4953 = vmatpush3.msra.mxu0 %v6909_v54 }
 0xe19   :  { %3847 = vmatprep.subr.mxu1 %v3780_v28  ;;  %4954 = vmatprep.subr.mxu0 %v7225_v14 }
 0xe1a   :  { %3848 = vmatpush1.msra.mxu1 %v3779_v5  ;;  %4955 = vmatpush3.msra.mxu0 %v6913_v57 }
 0xe1b   :  { %3849 = vmatprep.subr.mxu1 %v3777_v21  ;;  %4956 = vmatprep.subr.mxu0 %v7225_v14 }
 0xe1c   :  { %3850 = vmatpush1.msra.mxu1 %v3776_v52  ;;  %4957 = vmatpush3.msra.mxu0 %v7312_v50 }
 0xe1d   :  { %3851 = vmatprep.subr.mxu1 %v3774_v10  ;;  %4958 = vmatprep.subr.mxu0 %v7225_v14 }
 0xe1e   :  { %3852 = vmatpush1.msra.mxu1 %v3773_v0  ;;  %4959 = vmatpush3.msra.mxu0 %v3775_v35 }
 0xebe   :  { %v3669_v54 = vpop.f32.mrf.mxu1  ;;  %v3740_v61 = vpop.f32.mrf.mxu0 }
 0xebf   :  { %v3744_v8 = vadd.f32 %v3669_v54, %v7319_v37  ;;  %v3758_v14 = vadd.f32 %v6820_v45, %v3740_v61 }
 0xec0   :  { %v4927_v43 = vpop.f32.mrf.mxu0  ;;  %v3671_v13 = vpop.f32.mrf.mxu1 }
 0xec1   :  { %v4081_v57 = vmul.f32 -1.442695, %v3744_v8  ;;  %v3751_v2 = vadd.f32 %v3671_v13, %v7320_v53 }
 0xec3   :  { %5115 = vpow2.f32 %v4081_v57  ;;  %v4082_v63 = vmul.f32 -1.442695, %v3751_v2 }
 0xec5   :  { %5117 = vpow2.f32 %v4082_v63 }
 0xed0   :  { %v5116_v20 = vpop.eup %5115 }
 0xed1   :  { %v3748_v17 = vadd.f32 1.0, %v5116_v20 }
 0xed2   :  { %v5118_v50 = vpop.eup %5117 }
 0xed3   :  { %5119 = vrcp.f32 %v3748_v17  ;;  %v3755_v19 = vadd.f32 1.0, %v5118_v50 }
 0xee0   :  { %v5120_v3 = vpop.eup %5119 }
 0xee1   :  { %v3759_v18 = vmul.f32 %v5120_v3, %v3758_v14 }
 0xee3   :  { %v3760_v38 = vadd.f32 %v3759_v18, %v7321_v49 }
 0xee5   :  { %5121 = vtanh.f32 %v3760_v38 }
 0xee6   :  { %5123 = vrcp.f32 %v3755_v19 }
 0xef2   :  { %v5122_v59 = vpop.eup %5121 }
 0xef3   :  { %v3762_v1 = vsub.f32 %v7083_v62, %v5122_v59  ;;  %v5124_v16 = vpop.eup %5123 }
 0xef5   :  { %v3763_v11 = vmul.f32 %v5124_v16, %v3762_v1 }
 0xef7   :  { %v3764_v12 = vadd.f32 %v5122_v59, %v3763_v11 }
 0xef9   :  { %3766 = vst [vmem:[#allocation6 + $0x70] sm:$0xff] %v3764_v12  ;;  %3886 = vmatmul.mubr.f32.vlgmr.msra.gmra.mxu1 %v3764_v12  ;;  %4961 = vmatmul.mubr.f32.vlgmr.msra.gmra.mxu0 %v3764_v12 }
 0xfb9   :  { %v3887_v30 = vpop.f32.mrf.mxu1  ;;  %v3958_v39 = vpop.f32.mrf.mxu0 }
 0xfba   :  { %v3962_v33 = vadd.f32 %v3887_v30, %v7322_v46  ;;  %v3976_v31 = vadd.f32 %v6820_v45, %v3958_v39 }
 0xfbb   :  { %v4962_v48 = vpop.f32.mrf.mxu0  ;;  %v3889_v42 = vpop.f32.mrf.mxu1 }
 0xfbc   :  { %v4083_v29 = vmul.f32 -1.442695, %v3962_v33  ;;  %v3969_v26 = vadd.f32 %v3889_v42, %v7323_v60 }
 0xfbe   :  { %5125 = vpow2.f32 %v4083_v29  ;;  %v4084_v9 = vmul.f32 -1.442695, %v3969_v26 }
 0xfc0   :  { %5127 = vpow2.f32 %v4084_v9 }
 0xfcb   :  { %v5126_v41 = vpop.eup %5125 }
 0xfcc   :  { %v3966_v56 = vadd.f32 1.0, %v5126_v41 }
 0xfcd   :  { %v5128_v62 = vpop.eup %5127 }
 0xfce   :  { %5129 = vrcp.f32 %v3966_v56  ;;  %v3973_v24 = vadd.f32 1.0, %v5128_v62 }
 0xfdb   :  { %v5130_v40 = vpop.eup %5129 }
 0xfdc   :  { %v3977_v44 = vmul.f32 %v5130_v40, %v3976_v31 }
 0xfde   :  { %v3978_v32 = vadd.f32 %v3977_v44, %v7324_v6 }
 0xfe0   :  { %5131 = vtanh.f32 %v3978_v32 }
 0xfe1   :  { %5133 = vrcp.f32 %v3973_v24 }
 0xfed   :  { %v5132_v51 = vpop.eup %5131 }
 0xfee   :  { %v3980_v25 = vsub.f32 %v3764_v12, %v5132_v51  ;;  %v5134_v47 = vpop.eup %5133 }
 0xff0   :  { %v3981_v7 = vmul.f32 %v5134_v47, %v3980_v25 }
 0xff2   :  { %v3982_v34 = vadd.f32 %v5132_v51, %v3981_v7 }
 0xff4   :  { %3984 = vst [vmem:[#allocation6 + $0x78] sm:$0xff] %v3982_v34 }
 0xff5   :  { %5168 = shalt.err (!%p5165_p9)
}
 0xff6   :  { %s5187_s29 = smov 128   ;;  %s5188_s30 = smov 8  }
 0xff7   :  { %3996 = dma.vmem_to_hbm [thread:$0]  %s3991_s27, 2048, %s7138_s6, [#allocation5], %s5187_s29, %s5187_s29, %s5188_s30  }
 0xff8   :  { %5179 = dma.done.wait [#allocation5], 2048  }
 0xff9   :  { %5180 = vsyncadd [#allocation5], 4294965248 }
 0xffa   :  { %4000 = vsyncpa [#allocation4], 1 }
 0xffb   :  { %4001 = vsyncpa [#allocation5], 1 }

</bundles_post_ra>
